<compile_context>
chip_gen: v6e
topology: v6e:2x2x1
jax: 0.10.0
libtpu: 0.0.40
codegen_flags: <defaults>
</compile_context>

<pallas_src>
import functools

import jax
import jax.numpy as jnp
from jax.experimental import pallas as pl
from jax.experimental.pallas import tpu as pltpu

LANE = 128  # TPU lane width; internal channel padding target


def _round_up(x, m):
    return (x + m - 1) // m * m


def _pick_row_tile(h, w, cp, budget_bytes=12 << 20):
    """Largest row tile (multiple of 8, dividing h) whose working set fits the budget."""
    if h % 8 != 0:
        return h
    per_row = 24 * w * cp                      # rough bytes of VMEM in flight per output row
    cap = max(8, (int(budget_bytes // per_row) // 8) * 8)
    th = min(h, cap)
    while h % th:
        th -= 8
    return max(th, 8)


def _pick_lane_tile(m, target=2048):
    """Tile of the flattened spatial dim: multiple of 128 dividing m (or full m)."""
    if m % 128:
        return m
    tm = min(m, target)
    tm -= tm % 128
    while m % tm:
        tm -= 128
    return tm


# ----------------------------------------------------------------------------
# Kernel 1: 2x2/2 max-pool + zero-pad channels to the lane-dense width CP.
# Wrapper free-reshapes NHWC (N,H,W,Cin) -> (N,H,W/2,2*Cin) so the two horizontally
# adjacent pixels sit on the lane axis (width pooling = contiguous lane slices) and
# the height pooling is a free leading-dim reshape + max.  Output is bf16.
# ----------------------------------------------------------------------------
def _maxpool2_chanpad_kernel(x_ref, o_ref, *, cin):
    # x_ref: (1, 2*thp, W2, 2*cin)   o_ref: (1, thp, W2, CP)
    thp, w2, cp = o_ref.shape[1], o_ref.shape[2], o_ref.shape[3]
    x = x_ref[0].astype(jnp.float32)                       # (2*thp, W2, 2*cin)
    xw = jnp.maximum(x[:, :, :cin], x[:, :, cin:])         # pool over width pairs
    xw = xw.reshape(thp, 2, w2, cin)                       # split leading dim (free)
    m = jnp.maximum(xw[:, 0], xw[:, 1])                    # pool over height pairs
    pad = jnp.zeros((thp, w2, cp - cin), jnp.float32)
    o_ref[0] = jnp.concatenate([m, pad], axis=-1).astype(o_ref.dtype)


def maxpool2_chanpad(x_nhwc, cp):
    N, H, W, cin = x_nhwc.shape
    H2, W2 = H // 2, W // 2
    xr = x_nhwc.reshape(N, H, W2, 2 * cin)                 # metadata-only reshape
    thp = _pick_row_tile(H2, W2, cp)
    nt = H2 // thp
    return pl.pallas_call(
        functools.partial(_maxpool2_chanpad_kernel, cin=cin),
        out_shape=jax.ShapeDtypeStruct((N, H2, W2, cp), jnp.bfloat16),
        grid=(N, nt),
        in_specs=[pl.BlockSpec((1, 2 * thp, W2, 2 * cin), lambda n, j: (n, j, 0, 0))],
        out_specs=pl.BlockSpec((1, thp, W2, cp), lambda n, j: (n, j, 0, 0)),
        compiler_params=pltpu.CompilerParams(
            dimension_semantics=("parallel", "parallel")),
    )(xr)


# ----------------------------------------------------------------------------
# Kernel 2: Conv3x3 ("SAME", no bias) as 9 accumulated per-tap matmuls, with
#   * optional fused BN+ReLU of the previous block applied on the input side,
#   * 1-row halo blocks (prev / next row) with boundary rows zeroed in-kernel,
#   * tap shifts via pltpu.roll + column masks (no unaligned slices),
#   * bf16 MXU operands, f32 accumulation,
#   * fused per-channel BN statistics (sum / sum-of-squares) as a second output,
#   * output stored lane-dense as bf16 (tile, CP).
# Grid: (N, H // th), both axes "parallel".
# ----------------------------------------------------------------------------
def _conv3x3_bnstats_kernel(xp_ref, xc_ref, xn_ref, w_ref, scale_ref, shift_ref,
                            y_ref, stats_ref, *, fuse_input_bnrelu):
    # xp/xn: (1,1,W,CP) halo rows   xc: (1,th,W,CP)   w: (9,CP,CP) bf16
    # scale/shift: (1,CP) f32       y: (1,th*W,CP) bf16   stats: (1,1,2,CP) f32
    th, W, CP = xc_ref.shape[1], xc_ref.shape[2], xc_ref.shape[3]
    i = pl.program_id(1)
    nt = pl.num_programs(1)

    def act(v):
        if fuse_input_bnrelu:
            sc = scale_ref[...].reshape(1, 1, CP)
            sh = shift_ref[...].reshape(1, 1, CP)
            return jnp.maximum(v * sc + sh, 0.0)           # BN + ReLU of previous block
        return v

    # BN/ReLU first, then zero the image-boundary halo rows ("SAME" padding).
    top = act(xp_ref[0].astype(jnp.float32)) * (i > 0).astype(jnp.float32)
    mid = act(xc_ref[0].astype(jnp.float32))
    bot = act(xn_ref[0].astype(jnp.float32)) * (i < nt - 1).astype(jnp.float32)
    xext = jnp.concatenate([top, mid, bot], axis=0)        # (th+2, W, CP) f32

    M = th * W
    Mext = (th + 2) * W
    xf = xext.reshape(Mext, CP)                            # free (W multiple of 8)
    col = jax.lax.broadcasted_iota(jnp.int32, (M, 1), 0) % W

    acc = jnp.zeros((M, CP), jnp.float32)
    for dy in range(3):
        for dx in range(3):
            s = dy * W + dx - 1                            # flat source offset of this tap
            t = xf if s == 0 else pltpu.roll(xf, shift=(-s) % Mext, axis=0)
            t = t[:M]
            if dx == 0:                                    # left column padding
                t = jnp.where(col == 0, 0.0, t)
            elif dx == 2:                                  # right column padding
                t = jnp.where(col == W - 1, 0.0, t)
            acc = acc + jnp.dot(t.astype(jnp.bfloat16), w_ref[dy * 3 + dx],
                                preferred_element_type=jnp.float32)

    y_ref[0] = acc.astype(y_ref.dtype)                     # lane-dense store

    # Partial BN statistics in f32 (reduced across the grid in the wrapper).
    s_sum = jnp.sum(acc, axis=0, keepdims=True)
    s_sq = jnp.sum(acc * acc, axis=0, keepdims=True)
    stats_ref[0, 0] = jnp.concatenate([s_sum, s_sq], axis=0)


def conv3x3_bnstats(x_nhwc_p, w_packed, scale, shift, *, fuse_input_bnrelu):
    N, H, W, cp = x_nhwc_p.shape
    th = _pick_row_tile(H, W, cp)
    nt = H // th
    y, stats = pl.pallas_call(
        functools.partial(_conv3x3_bnstats_kernel,
                          fuse_input_bnrelu=fuse_input_bnrelu),
        out_shape=(jax.ShapeDtypeStruct((N, H * W, cp), jnp.bfloat16),
                   jax.ShapeDtypeStruct((N, nt, 2, cp), jnp.float32)),
        grid=(N, nt),
        in_specs=[
            # 1-row halo above the tile (clamped at the top image edge).
            pl.BlockSpec((1, 1, W, cp),
                         lambda n, i: (n, jnp.maximum(i * th - 1, 0), 0, 0)),
            # the tile itself
            pl.BlockSpec((1, th, W, cp), lambda n, i: (n, i, 0, 0)),
            # 1-row halo below the tile (clamped at the bottom image edge).
            pl.BlockSpec((1, 1, W, cp),
                         lambda n, i: (n, jnp.minimum((i + 1) * th, H - 1), 0, 0)),
            pl.BlockSpec((9, cp, cp), lambda n, i: (0, 0, 0)),
            pl.BlockSpec((1, cp), lambda n, i: (0, 0)),
            pl.BlockSpec((1, cp), lambda n, i: (0, 0)),
        ],
        out_specs=(pl.BlockSpec((1, th * W, cp), lambda n, i: (n, i, 0)),
                   pl.BlockSpec((1, 1, 2, cp), lambda n, i: (n, i, 0, 0))),
        compiler_params=pltpu.CompilerParams(
            dimension_semantics=("parallel", "parallel"),
            vmem_limit_bytes=48 * 1024 * 1024),
    )(x_nhwc_p, x_nhwc_p, x_nhwc_p, w_packed, scale, shift)
    return y, stats


# ----------------------------------------------------------------------------
# Kernel 3: final BN + ReLU, emitted directly in NCHW (flattened spatial) with an
# in-kernel 2D transpose, so no wrapper output transpose and no 8-lane masked stores.
# ----------------------------------------------------------------------------
def _bn_relu_nchw_kernel(y_ref, scale_ref, shift_ref, o_ref):
    # y_ref: (1, TM, CP) bf16   scale/shift: (1, CP) f32   o_ref: (1, cout, TM) f32
    cout = o_ref.shape[1]
    y = y_ref[0].astype(jnp.float32)                       # (TM, CP)
    z = jnp.maximum(y * scale_ref[...] + shift_ref[...], 0.0)
    o_ref[0] = jnp.transpose(z)[:cout, :]                  # (CP, TM) -> keep real channels


def bn_relu_to_nchw(y_flat_p, scale, shift, cout):
    N, M, cp = y_flat_p.shape
    tm = _pick_lane_tile(M)
    nm = M // tm
    return pl.pallas_call(
        _bn_relu_nchw_kernel,
        out_shape=jax.ShapeDtypeStruct((N, cout, M), jnp.float32),
        grid=(N, nm),
        in_specs=[
            pl.BlockSpec((1, tm, cp), lambda n, j: (n, j, 0)),
            pl.BlockSpec((1, cp), lambda n, j: (0, 0)),
            pl.BlockSpec((1, cp), lambda n, j: (0, 0)),
        ],
        out_specs=pl.BlockSpec((1, cout, tm), lambda n, j: (n, 0, j)),
        compiler_params=pltpu.CompilerParams(
            dimension_semantics=("parallel", "parallel")),
    )(y_flat_p, scale, shift)


# ----------------------------------------------------------------------------
# Wrapper-side helpers (tiny, plain JAX)
# ----------------------------------------------------------------------------
def _pack_conv_weight(w_hwio, cp):
    """HWIO (3,3,Cin,Cout) -> zero-padded bf16 (9, CP, CP), one (CP,CP) tap per (dy,dx)."""
    kh, kw, cin, cout = w_hwio.shape
    wp = jnp.zeros((kh, kw, cp, cp), jnp.float32)
    wp = wp.at[:, :, :cin, :cout].set(w_hwio.astype(jnp.float32))
    return wp.reshape(kh * kw, cp, cp).astype(jnp.bfloat16)


def _bn_affine_from_stats(stats, gamma, beta, count, cp, eps=1e-5):
    """Reduce per-tile [sum, sumsq] -> per-channel scale/shift (training-mode BN)."""
    s = jnp.sum(stats, axis=(0, 1))                        # (2, cp)
    mean = s[0] / count
    var = jnp.maximum(s[1] / count - mean * mean, 0.0)     # biased variance
    g = jnp.zeros((cp,), jnp.float32).at[:gamma.shape[0]].set(gamma.astype(jnp.float32))
    b = jnp.zeros((cp,), jnp.float32).at[:beta.shape[0]].set(beta.astype(jnp.float32))
    scale = g * jax.lax.rsqrt(var + eps)
    shift = b - mean * scale
    return scale.reshape(1, cp), shift.reshape(1, cp)


# ----------------------------------------------------------------------------
# Down forward (NCHW in, NCHW out, matching the PyTorch module)
# ----------------------------------------------------------------------------
@jax.jit
def down_forward(x_nchw, w1, g1, b1, w2, g2, b2):
    N, cin, H, W = x_nchw.shape
    H2, W2 = H // 2, W // 2
    cmid = w1.shape[-1]
    cout = w2.shape[-1]
    cp = max(LANE, _round_up(max(cin, cmid, cout), LANE))

    # NCHW -> NHWC at the module boundary (see TODO at the top about fusing this).
    x = jnp.transpose(x_nchw, (0, 2, 3, 1))

    # MaxPool2d(2) + lane-dense channel padding (bf16 internal layout).
    xp = maxpool2_chanpad(x, cp)                           # (N, H2, W2, cp) bf16

    w1p = _pack_conv_weight(w1, cp)
    w2p = _pack_conv_weight(w2, cp)
    ident_s = jnp.ones((1, cp), jnp.float32)
    ident_b = jnp.zeros((1, cp), jnp.float32)
    count = N * H2 * W2

    # Conv1 (+ fused BN1 statistics).
    y1, st1 = conv3x3_bnstats(xp, w1p, ident_s, ident_b, fuse_input_bnrelu=False)
    scale1, shift1 = _bn_affine_from_stats(st1, g1, b1, count, cp)

    # Conv2 with BN1+ReLU fused on its input side (+ fused BN2 statistics).
    y1n = y1.reshape(N, H2, W2, cp)                        # metadata-only reshape
    y2, st2 = conv3x3_bnstats(y1n, w2p, scale1, shift1, fuse_input_bnrelu=True)
    scale2, shift2 = _bn_affine_from_stats(st2, g2, b2, count, cp)

    # Final BN2 + ReLU, emitted directly in (N, cout, H2*W2).
    out_flat = bn_relu_to_nchw(y2, scale2, shift2, cout)
    return out_flat.reshape(N, cout, H2, W2)               # free metadata reshape


# ----------------------------------------------------------------------------
# Pure-JAX f32 reference (maxpool -> (conv -> train-mode BN -> ReLU) * 2)
# ----------------------------------------------------------------------------
def ref_down(x_nchw, w1, g1, b1, w2, g2, b2, eps=1e-5):
    N, C, H, W = x_nchw.shape
    x = x_nchw.reshape(N, C, H // 2, 2, W // 2, 2).max(axis=(3, 5))
    x = jnp.transpose(x, (0, 2, 3, 1))

    def block(x, w, g, b):
        y = jax.lax.conv_general_dilated(
            x, w, (1, 1), "SAME", dimension_numbers=("NHWC", "HWIO", "NHWC"))
        mean = y.mean(axis=(0, 1, 2), keepdims=True)
        var = ((y - mean) ** 2).mean(axis=(0, 1, 2), keepdims=True)
        y = (y - mean) * jax.lax.rsqrt(var + eps) * g.reshape(1, 1, 1, -1) \
            + b.reshape(1, 1, 1, -1)
        return jnp.maximum(y, 0.0)

    x = block(x, w1, g1, b1)
    x = block(x, w2, g2, b2)
    return jnp.transpose(x, (0, 3, 1, 2))


if __name__ == "__main__":
    key = jax.random.PRNGKey(0)
    kx, k1, k2, k3, k4 = jax.random.split(key, 5)

    # Down(in_channels=4, out_channels=8): MaxPool2d(2) then DoubleConv(4, 8).
    N, Cin, H, W = 2, 4, 16, 16
    Cmid = Cout = 8

    x = jax.random.normal(kx, (N, Cin, H, W), jnp.float32)
    w1 = 0.1 * jax.random.normal(k1, (3, 3, Cin, Cmid), jnp.float32)   # HWIO
    w2 = 0.1 * jax.random.normal(k2, (3, 3, Cmid, Cout), jnp.float32)  # HWIO
    g1 = 1.0 + 0.1 * jax.random.normal(k3, (Cmid,), jnp.float32)
    b1 = 0.1 * jax.random.normal(k4, (Cmid,), jnp.float32)
    g2 = jnp.ones((Cout,), jnp.float32)
    b2 = jnp.zeros((Cout,), jnp.float32)

    out = down_forward(x, w1, g1, b1, w2, g2, b2)
    jax.block_until_ready(out)

    ref = ref_down(x, w1, g1, b1, w2, g2, b2)
    assert out.shape == (N, Cout, H // 2, W // 2)
    # bf16 MXU operands + bf16 intermediates -> compare with a relative Frobenius check
    # (a tap/BN bug would blow this up by orders of magnitude; bf16 noise stays ~2%).
    rel_err = float(jnp.linalg.norm(out - ref) / jnp.linalg.norm(ref))
    assert rel_err < 0.05, rel_err
    assert bool(jnp.all(jnp.isfinite(out)))

    print("KERNEL_OK")
</pallas_src>

<mosaic_0001>
module attributes {stable_mosaic.version = 11 : i64} {
  func.func @_maxpool2_chanpad_kernel(%arg0: i32, %arg1: i32, %arg2: memref<1x16x8x8xf32, #tpu.memory_space<vmem>>, %arg3: memref<1x8x8x128xbf16, #tpu.memory_space<vmem>>) attributes {dimension_semantics = [#tpu.dimension_semantics<parallel>, #tpu.dimension_semantics<parallel>], iteration_bounds = array<i64: 2, 1>, scalar_prefetch = 0 : i64, scratch_operands = 0 : i64, tpu.core_type = #tpu.core_type<tc>, window_params = [{transform_indices = @transform_0, window_bounds = array<i64: 1, 16, 8, 8>}, {transform_indices = @transform_1, window_bounds = array<i64: 1, 8, 8, 128>}]} {
    %c0 = arith.constant 0 : index
    %c0_0 = arith.constant 0 : index
    %c0_1 = arith.constant 0 : index
    %c0_2 = arith.constant 0 : index
    %0 = vector.load %arg2[%c0, %c0_0, %c0_1, %c0_2] : memref<1x16x8x8xf32, #tpu.memory_space<vmem>>, vector<1x16x8x8xf32>
    %1 = vector.shape_cast %0 : vector<1x16x8x8xf32> to vector<16x8x8xf32>
    %2 = vector.extract_strided_slice %1 {offsets = [0, 0, 0], sizes = [16, 8, 4], strides = [1, 1, 1]} : vector<16x8x8xf32> to vector<16x8x4xf32>
    %3 = vector.extract_strided_slice %1 {offsets = [0, 0, 4], sizes = [16, 8, 4], strides = [1, 1, 1]} : vector<16x8x8xf32> to vector<16x8x4xf32>
    %4 = arith.maximumf %2, %3 : vector<16x8x4xf32>
    %5 = vector.shape_cast %4 : vector<16x8x4xf32> to vector<8x2x8x4xf32>
    %6 = vector.extract_strided_slice %5 {offsets = [0, 0, 0, 0], sizes = [8, 1, 8, 4], strides = [1, 1, 1, 1]} : vector<8x2x8x4xf32> to vector<8x1x8x4xf32>
    %7 = vector.shape_cast %6 : vector<8x1x8x4xf32> to vector<8x8x4xf32>
    %8 = vector.extract_strided_slice %5 {offsets = [0, 1, 0, 0], sizes = [8, 1, 8, 4], strides = [1, 1, 1, 1]} : vector<8x2x8x4xf32> to vector<8x1x8x4xf32>
    %9 = vector.shape_cast %8 : vector<8x1x8x4xf32> to vector<8x8x4xf32>
    %10 = arith.maximumf %7, %9 : vector<8x8x4xf32>
    %cst = arith.constant 0.000000e+00 : f32
    %11 = vector.broadcast %cst : f32 to vector<8x8x124xf32>
    %12 = tpu.concatenate %10, %11 in 2 : vector<8x8x4xf32>, vector<8x8x124xf32> -> vector<8x8x128xf32>
    %13 = arith.truncf %12 : vector<8x8x128xf32> to vector<8x8x128xbf16>
    %c0_3 = arith.constant 0 : index
    %c0_4 = arith.constant 0 : index
    %c0_5 = arith.constant 0 : index
    %c0_6 = arith.constant 0 : index
    %14 = vector.load %arg3[%c0_3, %c0_4, %c0_5, %c0_6] : memref<1x8x8x128xbf16, #tpu.memory_space<vmem>>, vector<1x8x8x128xbf16>
    %15 = vector.shape_cast %14 : vector<1x8x8x128xbf16> to vector<8x8x128xbf16>
    %16 = vector.shape_cast %13 : vector<8x8x128xbf16> to vector<1x8x8x128xbf16>
    tpu.vector_store %arg3[%c0_3, %c0_4, %c0_5, %c0_6], %16 {strides = array<i32>} : memref<1x8x8x128xbf16, #tpu.memory_space<vmem>>, vector<1x8x8x128xbf16>,
    return
  }
  func.func @transform_0(%arg0: i32, %arg1: i32) -> (i32, i32, i32, i32) {
    %c0_i32 = arith.constant 0 : i32
    %c0_i32_0 = arith.constant 0 : i32
    %c0_i32_1 = arith.constant 0 : i32
    return %arg0, %arg1, %c0_i32, %c0_i32_0 : i32, i32, i32, i32
  }
  func.func @transform_1(%arg0: i32, %arg1: i32) -> (i32, i32, i32, i32) {
    %c0_i32 = arith.constant 0 : i32
    %c0_i32_0 = arith.constant 0 : i32
    %c0_i32_1 = arith.constant 0 : i32
    return %arg0, %arg1, %c0_i32, %c0_i32_0 : i32, i32, i32, i32
  }
}

module attributes {stable_mosaic.version = 11 : i64} {
  func.func @_conv3x3_bnstats_kernel(%arg0: i32, %arg1: i32, %arg2: memref<1x1x8x128xbf16, #tpu.memory_space<vmem>>, %arg3: memref<1x8x8x128xbf16, #tpu.memory_space<vmem>>, %arg4: memref<1x1x8x128xbf16, #tpu.memory_space<vmem>>, %arg5: memref<9x128x128xbf16, #tpu.memory_space<vmem>>, %arg6: memref<1x128xf32, #tpu.memory_space<vmem>>, %arg7: memref<1x128xf32, #tpu.memory_space<vmem>>, %arg8: memref<1x64x128xbf16, #tpu.memory_space<vmem>>, %arg9: memref<1x1x2x128xf32, #tpu.memory_space<vmem>>) attributes {dimension_semantics = [#tpu.dimension_semantics<parallel>, #tpu.dimension_semantics<parallel>], iteration_bounds = array<i64: 2, 1>, scalar_prefetch = 0 : i64, scratch_operands = 0 : i64, tpu.core_type = #tpu.core_type<tc>, window_params = [{transform_indices = @transform_0, window_bounds = array<i64: 1, 1, 8, 128>}, {transform_indices = @transform_1, window_bounds = array<i64: 1, 8, 8, 128>}, {transform_indices = @transform_2, window_bounds = array<i64: 1, 1, 8, 128>}, {pipeline_mode = #tpu.pipeline_mode<synchronous>, transform_indices = @transform_3, window_bounds = array<i64: 9, 128, 128>}, {pipeline_mode = #tpu.pipeline_mode<synchronous>, transform_indices = @transform_4, window_bounds = array<i64: 1, 128>}, {pipeline_mode = #tpu.pipeline_mode<synchronous>, transform_indices = @transform_5, window_bounds = array<i64: 1, 128>}, {transform_indices = @transform_6, window_bounds = array<i64: 1, 64, 128>}, {transform_indices = @transform_7, window_bounds = array<i64: 1, 1, 2, 128>}]} {
    %c0 = arith.constant 0 : index
    %c0_0 = arith.constant 0 : index
    %c0_1 = arith.constant 0 : index
    %c0_2 = arith.constant 0 : index
    %0 = vector.load %arg2[%c0, %c0_0, %c0_1, %c0_2] : memref<1x1x8x128xbf16, #tpu.memory_space<vmem>>, vector<1x1x8x128xbf16>
    %1 = vector.shape_cast %0 : vector<1x1x8x128xbf16> to vector<1x8x128xbf16>
    %2 = arith.extf %1 : vector<1x8x128xbf16> to vector<1x8x128xf32>
    %c0_i32 = arith.constant 0 : i32
    %3 = arith.cmpi sgt, %arg1, %c0_i32 : i32
    %4 = arith.extui %3 : i1 to i32
    %5 = arith.sitofp %4 : i32 to f32
    %6 = vector.broadcast %5 : f32 to vector<1x8x128xf32>
    %7 = arith.mulf %2, %6 : vector<1x8x128xf32>
    %c0_3 = arith.constant 0 : index
    %c0_4 = arith.constant 0 : index
    %c0_5 = arith.constant 0 : index
    %c0_6 = arith.constant 0 : index
    %8 = vector.load %arg3[%c0_3, %c0_4, %c0_5, %c0_6] : memref<1x8x8x128xbf16, #tpu.memory_space<vmem>>, vector<1x8x8x128xbf16>
    %9 = vector.shape_cast %8 : vector<1x8x8x128xbf16> to vector<8x8x128xbf16>
    %10 = arith.extf %9 : vector<8x8x128xbf16> to vector<8x8x128xf32>
    %c0_7 = arith.constant 0 : index
    %c0_8 = arith.constant 0 : index
    %c0_9 = arith.constant 0 : index
    %c0_10 = arith.constant 0 : index
    %11 = vector.load %arg4[%c0_7, %c0_8, %c0_9, %c0_10] : memref<1x1x8x128xbf16, #tpu.memory_space<vmem>>, vector<1x1x8x128xbf16>
    %12 = vector.shape_cast %11 : vector<1x1x8x128xbf16> to vector<1x8x128xbf16>
    %13 = arith.extf %12 : vector<1x8x128xbf16> to vector<1x8x128xf32>
    %c0_i32_11 = arith.constant 0 : i32
    %14 = arith.cmpi slt, %arg1, %c0_i32_11 : i32
    %15 = arith.extui %14 : i1 to i32
    %16 = arith.sitofp %15 : i32 to f32
    %17 = vector.broadcast %16 : f32 to vector<1x8x128xf32>
    %18 = arith.mulf %13, %17 : vector<1x8x128xf32>
    %19 = tpu.concatenate %7, %10, %18 in 0 : vector<1x8x128xf32>, vector<8x8x128xf32>, vector<1x8x128xf32> -> vector<10x8x128xf32>
    %20 = vector.shape_cast %19 : vector<10x8x128xf32> to vector<80x128xf32>
    %21 = tpu.iota {dimensions = array<i32: 0>} : vector<64x1xi32>
    %c8_i32 = arith.constant 8 : i32
    %c0_i32_12 = arith.constant 0 : i32
    %22 = arith.cmpi eq, %c8_i32, %c0_i32_12 : i32
    %c1_i32 = arith.constant 1 : i32
    %23 = arith.select %22, %c1_i32, %c8_i32 : i32
    %24 = vector.broadcast %23 : i32 to vector<64x1xi32>
    %25 = arith.remsi %21, %24 : vector<64x1xi32>
    %c0_i32_13 = arith.constant 0 : i32
    %26 = vector.broadcast %c0_i32_13 : i32 to vector<64x1xi32>
    %27 = arith.cmpi ne, %25, %26 : vector<64x1xi32>
    %c0_i32_14 = arith.constant 0 : i32
    %28 = vector.broadcast %c0_i32_14 : i32 to vector<64x1xi32>
    %29 = arith.cmpi slt, %25, %28 : vector<64x1xi32>
    %c0_i32_15 = arith.constant 0 : i32
    %30 = arith.cmpi slt, %23, %c0_i32_15 : i32
    %31 = vector.broadcast %30 : i1 to vector<64x1xi1>
    %32 = vector.broadcast %31 : vector<64x1xi1> to vector<64x1xi1>
    %33 = arith.xori %29, %32 : vector<64x1xi1>
    %34 = arith.andi %33, %27 : vector<64x1xi1>
    %35 = vector.broadcast %23 : i32 to vector<64x1xi32>
    %36 = arith.addi %25, %35 : vector<64x1xi32>
    %37 = arith.select %34, %36, %25 : vector<64x1xi1>, vector<64x1xi32>
    %cst = arith.constant 0.000000e+00 : f32
    %38 = vector.broadcast %cst : f32 to vector<64x128xf32>
    %c1_i32_16 = arith.constant 1 : i32
    %39 = tpu.dynamic_rotate %20 by %c1_i32_16 dim 0 : vector<80x128xf32>, i32 -> vector<80x128xf32>
    %40 = vector.extract_strided_slice %39 {offsets = [0, 0], sizes = [64, 128], strides = [1, 1]} : vector<80x128xf32> to vector<64x128xf32>
    %c0_i32_17 = arith.constant 0 : i32
    %41 = vector.broadcast %c0_i32_17 : i32 to vector<64x1xi32>
    %42 = arith.cmpi eq, %37, %41 : vector<64x1xi32>
    %cst_18 = arith.constant 0.000000e+00 : f32
    %43 = vector.shape_cast %42 : vector<64x1xi1> to vector<64x1xi1>
    %44 = vector.broadcast %43 : vector<64x1xi1> to vector<64x128xi1>
    %45 = vector.broadcast %cst_18 : f32 to vector<64x128xf32>
    %46 = arith.select %44, %45, %40 : vector<64x128xi1>, vector<64x128xf32>
    %47 = arith.truncf %46 : vector<64x128xf32> to vector<64x128xbf16>
    %c0_19 = arith.constant 0 : index
    %c0_20 = arith.constant 0 : index
    %c0_21 = arith.constant 0 : index
    %48 = vector.load %arg5[%c0_19, %c0_20, %c0_21] : memref<9x128x128xbf16, #tpu.memory_space<vmem>>, vector<1x128x128xbf16>
    %49 = vector.shape_cast %48 : vector<1x128x128xbf16> to vector<128x128xbf16>
    %cst_22 = arith.constant dense<0.000000e+00> : vector<64x128xf32>
    %50 = tpu.matmul %47, %49, %cst_22 {dimension_numbers = #tpu.dot_dimension_numbers<[1], [0], [0], [1], [0, 0, 1, 1], [], []>} : vector<64x128xbf16>, vector<128x128xbf16>, vector<64x128xf32> -> vector<64x128xf32>
    %51 = arith.addf %38, %50 : vector<64x128xf32>
    %52 = vector.extract_strided_slice %20 {offsets = [0, 0], sizes = [64, 128], strides = [1, 1]} : vector<80x128xf32> to vector<64x128xf32>
    %53 = arith.truncf %52 : vector<64x128xf32> to vector<64x128xbf16>
    %c1 = arith.constant 1 : index
    %c0_23 = arith.constant 0 : index
    %c0_24 = arith.constant 0 : index
    %54 = vector.load %arg5[%c1, %c0_23, %c0_24] : memref<9x128x128xbf16, #tpu.memory_space<vmem>>, vector<1x128x128xbf16>
    %55 = vector.shape_cast %54 : vector<1x128x128xbf16> to vector<128x128xbf16>
    %cst_25 = arith.constant dense<0.000000e+00> : vector<64x128xf32>
    %56 = tpu.matmul %53, %55, %cst_25 {dimension_numbers = #tpu.dot_dimension_numbers<[1], [0], [0], [1], [0, 0, 1, 1], [], []>} : vector<64x128xbf16>, vector<128x128xbf16>, vector<64x128xf32> -> vector<64x128xf32>
    %57 = arith.addf %51, %56 : vector<64x128xf32>
    %c79_i32 = arith.constant 79 : i32
    %58 = tpu.dynamic_rotate %20 by %c79_i32 dim 0 : vector<80x128xf32>, i32 -> vector<80x128xf32>
    %59 = vector.extract_strided_slice %58 {offsets = [0, 0], sizes = [64, 128], strides = [1, 1]} : vector<80x128xf32> to vector<64x128xf32>
    %c7_i32 = arith.constant 7 : i32
    %60 = vector.broadcast %c7_i32 : i32 to vector<64x1xi32>
    %61 = arith.cmpi eq, %37, %60 : vector<64x1xi32>
    %cst_26 = arith.constant 0.000000e+00 : f32
    %62 = vector.shape_cast %61 : vector<64x1xi1> to vector<64x1xi1>
    %63 = vector.broadcast %62 : vector<64x1xi1> to vector<64x128xi1>
    %64 = vector.broadcast %cst_26 : f32 to vector<64x128xf32>
    %65 = arith.select %63, %64, %59 : vector<64x128xi1>, vector<64x128xf32>
    %66 = arith.truncf %65 : vector<64x128xf32> to vector<64x128xbf16>
    %c2 = arith.constant 2 : index
    %c0_27 = arith.constant 0 : index
    %c0_28 = arith.constant 0 : index
    %67 = vector.load %arg5[%c2, %c0_27, %c0_28] : memref<9x128x128xbf16, #tpu.memory_space<vmem>>, vector<1x128x128xbf16>
    %68 = vector.shape_cast %67 : vector<1x128x128xbf16> to vector<128x128xbf16>
    %cst_29 = arith.constant dense<0.000000e+00> : vector<64x128xf32>
    %69 = tpu.matmul %66, %68, %cst_29 {dimension_numbers = #tpu.dot_dimension_numbers<[1], [0], [0], [1], [0, 0, 1, 1], [], []>} : vector<64x128xbf16>, vector<128x128xbf16>, vector<64x128xf32> -> vector<64x128xf32>
    %70 = arith.addf %57, %69 : vector<64x128xf32>
    %c73_i32 = arith.constant 73 : i32
    %71 = tpu.dynamic_rotate %20 by %c73_i32 dim 0 : vector<80x128xf32>, i32 -> vector<80x128xf32>
    %72 = vector.extract_strided_slice %71 {offsets = [0, 0], sizes = [64, 128], strides = [1, 1]} : vector<80x128xf32> to vector<64x128xf32>
    %c0_i32_30 = arith.constant 0 : i32
    %73 = vector.broadcast %c0_i32_30 : i32 to vector<64x1xi32>
    %74 = arith.cmpi eq, %37, %73 : vector<64x1xi32>
    %cst_31 = arith.constant 0.000000e+00 : f32
    %75 = vector.shape_cast %74 : vector<64x1xi1> to vector<64x1xi1>
    %76 = vector.broadcast %75 : vector<64x1xi1> to vector<64x128xi1>
    %77 = vector.broadcast %cst_31 : f32 to vector<64x128xf32>
    %78 = arith.select %76, %77, %72 : vector<64x128xi1>, vector<64x128xf32>
    %79 = arith.truncf %78 : vector<64x128xf32> to vector<64x128xbf16>
    %c3 = arith.constant 3 : index
    %c0_32 = arith.constant 0 : index
    %c0_33 = arith.constant 0 : index
    %80 = vector.load %arg5[%c3, %c0_32, %c0_33] : memref<9x128x128xbf16, #tpu.memory_space<vmem>>, vector<1x128x128xbf16>
    %81 = vector.shape_cast %80 : vector<1x128x128xbf16> to vector<128x128xbf16>
    %cst_34 = arith.constant dense<0.000000e+00> : vector<64x128xf32>
    %82 = tpu.matmul %79, %81, %cst_34 {dimension_numbers = #tpu.dot_dimension_numbers<[1], [0], [0], [1], [0, 0, 1, 1], [], []>} : vector<64x128xbf16>, vector<128x128xbf16>, vector<64x128xf32> -> vector<64x128xf32>
    %83 = arith.addf %70, %82 : vector<64x128xf32>
    %c72_i32 = arith.constant 72 : i32
    %84 = tpu.dynamic_rotate %20 by %c72_i32 dim 0 : vector<80x128xf32>, i32 -> vector<80x128xf32>
    %85 = vector.extract_strided_slice %84 {offsets = [0, 0], sizes = [64, 128], strides = [1, 1]} : vector<80x128xf32> to vector<64x128xf32>
    %86 = arith.truncf %85 : vector<64x128xf32> to vector<64x128xbf16>
    %c4 = arith.constant 4 : index
    %c0_35 = arith.constant 0 : index
    %c0_36 = arith.constant 0 : index
    %87 = vector.load %arg5[%c4, %c0_35, %c0_36] : memref<9x128x128xbf16, #tpu.memory_space<vmem>>, vector<1x128x128xbf16>
    %88 = vector.shape_cast %87 : vector<1x128x128xbf16> to vector<128x128xbf16>
    %cst_37 = arith.constant dense<0.000000e+00> : vector<64x128xf32>
    %89 = tpu.matmul %86, %88, %cst_37 {dimension_numbers = #tpu.dot_dimension_numbers<[1], [0], [0], [1], [0, 0, 1, 1], [], []>} : vector<64x128xbf16>, vector<128x128xbf16>, vector<64x128xf32> -> vector<64x128xf32>
    %90 = arith.addf %83, %89 : vector<64x128xf32>
    %c71_i32 = arith.constant 71 : i32
    %91 = tpu.dynamic_rotate %20 by %c71_i32 dim 0 : vector<80x128xf32>, i32 -> vector<80x128xf32>
    %92 = vector.extract_strided_slice %91 {offsets = [0, 0], sizes = [64, 128], strides = [1, 1]} : vector<80x128xf32> to vector<64x128xf32>
    %c7_i32_38 = arith.constant 7 : i32
    %93 = vector.broadcast %c7_i32_38 : i32 to vector<64x1xi32>
    %94 = arith.cmpi eq, %37, %93 : vector<64x1xi32>
    %cst_39 = arith.constant 0.000000e+00 : f32
    %95 = vector.shape_cast %94 : vector<64x1xi1> to vector<64x1xi1>
    %96 = vector.broadcast %95 : vector<64x1xi1> to vector<64x128xi1>
    %97 = vector.broadcast %cst_39 : f32 to vector<64x128xf32>
    %98 = arith.select %96, %97, %92 : vector<64x128xi1>, vector<64x128xf32>
    %99 = arith.truncf %98 : vector<64x128xf32> to vector<64x128xbf16>
    %c5 = arith.constant 5 : index
    %c0_40 = arith.constant 0 : index
    %c0_41 = arith.constant 0 : index
    %100 = vector.load %arg5[%c5, %c0_40, %c0_41] : memref<9x128x128xbf16, #tpu.memory_space<vmem>>, vector<1x128x128xbf16>
    %101 = vector.shape_cast %100 : vector<1x128x128xbf16> to vector<128x128xbf16>
    %cst_42 = arith.constant dense<0.000000e+00> : vector<64x128xf32>
    %102 = tpu.matmul %99, %101, %cst_42 {dimension_numbers = #tpu.dot_dimension_numbers<[1], [0], [0], [1], [0, 0, 1, 1], [], []>} : vector<64x128xbf16>, vector<128x128xbf16>, vector<64x128xf32> -> vector<64x128xf32>
    %103 = arith.addf %90, %102 : vector<64x128xf32>
    %c65_i32 = arith.constant 65 : i32
    %104 = tpu.dynamic_rotate %20 by %c65_i32 dim 0 : vector<80x128xf32>, i32 -> vector<80x128xf32>
    %105 = vector.extract_strided_slice %104 {offsets = [0, 0], sizes = [64, 128], strides = [1, 1]} : vector<80x128xf32> to vector<64x128xf32>
    %c0_i32_43 = arith.constant 0 : i32
    %106 = vector.broadcast %c0_i32_43 : i32 to vector<64x1xi32>
    %107 = arith.cmpi eq, %37, %106 : vector<64x1xi32>
    %cst_44 = arith.constant 0.000000e+00 : f32
    %108 = vector.shape_cast %107 : vector<64x1xi1> to vector<64x1xi1>
    %109 = vector.broadcast %108 : vector<64x1xi1> to vector<64x128xi1>
    %110 = vector.broadcast %cst_44 : f32 to vector<64x128xf32>
    %111 = arith.select %109, %110, %105 : vector<64x128xi1>, vector<64x128xf32>
    %112 = arith.truncf %111 : vector<64x128xf32> to vector<64x128xbf16>
    %c6 = arith.constant 6 : index
    %c0_45 = arith.constant 0 : index
    %c0_46 = arith.constant 0 : index
    %113 = vector.load %arg5[%c6, %c0_45, %c0_46] : memref<9x128x128xbf16, #tpu.memory_space<vmem>>, vector<1x128x128xbf16>
    %114 = vector.shape_cast %113 : vector<1x128x128xbf16> to vector<128x128xbf16>
    %cst_47 = arith.constant dense<0.000000e+00> : vector<64x128xf32>
    %115 = tpu.matmul %112, %114, %cst_47 {dimension_numbers = #tpu.dot_dimension_numbers<[1], [0], [0], [1], [0, 0, 1, 1], [], []>} : vector<64x128xbf16>, vector<128x128xbf16>, vector<64x128xf32> -> vector<64x128xf32>
    %116 = arith.addf %103, %115 : vector<64x128xf32>
    %c64_i32 = arith.constant 64 : i32
    %117 = tpu.dynamic_rotate %20 by %c64_i32 dim 0 : vector<80x128xf32>, i32 -> vector<80x128xf32>
    %118 = vector.extract_strided_slice %117 {offsets = [0, 0], sizes = [64, 128], strides = [1, 1]} : vector<80x128xf32> to vector<64x128xf32>
    %119 = arith.truncf %118 : vector<64x128xf32> to vector<64x128xbf16>
    %c7 = arith.constant 7 : index
    %c0_48 = arith.constant 0 : index
    %c0_49 = arith.constant 0 : index
    %120 = vector.load %arg5[%c7, %c0_48, %c0_49] : memref<9x128x128xbf16, #tpu.memory_space<vmem>>, vector<1x128x128xbf16>
    %121 = vector.shape_cast %120 : vector<1x128x128xbf16> to vector<128x128xbf16>
    %cst_50 = arith.constant dense<0.000000e+00> : vector<64x128xf32>
    %122 = tpu.matmul %119, %121, %cst_50 {dimension_numbers = #tpu.dot_dimension_numbers<[1], [0], [0], [1], [0, 0, 1, 1], [], []>} : vector<64x128xbf16>, vector<128x128xbf16>, vector<64x128xf32> -> vector<64x128xf32>
    %123 = arith.addf %116, %122 : vector<64x128xf32>
    %c63_i32 = arith.constant 63 : i32
    %124 = tpu.dynamic_rotate %20 by %c63_i32 dim 0 : vector<80x128xf32>, i32 -> vector<80x128xf32>
    %125 = vector.extract_strided_slice %124 {offsets = [0, 0], sizes = [64, 128], strides = [1, 1]} : vector<80x128xf32> to vector<64x128xf32>
    %c7_i32_51 = arith.constant 7 : i32
    %126 = vector.broadcast %c7_i32_51 : i32 to vector<64x1xi32>
    %127 = arith.cmpi eq, %37, %126 : vector<64x1xi32>
    %cst_52 = arith.constant 0.000000e+00 : f32
    %128 = vector.shape_cast %127 : vector<64x1xi1> to vector<64x1xi1>
    %129 = vector.broadcast %128 : vector<64x1xi1> to vector<64x128xi1>
    %130 = vector.broadcast %cst_52 : f32 to vector<64x128xf32>
    %131 = arith.select %129, %130, %125 : vector<64x128xi1>, vector<64x128xf32>
    %132 = arith.truncf %131 : vector<64x128xf32> to vector<64x128xbf16>
    %c8 = arith.constant 8 : index
    %c0_53 = arith.constant 0 : index
    %c0_54 = arith.constant 0 : index
    %133 = vector.load %arg5[%c8, %c0_53, %c0_54] : memref<9x128x128xbf16, #tpu.memory_space<vmem>>, vector<1x128x128xbf16>
    %134 = vector.shape_cast %133 : vector<1x128x128xbf16> to vector<128x128xbf16>
    %cst_55 = arith.constant dense<0.000000e+00> : vector<64x128xf32>
    %135 = tpu.matmul %132, %134, %cst_55 {dimension_numbers = #tpu.dot_dimension_numbers<[1], [0], [0], [1], [0, 0, 1, 1], [], []>} : vector<64x128xbf16>, vector<128x128xbf16>, vector<64x128xf32> -> vector<64x128xf32>
    %136 = arith.addf %123, %135 : vector<64x128xf32>
    %137 = arith.truncf %136 : vector<64x128xf32> to vector<64x128xbf16>
    %c0_56 = arith.constant 0 : index
    %c0_57 = arith.constant 0 : index
    %c0_58 = arith.constant 0 : index
    %138 = vector.load %arg8[%c0_56, %c0_57, %c0_58] : memref<1x64x128xbf16, #tpu.memory_space<vmem>>, vector<1x64x128xbf16>
    %139 = vector.shape_cast %138 : vector<1x64x128xbf16> to vector<64x128xbf16>
    %140 = vector.shape_cast %137 : vector<64x128xbf16> to vector<1x64x128xbf16>
    tpu.vector_store %arg8[%c0_56, %c0_57, %c0_58], %140 {strides = array<i32>} : memref<1x64x128xbf16, #tpu.memory_space<vmem>>, vector<1x64x128xbf16>,
    %cst_59 = arith.constant dense<0.000000e+00> : vector<128xf32>
    %141 = vector.multi_reduction <add>, %136, %cst_59 [0] : vector<64x128xf32> to vector<128xf32>
    %142 = vector.shape_cast %141 : vector<128xf32> to vector<1x128xf32>
    %143 = arith.mulf %136, %136 : vector<64x128xf32>
    %cst_60 = arith.constant dense<0.000000e+00> : vector<128xf32>
    %144 = vector.multi_reduction <add>, %143, %cst_60 [0] : vector<64x128xf32> to vector<128xf32>
    %145 = vector.shape_cast %144 : vector<128xf32> to vector<1x128xf32>
    %146 = tpu.concatenate %142, %145 in 0 : vector<1x128xf32>, vector<1x128xf32> -> vector<2x128xf32>
    %c0_61 = arith.constant 0 : index
    %c0_62 = arith.constant 0 : index
    %c0_63 = arith.constant 0 : index
    %c0_64 = arith.constant 0 : index
    %147 = vector.load %arg9[%c0_61, %c0_62, %c0_63, %c0_64] : memref<1x1x2x128xf32, #tpu.memory_space<vmem>>, vector<1x1x2x128xf32>
    %148 = vector.shape_cast %147 : vector<1x1x2x128xf32> to vector<2x128xf32>
    %149 = vector.shape_cast %146 : vector<2x128xf32> to vector<1x1x2x128xf32>
    tpu.vector_store %arg9[%c0_61, %c0_62, %c0_63, %c0_64], %149 {strides = array<i32>} : memref<1x1x2x128xf32, #tpu.memory_space<vmem>>, vector<1x1x2x128xf32>,
    return
  }
  func.func @transform_0(%arg0: i32, %arg1: i32) -> (i32, i32, i32, i32) {
    %c8_i32 = arith.constant 8 : i32
    %0 = arith.muli %arg1, %c8_i32 : i32
    %c1_i32 = arith.constant 1 : i32
    %1 = arith.subi %0, %c1_i32 : i32
    %c0_i32 = arith.constant 0 : i32
    %2 = arith.maxsi %1, %c0_i32 : i32
    %c0_i32_0 = arith.constant 0 : i32
    %c0_i32_1 = arith.constant 0 : i32
    %c0_i32_2 = arith.constant 0 : i32
    return %arg0, %2, %c0_i32_0, %c0_i32_1 : i32, i32, i32, i32
  }
  func.func @transform_1(%arg0: i32, %arg1: i32) -> (i32, i32, i32, i32) {
    %c0_i32 = arith.constant 0 : i32
    %c0_i32_0 = arith.constant 0 : i32
    %c0_i32_1 = arith.constant 0 : i32
    return %arg0, %arg1, %c0_i32, %c0_i32_0 : i32, i32, i32, i32
  }
  func.func @transform_2(%arg0: i32, %arg1: i32) -> (i32, i32, i32, i32) {
    %c1_i32 = arith.constant 1 : i32
    %0 = arith.addi %arg1, %c1_i32 : i32
    %c8_i32 = arith.constant 8 : i32
    %1 = arith.muli %0, %c8_i32 : i32
    %c7_i32 = arith.constant 7 : i32
    %2 = arith.minsi %1, %c7_i32 : i32
    %c0_i32 = arith.constant 0 : i32
    %c0_i32_0 = arith.constant 0 : i32
    %c0_i32_1 = arith.constant 0 : i32
    return %arg0, %2, %c0_i32, %c0_i32_0 : i32, i32, i32, i32
  }
  func.func @transform_3(%arg0: i32, %arg1: i32) -> (i32, i32, i32) {
    %c0_i32 = arith.constant 0 : i32
    %c0_i32_0 = arith.constant 0 : i32
    %c0_i32_1 = arith.constant 0 : i32
    %c0_i32_2 = arith.constant 0 : i32
    return %c0_i32, %c0_i32_0, %c0_i32_1 : i32, i32, i32
  }
  func.func @transform_4(%arg0: i32, %arg1: i32) -> (i32, i32) {
    %c0_i32 = arith.constant 0 : i32
    %c0_i32_0 = arith.constant 0 : i32
    %c0_i32_1 = arith.constant 0 : i32
    return %c0_i32, %c0_i32_0 : i32, i32
  }
  func.func @transform_5(%arg0: i32, %arg1: i32) -> (i32, i32) {
    %c0_i32 = arith.constant 0 : i32
    %c0_i32_0 = arith.constant 0 : i32
    %c0_i32_1 = arith.constant 0 : i32
    return %c0_i32, %c0_i32_0 : i32, i32
  }
  func.func @transform_6(%arg0: i32, %arg1: i32) -> (i32, i32, i32) {
    %c0_i32 = arith.constant 0 : i32
    %c0_i32_0 = arith.constant 0 : i32
    return %arg0, %arg1, %c0_i32 : i32, i32, i32
  }
  func.func @transform_7(%arg0: i32, %arg1: i32) -> (i32, i32, i32, i32) {
    %c0_i32 = arith.constant 0 : i32
    %c0_i32_0 = arith.constant 0 : i32
    %c0_i32_1 = arith.constant 0 : i32
    return %arg0, %arg1, %c0_i32, %c0_i32_0 : i32, i32, i32, i32
  }
}

module attributes {stable_mosaic.version = 11 : i64} {
  func.func @_conv3x3_bnstats_kernel(%arg0: i32, %arg1: i32, %arg2: memref<1x1x8x128xbf16, #tpu.memory_space<vmem>>, %arg3: memref<1x8x8x128xbf16, #tpu.memory_space<vmem>>, %arg4: memref<1x1x8x128xbf16, #tpu.memory_space<vmem>>, %arg5: memref<9x128x128xbf16, #tpu.memory_space<vmem>>, %arg6: memref<1x128xf32, #tpu.memory_space<vmem>>, %arg7: memref<1x128xf32, #tpu.memory_space<vmem>>, %arg8: memref<1x64x128xbf16, #tpu.memory_space<vmem>>, %arg9: memref<1x1x2x128xf32, #tpu.memory_space<vmem>>) attributes {dimension_semantics = [#tpu.dimension_semantics<parallel>, #tpu.dimension_semantics<parallel>], iteration_bounds = array<i64: 2, 1>, scalar_prefetch = 0 : i64, scratch_operands = 0 : i64, tpu.core_type = #tpu.core_type<tc>, window_params = [{transform_indices = @transform_0, window_bounds = array<i64: 1, 1, 8, 128>}, {transform_indices = @transform_1, window_bounds = array<i64: 1, 8, 8, 128>}, {transform_indices = @transform_2, window_bounds = array<i64: 1, 1, 8, 128>}, {pipeline_mode = #tpu.pipeline_mode<synchronous>, transform_indices = @transform_3, window_bounds = array<i64: 9, 128, 128>}, {pipeline_mode = #tpu.pipeline_mode<synchronous>, transform_indices = @transform_4, window_bounds = array<i64: 1, 128>}, {pipeline_mode = #tpu.pipeline_mode<synchronous>, transform_indices = @transform_5, window_bounds = array<i64: 1, 128>}, {transform_indices = @transform_6, window_bounds = array<i64: 1, 64, 128>}, {transform_indices = @transform_7, window_bounds = array<i64: 1, 1, 2, 128>}]} {
    %c0 = arith.constant 0 : index
    %c0_0 = arith.constant 0 : index
    %c0_1 = arith.constant 0 : index
    %c0_2 = arith.constant 0 : index
    %0 = vector.load %arg2[%c0, %c0_0, %c0_1, %c0_2] : memref<1x1x8x128xbf16, #tpu.memory_space<vmem>>, vector<1x1x8x128xbf16>
    %1 = vector.shape_cast %0 : vector<1x1x8x128xbf16> to vector<1x8x128xbf16>
    %2 = arith.extf %1 : vector<1x8x128xbf16> to vector<1x8x128xf32>
    %c0_3 = arith.constant 0 : index
    %c0_4 = arith.constant 0 : index
    %3 = vector.load %arg6[%c0_3, %c0_4] : memref<1x128xf32, #tpu.memory_space<vmem>>, vector<1x128xf32>
    %4 = vector.shape_cast %3 : vector<1x128xf32> to vector<1x1x128xf32>
    %c0_5 = arith.constant 0 : index
    %c0_6 = arith.constant 0 : index
    %5 = vector.load %arg7[%c0_5, %c0_6] : memref<1x128xf32, #tpu.memory_space<vmem>>, vector<1x128xf32>
    %6 = vector.shape_cast %5 : vector<1x128xf32> to vector<1x1x128xf32>
    %7 = vector.broadcast %4 : vector<1x1x128xf32> to vector<1x8x128xf32>
    %8 = arith.mulf %2, %7 : vector<1x8x128xf32>
    %9 = vector.broadcast %6 : vector<1x1x128xf32> to vector<1x8x128xf32>
    %10 = arith.addf %8, %9 : vector<1x8x128xf32>
    %cst = arith.constant 0.000000e+00 : f32
    %11 = vector.broadcast %cst : f32 to vector<1x8x128xf32>
    %12 = arith.maximumf %10, %11 : vector<1x8x128xf32>
    %c0_i32 = arith.constant 0 : i32
    %13 = arith.cmpi sgt, %arg1, %c0_i32 : i32
    %14 = arith.extui %13 : i1 to i32
    %15 = arith.sitofp %14 : i32 to f32
    %16 = vector.broadcast %15 : f32 to vector<1x8x128xf32>
    %17 = arith.mulf %12, %16 : vector<1x8x128xf32>
    %c0_7 = arith.constant 0 : index
    %c0_8 = arith.constant 0 : index
    %c0_9 = arith.constant 0 : index
    %c0_10 = arith.constant 0 : index
    %18 = vector.load %arg3[%c0_7, %c0_8, %c0_9, %c0_10] : memref<1x8x8x128xbf16, #tpu.memory_space<vmem>>, vector<1x8x8x128xbf16>
    %19 = vector.shape_cast %18 : vector<1x8x8x128xbf16> to vector<8x8x128xbf16>
    %20 = arith.extf %19 : vector<8x8x128xbf16> to vector<8x8x128xf32>
    %c0_11 = arith.constant 0 : index
    %c0_12 = arith.constant 0 : index
    %21 = vector.load %arg6[%c0_11, %c0_12] : memref<1x128xf32, #tpu.memory_space<vmem>>, vector<1x128xf32>
    %22 = vector.shape_cast %21 : vector<1x128xf32> to vector<1x1x128xf32>
    %c0_13 = arith.constant 0 : index
    %c0_14 = arith.constant 0 : index
    %23 = vector.load %arg7[%c0_13, %c0_14] : memref<1x128xf32, #tpu.memory_space<vmem>>, vector<1x128xf32>
    %24 = vector.shape_cast %23 : vector<1x128xf32> to vector<1x1x128xf32>
    %25 = vector.broadcast %22 : vector<1x1x128xf32> to vector<8x8x128xf32>
    %26 = arith.mulf %20, %25 : vector<8x8x128xf32>
    %27 = vector.broadcast %24 : vector<1x1x128xf32> to vector<8x8x128xf32>
    %28 = arith.addf %26, %27 : vector<8x8x128xf32>
    %cst_15 = arith.constant 0.000000e+00 : f32
    %29 = vector.broadcast %cst_15 : f32 to vector<8x8x128xf32>
    %30 = arith.maximumf %28, %29 : vector<8x8x128xf32>
    %c0_16 = arith.constant 0 : index
    %c0_17 = arith.constant 0 : index
    %c0_18 = arith.constant 0 : index
    %c0_19 = arith.constant 0 : index
    %31 = vector.load %arg4[%c0_16, %c0_17, %c0_18, %c0_19] : memref<1x1x8x128xbf16, #tpu.memory_space<vmem>>, vector<1x1x8x128xbf16>
    %32 = vector.shape_cast %31 : vector<1x1x8x128xbf16> to vector<1x8x128xbf16>
    %33 = arith.extf %32 : vector<1x8x128xbf16> to vector<1x8x128xf32>
    %c0_20 = arith.constant 0 : index
    %c0_21 = arith.constant 0 : index
    %34 = vector.load %arg6[%c0_20, %c0_21] : memref<1x128xf32, #tpu.memory_space<vmem>>, vector<1x128xf32>
    %35 = vector.shape_cast %34 : vector<1x128xf32> to vector<1x1x128xf32>
    %c0_22 = arith.constant 0 : index
    %c0_23 = arith.constant 0 : index
    %36 = vector.load %arg7[%c0_22, %c0_23] : memref<1x128xf32, #tpu.memory_space<vmem>>, vector<1x128xf32>
    %37 = vector.shape_cast %36 : vector<1x128xf32> to vector<1x1x128xf32>
    %38 = vector.broadcast %35 : vector<1x1x128xf32> to vector<1x8x128xf32>
    %39 = arith.mulf %33, %38 : vector<1x8x128xf32>
    %40 = vector.broadcast %37 : vector<1x1x128xf32> to vector<1x8x128xf32>
    %41 = arith.addf %39, %40 : vector<1x8x128xf32>
    %cst_24 = arith.constant 0.000000e+00 : f32
    %42 = vector.broadcast %cst_24 : f32 to vector<1x8x128xf32>
    %43 = arith.maximumf %41, %42 : vector<1x8x128xf32>
    %c0_i32_25 = arith.constant 0 : i32
    %44 = arith.cmpi slt, %arg1, %c0_i32_25 : i32
    %45 = arith.extui %44 : i1 to i32
    %46 = arith.sitofp %45 : i32 to f32
    %47 = vector.broadcast %46 : f32 to vector<1x8x128xf32>
    %48 = arith.mulf %43, %47 : vector<1x8x128xf32>
    %49 = tpu.concatenate %17, %30, %48 in 0 : vector<1x8x128xf32>, vector<8x8x128xf32>, vector<1x8x128xf32> -> vector<10x8x128xf32>
    %50 = vector.shape_cast %49 : vector<10x8x128xf32> to vector<80x128xf32>
    %51 = tpu.iota {dimensions = array<i32: 0>} : vector<64x1xi32>
    %c8_i32 = arith.constant 8 : i32
    %c0_i32_26 = arith.constant 0 : i32
    %52 = arith.cmpi eq, %c8_i32, %c0_i32_26 : i32
    %c1_i32 = arith.constant 1 : i32
    %53 = arith.select %52, %c1_i32, %c8_i32 : i32
    %54 = vector.broadcast %53 : i32 to vector<64x1xi32>
    %55 = arith.remsi %51, %54 : vector<64x1xi32>
    %c0_i32_27 = arith.constant 0 : i32
    %56 = vector.broadcast %c0_i32_27 : i32 to vector<64x1xi32>
    %57 = arith.cmpi ne, %55, %56 : vector<64x1xi32>
    %c0_i32_28 = arith.constant 0 : i32
    %58 = vector.broadcast %c0_i32_28 : i32 to vector<64x1xi32>
    %59 = arith.cmpi slt, %55, %58 : vector<64x1xi32>
    %c0_i32_29 = arith.constant 0 : i32
    %60 = arith.cmpi slt, %53, %c0_i32_29 : i32
    %61 = vector.broadcast %60 : i1 to vector<64x1xi1>
    %62 = vector.broadcast %61 : vector<64x1xi1> to vector<64x1xi1>
    %63 = arith.xori %59, %62 : vector<64x1xi1>
    %64 = arith.andi %63, %57 : vector<64x1xi1>
    %65 = vector.broadcast %53 : i32 to vector<64x1xi32>
    %66 = arith.addi %55, %65 : vector<64x1xi32>
    %67 = arith.select %64, %66, %55 : vector<64x1xi1>, vector<64x1xi32>
    %cst_30 = arith.constant 0.000000e+00 : f32
    %68 = vector.broadcast %cst_30 : f32 to vector<64x128xf32>
    %c1_i32_31 = arith.constant 1 : i32
    %69 = tpu.dynamic_rotate %50 by %c1_i32_31 dim 0 : vector<80x128xf32>, i32 -> vector<80x128xf32>
    %70 = vector.extract_strided_slice %69 {offsets = [0, 0], sizes = [64, 128], strides = [1, 1]} : vector<80x128xf32> to vector<64x128xf32>
    %c0_i32_32 = arith.constant 0 : i32
    %71 = vector.broadcast %c0_i32_32 : i32 to vector<64x1xi32>
    %72 = arith.cmpi eq, %67, %71 : vector<64x1xi32>
    %cst_33 = arith.constant 0.000000e+00 : f32
    %73 = vector.shape_cast %72 : vector<64x1xi1> to vector<64x1xi1>
    %74 = vector.broadcast %73 : vector<64x1xi1> to vector<64x128xi1>
    %75 = vector.broadcast %cst_33 : f32 to vector<64x128xf32>
    %76 = arith.select %74, %75, %70 : vector<64x128xi1>, vector<64x128xf32>
    %77 = arith.truncf %76 : vector<64x128xf32> to vector<64x128xbf16>
    %c0_34 = arith.constant 0 : index
    %c0_35 = arith.constant 0 : index
    %c0_36 = arith.constant 0 : index
    %78 = vector.load %arg5[%c0_34, %c0_35, %c0_36] : memref<9x128x128xbf16, #tpu.memory_space<vmem>>, vector<1x128x128xbf16>
    %79 = vector.shape_cast %78 : vector<1x128x128xbf16> to vector<128x128xbf16>
    %cst_37 = arith.constant dense<0.000000e+00> : vector<64x128xf32>
    %80 = tpu.matmul %77, %79, %cst_37 {dimension_numbers = #tpu.dot_dimension_numbers<[1], [0], [0], [1], [0, 0, 1, 1], [], []>} : vector<64x128xbf16>, vector<128x128xbf16>, vector<64x128xf32> -> vector<64x128xf32>
    %81 = arith.addf %68, %80 : vector<64x128xf32>
    %82 = vector.extract_strided_slice %50 {offsets = [0, 0], sizes = [64, 128], strides = [1, 1]} : vector<80x128xf32> to vector<64x128xf32>
    %83 = arith.truncf %82 : vector<64x128xf32> to vector<64x128xbf16>
    %c1 = arith.constant 1 : index
    %c0_38 = arith.constant 0 : index
    %c0_39 = arith.constant 0 : index
    %84 = vector.load %arg5[%c1, %c0_38, %c0_39] : memref<9x128x128xbf16, #tpu.memory_space<vmem>>, vector<1x128x128xbf16>
    %85 = vector.shape_cast %84 : vector<1x128x128xbf16> to vector<128x128xbf16>
    %cst_40 = arith.constant dense<0.000000e+00> : vector<64x128xf32>
    %86 = tpu.matmul %83, %85, %cst_40 {dimension_numbers = #tpu.dot_dimension_numbers<[1], [0], [0], [1], [0, 0, 1, 1], [], []>} : vector<64x128xbf16>, vector<128x128xbf16>, vector<64x128xf32> -> vector<64x128xf32>
    %87 = arith.addf %81, %86 : vector<64x128xf32>
    %c79_i32 = arith.constant 79 : i32
    %88 = tpu.dynamic_rotate %50 by %c79_i32 dim 0 : vector<80x128xf32>, i32 -> vector<80x128xf32>
    %89 = vector.extract_strided_slice %88 {offsets = [0, 0], sizes = [64, 128], strides = [1, 1]} : vector<80x128xf32> to vector<64x128xf32>
    %c7_i32 = arith.constant 7 : i32
    %90 = vector.broadcast %c7_i32 : i32 to vector<64x1xi32>
    %91 = arith.cmpi eq, %67, %90 : vector<64x1xi32>
    %cst_41 = arith.constant 0.000000e+00 : f32
    %92 = vector.shape_cast %91 : vector<64x1xi1> to vector<64x1xi1>
    %93 = vector.broadcast %92 : vector<64x1xi1> to vector<64x128xi1>
    %94 = vector.broadcast %cst_41 : f32 to vector<64x128xf32>
    %95 = arith.select %93, %94, %89 : vector<64x128xi1>, vector<64x128xf32>
    %96 = arith.truncf %95 : vector<64x128xf32> to vector<64x128xbf16>
    %c2 = arith.constant 2 : index
    %c0_42 = arith.constant 0 : index
    %c0_43 = arith.constant 0 : index
    %97 = vector.load %arg5[%c2, %c0_42, %c0_43] : memref<9x128x128xbf16, #tpu.memory_space<vmem>>, vector<1x128x128xbf16>
    %98 = vector.shape_cast %97 : vector<1x128x128xbf16> to vector<128x128xbf16>
    %cst_44 = arith.constant dense<0.000000e+00> : vector<64x128xf32>
    %99 = tpu.matmul %96, %98, %cst_44 {dimension_numbers = #tpu.dot_dimension_numbers<[1], [0], [0], [1], [0, 0, 1, 1], [], []>} : vector<64x128xbf16>, vector<128x128xbf16>, vector<64x128xf32> -> vector<64x128xf32>
    %100 = arith.addf %87, %99 : vector<64x128xf32>
    %c73_i32 = arith.constant 73 : i32
    %101 = tpu.dynamic_rotate %50 by %c73_i32 dim 0 : vector<80x128xf32>, i32 -> vector<80x128xf32>
    %102 = vector.extract_strided_slice %101 {offsets = [0, 0], sizes = [64, 128], strides = [1, 1]} : vector<80x128xf32> to vector<64x128xf32>
    %c0_i32_45 = arith.constant 0 : i32
    %103 = vector.broadcast %c0_i32_45 : i32 to vector<64x1xi32>
    %104 = arith.cmpi eq, %67, %103 : vector<64x1xi32>
    %cst_46 = arith.constant 0.000000e+00 : f32
    %105 = vector.shape_cast %104 : vector<64x1xi1> to vector<64x1xi1>
    %106 = vector.broadcast %105 : vector<64x1xi1> to vector<64x128xi1>
    %107 = vector.broadcast %cst_46 : f32 to vector<64x128xf32>
    %108 = arith.select %106, %107, %102 : vector<64x128xi1>, vector<64x128xf32>
    %109 = arith.truncf %108 : vector<64x128xf32> to vector<64x128xbf16>
    %c3 = arith.constant 3 : index
    %c0_47 = arith.constant 0 : index
    %c0_48 = arith.constant 0 : index
    %110 = vector.load %arg5[%c3, %c0_47, %c0_48] : memref<9x128x128xbf16, #tpu.memory_space<vmem>>, vector<1x128x128xbf16>
    %111 = vector.shape_cast %110 : vector<1x128x128xbf16> to vector<128x128xbf16>
    %cst_49 = arith.constant dense<0.000000e+00> : vector<64x128xf32>
    %112 = tpu.matmul %109, %111, %cst_49 {dimension_numbers = #tpu.dot_dimension_numbers<[1], [0], [0], [1], [0, 0, 1, 1], [], []>} : vector<64x128xbf16>, vector<128x128xbf16>, vector<64x128xf32> -> vector<64x128xf32>
    %113 = arith.addf %100, %112 : vector<64x128xf32>
    %c72_i32 = arith.constant 72 : i32
    %114 = tpu.dynamic_rotate %50 by %c72_i32 dim 0 : vector<80x128xf32>, i32 -> vector<80x128xf32>
    %115 = vector.extract_strided_slice %114 {offsets = [0, 0], sizes = [64, 128], strides = [1, 1]} : vector<80x128xf32> to vector<64x128xf32>
    %116 = arith.truncf %115 : vector<64x128xf32> to vector<64x128xbf16>
    %c4 = arith.constant 4 : index
    %c0_50 = arith.constant 0 : index
    %c0_51 = arith.constant 0 : index
    %117 = vector.load %arg5[%c4, %c0_50, %c0_51] : memref<9x128x128xbf16, #tpu.memory_space<vmem>>, vector<1x128x128xbf16>
    %118 = vector.shape_cast %117 : vector<1x128x128xbf16> to vector<128x128xbf16>
    %cst_52 = arith.constant dense<0.000000e+00> : vector<64x128xf32>
    %119 = tpu.matmul %116, %118, %cst_52 {dimension_numbers = #tpu.dot_dimension_numbers<[1], [0], [0], [1], [0, 0, 1, 1], [], []>} : vector<64x128xbf16>, vector<128x128xbf16>, vector<64x128xf32> -> vector<64x128xf32>
    %120 = arith.addf %113, %119 : vector<64x128xf32>
    %c71_i32 = arith.constant 71 : i32
    %121 = tpu.dynamic_rotate %50 by %c71_i32 dim 0 : vector<80x128xf32>, i32 -> vector<80x128xf32>
    %122 = vector.extract_strided_slice %121 {offsets = [0, 0], sizes = [64, 128], strides = [1, 1]} : vector<80x128xf32> to vector<64x128xf32>
    %c7_i32_53 = arith.constant 7 : i32
    %123 = vector.broadcast %c7_i32_53 : i32 to vector<64x1xi32>
    %124 = arith.cmpi eq, %67, %123 : vector<64x1xi32>
    %cst_54 = arith.constant 0.000000e+00 : f32
    %125 = vector.shape_cast %124 : vector<64x1xi1> to vector<64x1xi1>
    %126 = vector.broadcast %125 : vector<64x1xi1> to vector<64x128xi1>
    %127 = vector.broadcast %cst_54 : f32 to vector<64x128xf32>
    %128 = arith.select %126, %127, %122 : vector<64x128xi1>, vector<64x128xf32>
    %129 = arith.truncf %128 : vector<64x128xf32> to vector<64x128xbf16>
    %c5 = arith.constant 5 : index
    %c0_55 = arith.constant 0 : index
    %c0_56 = arith.constant 0 : index
    %130 = vector.load %arg5[%c5, %c0_55, %c0_56] : memref<9x128x128xbf16, #tpu.memory_space<vmem>>, vector<1x128x128xbf16>
    %131 = vector.shape_cast %130 : vector<1x128x128xbf16> to vector<128x128xbf16>
    %cst_57 = arith.constant dense<0.000000e+00> : vector<64x128xf32>
    %132 = tpu.matmul %129, %131, %cst_57 {dimension_numbers = #tpu.dot_dimension_numbers<[1], [0], [0], [1], [0, 0, 1, 1], [], []>} : vector<64x128xbf16>, vector<128x128xbf16>, vector<64x128xf32> -> vector<64x128xf32>
    %133 = arith.addf %120, %132 : vector<64x128xf32>
    %c65_i32 = arith.constant 65 : i32
    %134 = tpu.dynamic_rotate %50 by %c65_i32 dim 0 : vector<80x128xf32>, i32 -> vector<80x128xf32>
    %135 = vector.extract_strided_slice %134 {offsets = [0, 0], sizes = [64, 128], strides = [1, 1]} : vector<80x128xf32> to vector<64x128xf32>
    %c0_i32_58 = arith.constant 0 : i32
    %136 = vector.broadcast %c0_i32_58 : i32 to vector<64x1xi32>
    %137 = arith.cmpi eq, %67, %136 : vector<64x1xi32>
    %cst_59 = arith.constant 0.000000e+00 : f32
    %138 = vector.shape_cast %137 : vector<64x1xi1> to vector<64x1xi1>
    %139 = vector.broadcast %138 : vector<64x1xi1> to vector<64x128xi1>
    %140 = vector.broadcast %cst_59 : f32 to vector<64x128xf32>
    %141 = arith.select %139, %140, %135 : vector<64x128xi1>, vector<64x128xf32>
    %142 = arith.truncf %141 : vector<64x128xf32> to vector<64x128xbf16>
    %c6 = arith.constant 6 : index
    %c0_60 = arith.constant 0 : index
    %c0_61 = arith.constant 0 : index
    %143 = vector.load %arg5[%c6, %c0_60, %c0_61] : memref<9x128x128xbf16, #tpu.memory_space<vmem>>, vector<1x128x128xbf16>
    %144 = vector.shape_cast %143 : vector<1x128x128xbf16> to vector<128x128xbf16>
    %cst_62 = arith.constant dense<0.000000e+00> : vector<64x128xf32>
    %145 = tpu.matmul %142, %144, %cst_62 {dimension_numbers = #tpu.dot_dimension_numbers<[1], [0], [0], [1], [0, 0, 1, 1], [], []>} : vector<64x128xbf16>, vector<128x128xbf16>, vector<64x128xf32> -> vector<64x128xf32>
    %146 = arith.addf %133, %145 : vector<64x128xf32>
    %c64_i32 = arith.constant 64 : i32
    %147 = tpu.dynamic_rotate %50 by %c64_i32 dim 0 : vector<80x128xf32>, i32 -> vector<80x128xf32>
    %148 = vector.extract_strided_slice %147 {offsets = [0, 0], sizes = [64, 128], strides = [1, 1]} : vector<80x128xf32> to vector<64x128xf32>
    %149 = arith.truncf %148 : vector<64x128xf32> to vector<64x128xbf16>
    %c7 = arith.constant 7 : index
    %c0_63 = arith.constant 0 : index
    %c0_64 = arith.constant 0 : index
    %150 = vector.load %arg5[%c7, %c0_63, %c0_64] : memref<9x128x128xbf16, #tpu.memory_space<vmem>>, vector<1x128x128xbf16>
    %151 = vector.shape_cast %150 : vector<1x128x128xbf16> to vector<128x128xbf16>
    %cst_65 = arith.constant dense<0.000000e+00> : vector<64x128xf32>
    %152 = tpu.matmul %149, %151, %cst_65 {dimension_numbers = #tpu.dot_dimension_numbers<[1], [0], [0], [1], [0, 0, 1, 1], [], []>} : vector<64x128xbf16>, vector<128x128xbf16>, vector<64x128xf32> -> vector<64x128xf32>
    %153 = arith.addf %146, %152 : vector<64x128xf32>
    %c63_i32 = arith.constant 63 : i32
    %154 = tpu.dynamic_rotate %50 by %c63_i32 dim 0 : vector<80x128xf32>, i32 -> vector<80x128xf32>
    %155 = vector.extract_strided_slice %154 {offsets = [0, 0], sizes = [64, 128], strides = [1, 1]} : vector<80x128xf32> to vector<64x128xf32>
    %c7_i32_66 = arith.constant 7 : i32
    %156 = vector.broadcast %c7_i32_66 : i32 to vector<64x1xi32>
    %157 = arith.cmpi eq, %67, %156 : vector<64x1xi32>
    %cst_67 = arith.constant 0.000000e+00 : f32
    %158 = vector.shape_cast %157 : vector<64x1xi1> to vector<64x1xi1>
    %159 = vector.broadcast %158 : vector<64x1xi1> to vector<64x128xi1>
    %160 = vector.broadcast %cst_67 : f32 to vector<64x128xf32>
    %161 = arith.select %159, %160, %155 : vector<64x128xi1>, vector<64x128xf32>
    %162 = arith.truncf %161 : vector<64x128xf32> to vector<64x128xbf16>
    %c8 = arith.constant 8 : index
    %c0_68 = arith.constant 0 : index
    %c0_69 = arith.constant 0 : index
    %163 = vector.load %arg5[%c8, %c0_68, %c0_69] : memref<9x128x128xbf16, #tpu.memory_space<vmem>>, vector<1x128x128xbf16>
    %164 = vector.shape_cast %163 : vector<1x128x128xbf16> to vector<128x128xbf16>
    %cst_70 = arith.constant dense<0.000000e+00> : vector<64x128xf32>
    %165 = tpu.matmul %162, %164, %cst_70 {dimension_numbers = #tpu.dot_dimension_numbers<[1], [0], [0], [1], [0, 0, 1, 1], [], []>} : vector<64x128xbf16>, vector<128x128xbf16>, vector<64x128xf32> -> vector<64x128xf32>
    %166 = arith.addf %153, %165 : vector<64x128xf32>
    %167 = arith.truncf %166 : vector<64x128xf32> to vector<64x128xbf16>
    %c0_71 = arith.constant 0 : index
    %c0_72 = arith.constant 0 : index
    %c0_73 = arith.constant 0 : index
    %168 = vector.load %arg8[%c0_71, %c0_72, %c0_73] : memref<1x64x128xbf16, #tpu.memory_space<vmem>>, vector<1x64x128xbf16>
    %169 = vector.shape_cast %168 : vector<1x64x128xbf16> to vector<64x128xbf16>
    %170 = vector.shape_cast %167 : vector<64x128xbf16> to vector<1x64x128xbf16>
    tpu.vector_store %arg8[%c0_71, %c0_72, %c0_73], %170 {strides = array<i32>} : memref<1x64x128xbf16, #tpu.memory_space<vmem>>, vector<1x64x128xbf16>,
    %cst_74 = arith.constant dense<0.000000e+00> : vector<128xf32>
    %171 = vector.multi_reduction <add>, %166, %cst_74 [0] : vector<64x128xf32> to vector<128xf32>
    %172 = vector.shape_cast %171 : vector<128xf32> to vector<1x128xf32>
    %173 = arith.mulf %166, %166 : vector<64x128xf32>
    %cst_75 = arith.constant dense<0.000000e+00> : vector<128xf32>
    %174 = vector.multi_reduction <add>, %173, %cst_75 [0] : vector<64x128xf32> to vector<128xf32>
    %175 = vector.shape_cast %174 : vector<128xf32> to vector<1x128xf32>
    %176 = tpu.concatenate %172, %175 in 0 : vector<1x128xf32>, vector<1x128xf32> -> vector<2x128xf32>
    %c0_76 = arith.constant 0 : index
    %c0_77 = arith.constant 0 : index
    %c0_78 = arith.constant 0 : index
    %c0_79 = arith.constant 0 : index
    %177 = vector.load %arg9[%c0_76, %c0_77, %c0_78, %c0_79] : memref<1x1x2x128xf32, #tpu.memory_space<vmem>>, vector<1x1x2x128xf32>
    %178 = vector.shape_cast %177 : vector<1x1x2x128xf32> to vector<2x128xf32>
    %179 = vector.shape_cast %176 : vector<2x128xf32> to vector<1x1x2x128xf32>
    tpu.vector_store %arg9[%c0_76, %c0_77, %c0_78, %c0_79], %179 {strides = array<i32>} : memref<1x1x2x128xf32, #tpu.memory_space<vmem>>, vector<1x1x2x128xf32>,
    return
  }
  func.func @transform_0(%arg0: i32, %arg1: i32) -> (i32, i32, i32, i32) {
    %c8_i32 = arith.constant 8 : i32
    %0 = arith.muli %arg1, %c8_i32 : i32
    %c1_i32 = arith.constant 1 : i32
    %1 = arith.subi %0, %c1_i32 : i32
    %c0_i32 = arith.constant 0 : i32
    %2 = arith.maxsi %1, %c0_i32 : i32
    %c0_i32_0 = arith.constant 0 : i32
    %c0_i32_1 = arith.constant 0 : i32
    %c0_i32_2 = arith.constant 0 : i32
    return %arg0, %2, %c0_i32_0, %c0_i32_1 : i32, i32, i32, i32
  }
  func.func @transform_1(%arg0: i32, %arg1: i32) -> (i32, i32, i32, i32) {
    %c0_i32 = arith.constant 0 : i32
    %c0_i32_0 = arith.constant 0 : i32
    %c0_i32_1 = arith.constant 0 : i32
    return %arg0, %arg1, %c0_i32, %c0_i32_0 : i32, i32, i32, i32
  }
  func.func @transform_2(%arg0: i32, %arg1: i32) -> (i32, i32, i32, i32) {
    %c1_i32 = arith.constant 1 : i32
    %0 = arith.addi %arg1, %c1_i32 : i32
    %c8_i32 = arith.constant 8 : i32
    %1 = arith.muli %0, %c8_i32 : i32
    %c7_i32 = arith.constant 7 : i32
    %2 = arith.minsi %1, %c7_i32 : i32
    %c0_i32 = arith.constant 0 : i32
    %c0_i32_0 = arith.constant 0 : i32
    %c0_i32_1 = arith.constant 0 : i32
    return %arg0, %2, %c0_i32, %c0_i32_0 : i32, i32, i32, i32
  }
  func.func @transform_3(%arg0: i32, %arg1: i32) -> (i32, i32, i32) {
    %c0_i32 = arith.constant 0 : i32
    %c0_i32_0 = arith.constant 0 : i32
    %c0_i32_1 = arith.constant 0 : i32
    %c0_i32_2 = arith.constant 0 : i32
    return %c0_i32, %c0_i32_0, %c0_i32_1 : i32, i32, i32
  }
  func.func @transform_4(%arg0: i32, %arg1: i32) -> (i32, i32) {
    %c0_i32 = arith.constant 0 : i32
    %c0_i32_0 = arith.constant 0 : i32
    %c0_i32_1 = arith.constant 0 : i32
    return %c0_i32, %c0_i32_0 : i32, i32
  }
  func.func @transform_5(%arg0: i32, %arg1: i32) -> (i32, i32) {
    %c0_i32 = arith.constant 0 : i32
    %c0_i32_0 = arith.constant 0 : i32
    %c0_i32_1 = arith.constant 0 : i32
    return %c0_i32, %c0_i32_0 : i32, i32
  }
  func.func @transform_6(%arg0: i32, %arg1: i32) -> (i32, i32, i32) {
    %c0_i32 = arith.constant 0 : i32
    %c0_i32_0 = arith.constant 0 : i32
    return %arg0, %arg1, %c0_i32 : i32, i32, i32
  }
  func.func @transform_7(%arg0: i32, %arg1: i32) -> (i32, i32, i32, i32) {
    %c0_i32 = arith.constant 0 : i32
    %c0_i32_0 = arith.constant 0 : i32
    %c0_i32_1 = arith.constant 0 : i32
    return %arg0, %arg1, %c0_i32, %c0_i32_0 : i32, i32, i32, i32
  }
}

module attributes {stable_mosaic.version = 11 : i64} {
  func.func @_bn_relu_nchw_kernel(%arg0: i32, %arg1: i32, %arg2: memref<1x64x128xbf16, #tpu.memory_space<vmem>>, %arg3: memref<1x128xf32, #tpu.memory_space<vmem>>, %arg4: memref<1x128xf32, #tpu.memory_space<vmem>>, %arg5: memref<1x8x64xf32, #tpu.memory_space<vmem>>) attributes {dimension_semantics = [#tpu.dimension_semantics<parallel>, #tpu.dimension_semantics<parallel>], iteration_bounds = array<i64: 2, 1>, scalar_prefetch = 0 : i64, scratch_operands = 0 : i64, tpu.core_type = #tpu.core_type<tc>, window_params = [{transform_indices = @transform_0, window_bounds = array<i64: 1, 64, 128>}, {pipeline_mode = #tpu.pipeline_mode<synchronous>, transform_indices = @transform_1, window_bounds = array<i64: 1, 128>}, {pipeline_mode = #tpu.pipeline_mode<synchronous>, transform_indices = @transform_2, window_bounds = array<i64: 1, 128>}, {transform_indices = @transform_3, window_bounds = array<i64: 1, 8, 64>}]} {
    %c0 = arith.constant 0 : index
    %c0_0 = arith.constant 0 : index
    %c0_1 = arith.constant 0 : index
    %0 = vector.load %arg2[%c0, %c0_0, %c0_1] : memref<1x64x128xbf16, #tpu.memory_space<vmem>>, vector<1x64x128xbf16>
    %1 = vector.shape_cast %0 : vector<1x64x128xbf16> to vector<64x128xbf16>
    %2 = arith.extf %1 : vector<64x128xbf16> to vector<64x128xf32>
    %c0_2 = arith.constant 0 : index
    %c0_3 = arith.constant 0 : index
    %3 = vector.load %arg3[%c0_2, %c0_3] : memref<1x128xf32, #tpu.memory_space<vmem>>, vector<1x128xf32>
    %4 = vector.broadcast %3 : vector<1x128xf32> to vector<64x128xf32>
    %5 = arith.mulf %2, %4 : vector<64x128xf32>
    %c0_4 = arith.constant 0 : index
    %c0_5 = arith.constant 0 : index
    %6 = vector.load %arg4[%c0_4, %c0_5] : memref<1x128xf32, #tpu.memory_space<vmem>>, vector<1x128xf32>
    %7 = vector.broadcast %6 : vector<1x128xf32> to vector<64x128xf32>
    %8 = arith.addf %5, %7 : vector<64x128xf32>
    %cst = arith.constant 0.000000e+00 : f32
    %9 = vector.broadcast %cst : f32 to vector<64x128xf32>
    %10 = arith.maximumf %8, %9 : vector<64x128xf32>
    %11 = tpu.transpose %10, [1, 0] : vector<64x128xf32> -> vector<128x64xf32>
    %12 = vector.extract_strided_slice %11 {offsets = [0, 0], sizes = [8, 64], strides = [1, 1]} : vector<128x64xf32> to vector<8x64xf32>
    %c0_6 = arith.constant 0 : index
    %c0_7 = arith.constant 0 : index
    %c0_8 = arith.constant 0 : index
    %13 = vector.load %arg5[%c0_6, %c0_7, %c0_8] : memref<1x8x64xf32, #tpu.memory_space<vmem>>, vector<1x8x64xf32>
    %14 = vector.shape_cast %13 : vector<1x8x64xf32> to vector<8x64xf32>
    %15 = vector.shape_cast %12 : vector<8x64xf32> to vector<1x8x64xf32>
    tpu.vector_store %arg5[%c0_6, %c0_7, %c0_8], %15 {strides = array<i32>} : memref<1x8x64xf32, #tpu.memory_space<vmem>>, vector<1x8x64xf32>,
    return
  }
  func.func @transform_0(%arg0: i32, %arg1: i32) -> (i32, i32, i32) {
    %c0_i32 = arith.constant 0 : i32
    %c0_i32_0 = arith.constant 0 : i32
    return %arg0, %arg1, %c0_i32 : i32, i32, i32
  }
  func.func @transform_1(%arg0: i32, %arg1: i32) -> (i32, i32) {
    %c0_i32 = arith.constant 0 : i32
    %c0_i32_0 = arith.constant 0 : i32
    %c0_i32_1 = arith.constant 0 : i32
    return %c0_i32, %c0_i32_0 : i32, i32
  }
  func.func @transform_2(%arg0: i32, %arg1: i32) -> (i32, i32) {
    %c0_i32 = arith.constant 0 : i32
    %c0_i32_0 = arith.constant 0 : i32
    %c0_i32_1 = arith.constant 0 : i32
    return %c0_i32, %c0_i32_0 : i32, i32
  }
  func.func @transform_3(%arg0: i32, %arg1: i32) -> (i32, i32, i32) {
    %c0_i32 = arith.constant 0 : i32
    %c0_i32_0 = arith.constant 0 : i32
    return %arg0, %c0_i32, %arg1 : i32, i32, i32
  }
}

</mosaic_0001>

<bundles_post_ra>
// kernel: down_forward.4
= control target key start
LH: loop header
LB: loop body
LE: loop exit
PB: predicated region body
PF: predicated region fallthrough
CT: control target
= control target key end

     0   :  { %s508_s6 = smov 0   ;;  %s510_s7 = smov 0   ;;  %s575_s0 = inlined_call_operand.vmem [shape: f32[2,16,8,8], index: 0, kind: input, shape index: {}]   ;;  %s576_s1 = inlined_call_operand.vmem [shape: bf16[2,8,8,128], index: 1, kind: output, shape index: {}]  }
   0x1   :  { %s512_s8 = smov 0  }
   0x2 LB: > { %s23_s9 = sadd.s32 1, %s491_s7  ;;  %p376_p0 = scmp.ge.s32.totalorder %s495_s8, 1  ;;  %s495_s8 = sphi %s512_s8, %s11_s8   ;;  %s491_s7 = sphi %s510_s7, %s578_s7   ;;  %s487_s6 = sphi %s508_s6, %s577_s6  }
   0x3   : > { %p25_p1 = scmp.ge.s32.totalorder %s23_s9, 2  ;;  %p108_p2 = scmp.lt.s32.totalorder %s495_s8, 3 }
   0x5   : > { %s580_s9 = smov (%p25_p1, %s23_s9), 0  ;;  %p109_p3 = pnand %p376_p0, %p108_p2 }
   0x6   : > { %p137_p4 = scmp.lt.s32.totalorder (!%p109_p3), %s487_s6, 1  ;;  %s497_s14 = smov (!%p109_p3), 124  }
   0x7   : > { %112 = sbr.rel (%p109_p3) target bundleno = 156 (0x9c), region = 24 }
   0xc   : > { %s582_s6 = smov (!%p137_p4, %s487_s6), 1  ;;  %vm260_vm0 = vcmask 31744  }
   0xd   : > { %s383_s10 = sshll.u32 %s582_s6, 7  ;;  %s384_s15 = sshll.u32 %s582_s6, 5 }
   0xe   : > { %s144_s13 = scalar_lea.vmem %s575_s0, %s383_s10  ;;  %s550_s18 = scalar_lea.vmem %s576_s1, %s384_s15 }
   0xf   : > { %v160_v0 = vld [vmem:[%s144_s13 + $0x20] sm:$0xff]  ;;  %v161_v1 = vld [vmem:[%s144_s13 + $0x28] sm:$0xff]  ;;  %v162_v5 = vld [vmem:[%s144_s13 + $0x30] sm:$0xff] }
  0x10   : > { %v156_v2 = vld [vmem:[%s144_s13] sm:$0xff]  ;;  %v443_v3 = vpack.i.bf16 %v161_v1, %v160_v0  ;;  %v157_v4 = vld [vmem:[%s144_s13 + $0x8] sm:$0xff]  ;;  %v163_v6 = vld [vmem:[%s144_s13 + $0x38] sm:$0xff] }
  0x11   : > { %v433_v7 = vpack.i.bf16 %v157_v4, %v156_v2  ;;  %v158_v8 = vld [vmem:[%s144_s13 + $0x10] sm:$0xff]  ;;  %v159_v9 = vld [vmem:[%s144_s13 + $0x18] sm:$0xff]  ;;  %v448_v10 = vpack.i.bf16 %v163_v6, %v162_v5  ;;  %v164_v14 = vld [vmem:[%s144_s13 + $0x40] sm:$0xff] }
  0x12   : > { %444 = vrot.lane.b32.xlu1 %v443_v3, %s497_s14  ;;  %v438_v11 = vpack.i.bf16 %v159_v9, %v158_v8  ;;  %v166_v12 = vld [vmem:[%s144_s13 + $0x50] sm:$0xff]  ;;  %v167_v13 = vld [vmem:[%s144_s13 + $0x58] sm:$0xff]  ;;  %v165_v15 = vld [vmem:[%s144_s13 + $0x48] sm:$0xff] }
  0x13   : > { %434 = vrot.lane.b32.xlu0 %v433_v7, %s497_s14  ;;  %v458_v16 = vpack.i.bf16 %v167_v13, %v166_v12  ;;  %v453_v17 = vpack.i.bf16 %v165_v15, %v164_v14  ;;  %v532_v18 = vld [vmem:[%s144_s13 + $0x70] sm:$0xff]  ;;  %v534_v19 = vld [vmem:[%s144_s13 + $0x78] sm:$0xff]  ;;  %v536_v20 = vld [vmem:[%s144_s13 + $0x60] sm:$0xff] }
  0x14   : > { %v538_v21 = vld [vmem:[%s144_s13 + $0x68] sm:$0xff]  ;;  %v468_v22 = vpack.i.bf16 %v534_v19, %v532_v18 }
  0x15   : > { %v463_v23 = vpack.i.bf16 %v538_v21, %v536_v20 }
  0x16   : > { %449 = vrot.lane.b32.xlu1 %v448_v10, %s497_s14 }
  0x17   : > { %439 = vrot.lane.b32.xlu0 %v438_v11, %s497_s14 }
  0x1a   : > { %459 = vrot.lane.b32.xlu1 %v458_v16, %s497_s14 }
  0x1b   : > { %454 = vrot.lane.b32.xlu0 %v453_v17, %s497_s14 }
  0x1e   : > { %469 = vrot.lane.b32.xlu1 %v468_v22, %s497_s14 }
  0x1f   : > { %464 = vrot.lane.b32.xlu0 %v463_v23, %s497_s14 }
  0x84   : > { %v445_v24 = vpop.permute.xlu1 %444 }
  0x85   : > { %v447_v25 = vunpack.i.h.bf16 %v445_v24  ;;  %v446_v26 = vunpack.i.l.bf16 %v445_v24  ;;  %v435_v27 = vpop.permute.xlu0 %434 }
  0x86   : > { %v437_v28 = vunpack.i.h.bf16 %v435_v27  ;;  %v436_v29 = vunpack.i.l.bf16 %v435_v27 }
  0x87   : > { %v241_v30 = vmax.f32 %v161_v1, %v447_v25  ;;  %v240_v31 = vmax.f32 %v160_v0, %v446_v26 }
  0x88   : > { %v237_v32 = vmax.f32 %v157_v4, %v437_v28  ;;  %v236_v33 = vmax.f32 %v156_v2, %v436_v29  ;;  %v450_v34 = vpop.permute.xlu1 %449 }
  0x89   : > { %v452_v35 = vunpack.i.h.bf16 %v450_v34  ;;  %v451_v36 = vunpack.i.l.bf16 %v450_v34  ;;  %v440_v37 = vpop.permute.xlu0 %439  ;;  %v254_v38 = vmax.f32 %v240_v31, %v241_v30 }
  0x8a   : > { %v442_v39 = vunpack.i.h.bf16 %v440_v37  ;;  %v441_v40 = vunpack.i.l.bf16 %v440_v37  ;;  %v252_v41 = vmax.f32 %v236_v33, %v237_v32 }
  0x8b   : > { %v243_v42 = vmax.f32 %v163_v6, %v452_v35  ;;  %v242_v43 = vmax.f32 %v162_v5, %v451_v36  ;;  %v263_v51 = vsel %vm260_vm0, %v254_v38, 0.0 }
  0x8c   : > { %v239_v44 = vmax.f32 %v159_v9, %v442_v39  ;;  %v238_v45 = vmax.f32 %v158_v8, %v441_v40  ;;  %v460_v46 = vpop.permute.xlu1 %459  ;;  %v261_v55 = vsel %vm260_vm0, %v252_v41, 0.0 }
  0x8d   : > { %v255_v47 = vmax.f32 %v242_v43, %v243_v42  ;;  %v462_v48 = vunpack.i.h.bf16 %v460_v46  ;;  %v461_v49 = vunpack.i.l.bf16 %v460_v46  ;;  %v455_v50 = vpop.permute.xlu0 %454 }
  0x8e   : > { %v253_v52 = vmax.f32 %v238_v45, %v239_v44  ;;  %v457_v53 = vunpack.i.h.bf16 %v455_v50  ;;  %v456_v54 = vunpack.i.l.bf16 %v455_v50 }
  0x8f   : > { %v264_v56 = vsel %vm260_vm0, %v255_v47, 0.0  ;;  %v247_v57 = vmax.f32 %v167_v13, %v462_v48  ;;  %v246_v58 = vmax.f32 %v166_v12, %v461_v49 }
  0x90   : > { %v393_v59 = vpack.c.bf16 %v264_v56, %v263_v51  ;;  %v262_v60 = vsel %vm260_vm0, %v253_v52, 0.0  ;;  %v245_v61 = vmax.f32 %v165_v15, %v457_v53  ;;  %v244_v62 = vmax.f32 %v164_v14, %v456_v54  ;;  %v470_v63 = vpop.permute.xlu1 %469 }
  0x91   : > { %v388_v0 = vpack.c.bf16 %v262_v60, %v261_v55  ;;  %v257_v1 = vmax.f32 %v246_v58, %v247_v57  ;;  %v472_v2 = vunpack.i.h.bf16 %v470_v63  ;;  %v471_v3 = vunpack.i.l.bf16 %v470_v63  ;;  %v465_v4 = vpop.permute.xlu0 %464 }
  0x92   : > { %405 = vst [vmem:[%s550_s18 + $0x8] sm:$0xff] %v393_v59   ;;  %v256_v5 = vmax.f32 %v244_v62, %v245_v61  ;;  %v467_v6 = vunpack.i.h.bf16 %v465_v4  ;;  %v466_v7 = vunpack.i.l.bf16 %v465_v4 }
  0x93   : > { %389 = vst [vmem:[%s550_s18] sm:$0xff] %v388_v0   ;;  %v266_v8 = vsel %vm260_vm0, %v257_v1, 0.0  ;;  %v251_v9 = vmax.f32 %v534_v19, %v472_v2  ;;  %v250_v10 = vmax.f32 %v532_v18, %v471_v3 }
  0x94   : > { %v265_v11 = vsel %vm260_vm0, %v256_v5, 0.0  ;;  %v249_v12 = vmax.f32 %v538_v21, %v467_v6  ;;  %v248_v13 = vmax.f32 %v536_v20, %v466_v7 }
  0x95   : > { %v398_v14 = vpack.c.bf16 %v266_v8, %v265_v11  ;;  %v259_v15 = vmax.f32 %v250_v10, %v251_v9 }
  0x96   : > { %v258_v16 = vmax.f32 %v248_v13, %v249_v12 }
  0x97   : > { %406 = vst [vmem:[%s550_s18 + $0x10] sm:$0xff] %v398_v14   ;;  %v268_v17 = vsel %vm260_vm0, %v259_v15, 0.0 }
  0x98   : > { %v267_v22 = vsel %vm260_vm0, %v258_v16, 0.0 }
  0x99   : > { %v403_v23 = vpack.c.bf16 %v268_v17, %v267_v22 }
  0x9b   : > { %407 = vst [vmem:[%s550_s18 + $0x18] sm:$0xff] %v403_v23  }
  0x9c PF: > { %s11_s8 = sadd.s32 1, %s495_s8   ;;  %s577_s6 = smov %s491_s7 }
  0x9d   : > { %p8_p5 = scmp.ge.s32.totalorder %s11_s8, 4   ;;  %s578_s7 = smov %s580_s9 }
  0x9f   :  { %10 = sbr.rel (!%p8_p5) target bundleno = 2 (0x2), region = 54 }

// kernel: down_forward.7
= control target key start
LH: loop header
LB: loop body
LE: loop exit
PB: predicated region body
PF: predicated region fallthrough
CT: control target
= control target key end

     0   :  { %s471_s12 = smov 0   ;;  %s473_s13 = smov 0   ;;  %s514_s0 = inlined_call_operand.vmem [shape: bf16[2,64,128], index: 0, kind: input, shape index: {}]   ;;  %s515_s1 = inlined_call_operand.vmem [shape: f32[1,128], index: 1, kind: input, shape index: {}]   ;;  %s516_s2 = inlined_call_operand.vmem [shape: f32[1,128], index: 2, kind: input, shape index: {}]   ;;  %s517_s3 = inlined_call_operand.vmem [shape: f32[2,8,64], index: 3, kind: output, shape index: {}]  }
   0x1   :  { %s475_s14 = smov 0  }
   0x2 LB: > { %s25_s15 = sadd.s32 1, %s445_s13  ;;  %p374_p0 = scmp.ge.s32.totalorder %s449_s14, 1  ;;  %s449_s14 = sphi %s475_s14, %s13_s14   ;;  %s445_s13 = sphi %s473_s13, %s519_s13   ;;  %s441_s12 = sphi %s471_s12, %s518_s12  }
   0x3   : > { %p27_p1 = scmp.ge.s32.totalorder %s25_s15, 2  ;;  %p158_p2 = scmp.lt.s32.totalorder %s449_s14, 3 }
   0x5   : > { %s521_s15 = smov (%p27_p1, %s25_s15), 0  ;;  %p159_p3 = pnand %p374_p0, %p158_p2 }
   0x6   : > { %p189_p4 = scmp.lt.s32.totalorder (!%p159_p3), %s441_s12, 1 }
   0x7   : > { %162 = sbr.rel (%p159_p3) target bundleno = 150 (0x96), region = 32 }
   0xc   : > { %s523_s12 = smov (!%p189_p4, %s441_s12), 1  ;;  %v378_v1 = vld [vmem:[%s515_s1] ss:$0 sm:$0xff]  ;;  %vm291_vm0 = vcmask 523264  }
   0xd   : > { %s382_s16 = sshll.u32 %s523_s12, 5  ;;  %v379_v6 = vld [vmem:[%s516_s2] ss:$0 sm:$0xff]  ;;  %s377_s24 = sshll.u32 %s523_s12, 3 }
   0xe   : > { %s196_s19 = scalar_lea.vmem %s514_s0, %s382_s16  ;;  %s204_s27 = scalar_lea.vmem %s517_s3, %s377_s24 }
   0xf   : > { %v384_v0 = vld [vmem:[%s196_s19] sm:$0xff]   ;;  %v399_v2 = vld [vmem:[%s196_s19 + $0x8] sm:$0xff]   ;;  %v400_v13 = vld [vmem:[%s196_s19 + $0x10] sm:$0xff]  }
  0x10   : > { %v385_v3 = vunpack.c.l.bf16 %v384_v0  ;;  %v386_v4 = vunpack.c.h.bf16 %v384_v0  ;;  %v389_v5 = vunpack.c.l.bf16 %v399_v2  ;;  %v390_v12 = vunpack.c.h.bf16 %v399_v2  ;;  %v401_v23 = vld [vmem:[%s196_s19 + $0x18] sm:$0xff]  }
  0x11   : > { %v393_v18 = vunpack.c.l.bf16 %v400_v13  ;;  %v394_v22 = vunpack.c.h.bf16 %v400_v13  ;;  %v397_v27 = vunpack.c.l.bf16 %v401_v23  ;;  %v398_v31 = vunpack.c.h.bf16 %v401_v23 }
  0x12   : > { %v228_v7 = vmul.f32 %v385_v3, %v378_v1  ;;  %v229_v8 = vmul.f32 %v386_v4, %v378_v1  ;;  %v230_v11 = vmul.f32 %v389_v5, %v378_v1  ;;  %v231_v17 = vmul.f32 %v390_v12, %v378_v1 }
  0x13   : > { %v232_v21 = vmul.f32 %v393_v18, %v378_v1  ;;  %v233_v26 = vmul.f32 %v394_v22, %v378_v1  ;;  %v234_v30 = vmul.f32 %v397_v27, %v378_v1  ;;  %v235_v34 = vmul.f32 %v398_v31, %v378_v1 }
  0x14   : > { %v243_v9 = vadd.f32 %v379_v6, %v228_v7  ;;  %v244_v10 = vadd.f32 %v379_v6, %v229_v8  ;;  %v245_v16 = vadd.f32 %v379_v6, %v230_v11  ;;  %v246_v20 = vadd.f32 %v379_v6, %v231_v17 }
  0x15   : > { %v247_v25 = vadd.f32 %v379_v6, %v232_v21  ;;  %v248_v29 = vadd.f32 %v379_v6, %v233_v26  ;;  %v249_v33 = vadd.f32 %v379_v6, %v234_v30  ;;  %v250_v36 = vadd.f32 %v379_v6, %v235_v34 }
  0x16   : > { %v251_v14 = vmax.f32 %v243_v9, 0.0  ;;  %v252_v15 = vmax.f32 %v244_v10, 0.0  ;;  %v253_v19 = vmax.f32 %v245_v16, 0.0  ;;  %v254_v24 = vmax.f32 %v246_v20, 0.0 }
  0x17   : > { %v255_v28 = vmax.f32 %v247_v25, 0.0  ;;  %v256_v32 = vmax.f32 %v248_v29, 0.0  ;;  %v257_v35 = vmax.f32 %v249_v33, 0.0  ;;  %v258_v37 = vmax.f32 %v250_v36, 0.0 }
  0x18   : > { %259 = vxpose.xlu0.b32.start [1/8] (short) (narrow) %v251_v14, 8 }
  0x1c   : > { %260 = vxpose.xlu0.b32.cont [2/8] (short) (narrow) %v252_v15, 8 }
  0x20   : > { %261 = vxpose.xlu0.b32.cont [3/8] (short) (narrow) %v253_v19, 8 }
  0x24   : > { %262 = vxpose.xlu0.b32.cont [4/8] (short) (narrow) %v254_v24, 8 }
  0x28   : > { %263 = vxpose.xlu0.b32.cont [5/8] (short) (narrow) %v255_v28, 8 }
  0x2c   : > { %264 = vxpose.xlu0.b32.cont [6/8] (short) (narrow) %v256_v32, 8 }
  0x30   : > { %265 = vxpose.xlu0.b32.cont [7/8] (short) (narrow) %v257_v35, 8 }
  0x34   : > { %266 = vxpose.xlu0.b32.end [8/8] (short) (narrow) %v258_v37, 8 }
  0x94   : > { %v275_v38 = vpop.trf.xlu0 }
  0x95   : > { %292 = vst.msk [vmem:[%s204_s27] sm:$0xff] %vm291_vm0, %v275_v38 }
  0x96 PF: > { %s13_s14 = sadd.s32 1, %s449_s14   ;;  %s518_s12 = smov %s445_s13 }
  0x97   : > { %p10_p5 = scmp.ge.s32.totalorder %s13_s14, 4   ;;  %s519_s13 = smov %s521_s15 }
  0x99   :  { %12 = sbr.rel (!%p10_p5) target bundleno = 2 (0x2), region = 62 }

// kernel: down_forward.5
= control target key start
LH: loop header
LB: loop body
LE: loop exit
PB: predicated region body
PF: predicated region fallthrough
CT: control target
= control target key end

     0   :  { %s3139_s24 = smov 0   ;;  %s3141_s25 = smov 0   ;;  %s3851_s0 = inlined_call_operand.vmem [shape: bf16[2,8,8,128], index: 0, kind: input, shape index: {}, may-alias: {0,1,2}]   ;;  %s3852_s1 = inlined_call_operand.vmem [shape: bf16[2,8,8,128], index: 1, kind: input, shape index: {}, may-alias: {0,1,2}]   ;;  %s3853_s2 = inlined_call_operand.vmem [shape: bf16[2,8,8,128], index: 2, kind: input, shape index: {}, may-alias: {0,1,2}]   ;;  %s3854_s3 = inlined_call_operand.vmem [shape: bf16[9,128,128], index: 3, kind: input, shape index: {}]   ;;  %s3855_s4 = inlined_call_operand.vmem [shape: f32[1,128], index: 4, kind: input, shape index: {}]   ;;  %s3856_s5 = inlined_call_operand.vmem [shape: f32[1,128], index: 5, kind: input, shape index: {}]   ;;  %s3857_s6 = inlined_call_operand.vmem [shape: bf16[2,64,128], index: 6, kind: output, shape index: {0}]   ;;  %s3858_s7 = inlined_call_operand.vmem [shape: f32[2,1,2,128], index: 7, kind: output, shape index: {1}]  }
   0x1   :  { %s3143_s26 = smov 0  }
   0x2 LB: > { %s30_s4 = sadd.s32 1, %s3093_s25  ;;  %p2232_p0 = scmp.ge.s32.totalorder %s3097_s26, 1  ;;  %s3097_s26 = sphi %s3143_s26, %s18_s26   ;;  %s3093_s25 = sphi %s3141_s25, %s3896_s25   ;;  %s3089_s24 = sphi %s3139_s24, %s3895_s24  }
   0x3   : > { %p32_p1 = scmp.ge.s32.totalorder %s30_s4, 2  ;;  %p325_p2 = scmp.lt.s32.totalorder %s3097_s26, 3 }
   0x5   : > { %s3898_s4 = smov (%p32_p1, %s30_s4), 0  ;;  %p326_p3 = pnand %p2232_p0, %p325_p2 }
   0x7   : > { %329 = sbr.rel (%p326_p3) target bundleno = 404 (0x194), region = 44 }
   0xc   : > { %v2996_v0 = vld [vmem:[%s3854_s3 + $0x78] sm:$0xff]   ;;  %p400_p4 = scmp.lt.s32.totalorder %s3089_s24, 1  ;;  %v2998_v2 = vld [vmem:[%s3854_s3 + $0x70] sm:$0xff]   ;;  %v486_v4 = vlaneseq  ;;  %v3000_v5 = vld [vmem:[%s3854_s3 + $0x68] sm:$0xff]  }
   0xd   : > { %v2997_v1 = vld [vmem:[%s3854_s3 + $0x38] sm:$0xff]   ;;  %2740 = vmatprep.subr.bf16.mxu0 %v2996_v0  ;;  %v2999_v3 = vld [vmem:[%s3854_s3 + $0x30] sm:$0xff]   ;;  %v3001_v6 = vld [vmem:[%s3854_s3 + $0x28] sm:$0xff]  }
   0xe   : > { %2764 = vmatprep.subr.bf16.mxu1 %v2997_v1  ;;  %2741 = vmatpush3.bf16.msra.mxu0 %v2996_v0  ;;  %s3900_s24 = smov (!%p400_p4, %s3089_s24), 1  ;;  %v3177_v7 = vshrl.u32 %v486_v4, 7  ;;  %v3002_v8 = vld [vmem:[%s3854_s3 + $0x60] sm:$0xff]   ;;  %v3004_v11 = vld [vmem:[%s3854_s3 + $0x58] sm:$0xff]   ;;  %v3006_v13 = vld [vmem:[%s3854_s3 + $0x50] sm:$0xff]  }
   0xf   : > { %2765 = vmatpush3.bf16.msra.mxu1 %v2997_v1  ;;  %2742 = vmatprep.subr.bf16.mxu0 %v2998_v2  ;;  %s3183_s17 = sshll.u32 %s3900_s24, 5  ;;  %v3003_v9 = vld [vmem:[%s3854_s3 + $0x20] sm:$0xff]   ;;  %v3005_v12 = vld [vmem:[%s3854_s3 + $0x18] sm:$0xff]   ;;  %v3007_v18 = vld [vmem:[%s3854_s3 + $0x10] sm:$0xff]  }
  0x10   : > { %2766 = vmatprep.subr.bf16.mxu1 %v2999_v3  ;;  %s2582_s20 = sadd.s32 28, %s3183_s17  ;;  %v3190_v10 = vadd.s32 8, %v3177_v7  ;;  %s407_s29 = scalar_lea.vmem %s3851_s0, %s3183_s17  ;;  %v499_v23 = vand.u32 7, %v3177_v7  ;;  %v3236_v28 = vadd.s32 16, %v3177_v7  ;;  %v3008_v29 = vld [vmem:[%s3854_s3 + $0x48] sm:$0xff]   ;;  %vm600_vm0 = vcmp.lt.s32.totalorder %v3177_v7, 1 }
  0x11   : > { %s3206_s9 = scalar_lea.vmem %s3852_s1, %s3183_s17  ;;  %s433_s12 = scalar_lea.vmem %s3853_s2, %s2582_s20  ;;  %v456_v15 = vld [vmem:[%s407_s29] sm:$0xf]  ;;  %v3009_v33 = vld [vmem:[%s3854_s3 + $0x8] sm:$0xff]   ;;  %v3260_v36 = vadd.s32 24, %v3177_v7  ;;  %v3289_v46 = vadd.s32 32, %v3177_v7  ;;  %v3294_v49 = vadd.s32 40, %v3177_v7 }
  0x12   : > { %2743 = vmatpush3.bf16.msra.mxu0 %v2998_v2  ;;  %v506_v14 = vand.u32 7, %v3190_v10  ;;  %v3216_v16 = vld [vmem:[%s3206_s9] sm:$0xf]  ;;  %v3219_v17 = vld [vmem:[%s3206_s9 + $0x4] sm:$0xf]  ;;  %v457_v19 = vunpack.c.l.bf16 %v456_v15  ;;  %vm2617_vm2 = vcmp.ne.s32.totalorder %v499_v23, 0  ;;  %s446_s21 = scalar_lea.vmem %s3857_s6, %s3183_s17 }
  0x13   : > { %2767 = vmatpush3.bf16.msra.mxu1 %v2999_v3  ;;  %2744 = vmatprep.subr.bf16.mxu0 %v3000_v5  ;;  %v3225_v20 = vunpack.c.l.bf16 %v3216_v16  ;;  %v3228_v21 = vld [vmem:[%s3206_s9 + $0x8] sm:$0xf]  ;;  %v479_v22 = vld [vmem:[%s433_s12] sm:$0xf]  ;;  %v472_v26 = vunpack.c.l.bf16 %v3219_v17  ;;  %v513_v42 = vand.u32 7, %v3236_v28  ;;  %v520_v48 = vand.u32 7, %v3260_v36 }
  0x14   : > { %2768 = vmatprep.subr.bf16.mxu1 %v3001_v6  ;;  %v480_v24 = vunpack.c.l.bf16 %v479_v22  ;;  %v3231_v25 = vmul.f32 0.0, %v457_v19  ;;  %v473_v30 = vunpack.c.l.bf16 %v3228_v21  ;;  %vm3247_vm1 = vcmp.ne.s32.totalorder %v506_v14, 0  ;;  %v3010_v37 = vld [vmem:[%s3854_s3 + $0x40] sm:$0xff]   ;;  %v3013_v51 = vld [vmem:[%s3854_s3 + $0xb8] sm:$0xff]   ;;  %v3015_v59 = vld [vmem:[%s3854_s3 + $0xb0] sm:$0xff]   ;;  %s2241_s17 = sshll.u32 %s3900_s24, 1 }
  0x15   : > { %v592_v27 = vrot.slane %v3225_v20, 7  ;;  %v3011_v39 = vld [vmem:[%s3854_s3] sm:$0xff]   ;;  %v593_v40 = vrot.slane %v472_v26, 7  ;;  %vm3284_vm3 = vmpackc.low %vm3247_vm1, %vm2617_vm2  ;;  %vm3300_vm4 = vcmp.ne.s32.totalorder %v513_v42, 0  ;;  %v527_v54 = vand.u32 7, %v3289_v46  ;;  %v3014_v57 = vld [vmem:[%s3854_s3 + $0xf8] sm:$0xff]   ;;  %s454_s5 = scalar_lea.vmem %s3858_s7, %s2241_s17 }
  0x16   : > { %2745 = vmatpush3.bf16.msra.mxu0 %v3000_v5  ;;  %v3242_v31 = vmul.f32 0.0, %v480_v24  ;;  %v661_v34 = vpack.c.bf16 %v3225_v20, %v3231_v25  ;;  %v591_v35 = vrot.slane %v3231_v25, 7  ;;  %v594_v43 = vrot.slane %v473_v30, 7  ;;  %v3334_v60 = vld [vmem:[%s3206_s9 + $0xc] sm:$0xf]  ;;  %v3032_v36 = vld [vmem:[%s3854_s3 + $0x138] sm:$0xff]  }
  0x17   : > { %2769 = vmatpush3.bf16.msra.mxu1 %v3001_v6  ;;  %2746 = vmatprep.subr.bf16.mxu0 %v3002_v8  ;;  %v3313_v53 = vsel %vm600_vm0, %v592_v27, %v593_v40  ;;  %v534_v55 = vand.u32 7, %v3294_v49  ;;  %vm3319_vm5 = vcmp.ne.s32.totalorder %v520_v48, 0  ;;  %v3328_v58 = vcombine.low %v3219_v17, %v3228_v21  ;;  %v3337_v61 = vld [vmem:[%s3206_s9 + $0x10] sm:$0xf]  ;;  %v3354_v4 = vld [vmem:[%s3206_s9 + $0x14] sm:$0xf] }
  0x18   : > { %2770 = vmatprep.subr.bf16.mxu1 %v3003_v9  ;;  %v599_v38 = vrot.slane %v3242_v31, 7  ;;  %2756 = vmatprep.mubr.bf16.mxu0 %v661_v34  ;;  %v3273_v41 = vsel %vm600_vm0, %v591_v35, %v592_v27  ;;  %v3309_v52 = vsel %vm600_vm0, %v593_v40, %v594_v43  ;;  %v3340_v62 = vadd.s32 48, %v3177_v7  ;;  %v3357_v5 = vld [vmem:[%s3206_s9 + $0x18] sm:$0xf]  ;;  %vm3363_vm6 = vmpackc.low %vm3319_vm5, %vm3300_vm4  ;;  %v3063_v45 = vld [vmem:[%s3854_s3 + $0x188] sm:$0xff]  }
  0x19   : > { %v3343_v63 = vadd.s32 56, %v3177_v7  ;;  %v3347_v0 = vpack.c.bf16 %v3309_v52, %v3313_v53  ;;  %v474_v1 = vunpack.c.l.bf16 %v3334_v60  ;;  %v475_v2 = vunpack.c.l.bf16 %v3337_v61  ;;  %v3070_v6 = vld [vmem:[%s3854_s3 + $0x220] sm:$0xff]   ;;  %v3073_v34 = vld [vmem:[%s3854_s3 + $0x208] sm:$0xff]  }
  0x1a   : > { %2747 = vmatpush3.bf16.msra.mxu0 %v3002_v8  ;;  %v608_v44 = vsel %vm600_vm0, %v599_v38, %v591_v35  ;;  %v2386_v3 = vcombine.low %v3228_v21, %v3334_v60  ;;  %vm3369_vm7 = vcmp.ne.s32.totalorder %v534_v55, 0  ;;  %vm3375_vm8 = vcmp.ne.s32.totalorder %v527_v54, 0  ;;  %v3492_v8 = vld [vmem:[%s3206_s9 + $0x1c] sm:$0xf]  ;;  %v3056_v21 = vld [vmem:[%s3854_s3 + $0x1e8] sm:$0xff]  }
  0x1b   : > { %2771 = vmatpush3.bf16.msra.mxu1 %v3003_v9  ;;  %2748 = vmatprep.subr.bf16.mxu0 %v3004_v11  ;;  %v2280_v47 = vpack.c.bf16 %v3273_v41, %v608_v44  ;;  %v595_v15 = vrot.slane %v474_v1, 7  ;;  %v3390_v19 = vcombine.low %v3334_v60, %v3337_v61  ;;  %v541_v22 = vand.u32 7, %v3340_v62  ;;  %vm3421_vm10 = vmpackc.low %vm3369_vm7, %vm3375_vm8  ;;  %v3019_v44 = vld [vmem:[%s3854_s3 + $0xa0] sm:$0xff]  }
  0x1c   : > { %2772 = vmatprep.subr.bf16.mxu1 %v3005_v12  ;;  %v908_v24 = vrot.slane %v3231_v25, 1  ;;  %v909_v27 = vrot.slane %v3225_v20, 1  ;;  %vm917_vm9 = vcmp.lt.s32.totalorder %v3177_v7, 7  ;;  %v548_v35 = vand.u32 7, %v3343_v63  ;;  %v3037_v63 = vld [vmem:[%s3854_s3 + $0x168] sm:$0xff]  }
  0x1d   : > { %2780 = vmatprep.mubr.msk.bf16.mxu1 %vm3284_vm3, %v2280_v47  ;;  %v3415_v25 = vsel %vm600_vm0, %v594_v43, %v595_v15  ;;  %vm2623_vm12 = vcmp.ne.s32.totalorder %v541_v22, 0  ;;  %v3455_v47 = vcombine.low %v3354_v4, %v3357_v5  ;;  %v910_v50 = vrot.slane %v472_v26, 1 }
  0x1e   : > { %2749 = vmatpush3.bf16.msra.mxu0 %v3004_v11  ;;  %v476_v11 = vunpack.c.l.bf16 %v3354_v4  ;;  %vm2622_vm11 = vcmp.ne.s32.totalorder %v548_v35, 0  ;;  %vm2624_vm13 = vcmp.ne.s32.totalorder %v506_v14, 7  ;;  %vm2625_vm14 = vcmp.ne.s32.totalorder %v499_v23, 7 }
  0x1f   : > { %2773 = vmatpush3.bf16.msra.mxu1 %v3005_v12  ;;  %2750 = vmatprep.subr.bf16.mxu0 %v3006_v13  ;;  %v477_v12 = vunpack.c.l.bf16 %v3357_v5  ;;  %vm3469_vm15 = vmpackc.low %vm2622_vm11, %vm2623_vm12  ;;  %v3475_v26 = vsel %vm917_vm9, %v909_v27, %v910_v50  ;;  %v2368_v14 = vpack.c.bf16 %v3313_v53, %v3273_v41  ;;  %v1394_v9 = vrot.slane %v3242_v31, 1  ;;  %v3021_v41 = vld [vmem:[%s3854_s3 + $0x98] sm:$0xff]  }
  0x20   : > { %2774 = vmatprep.subr.bf16.mxu1 %v3007_v18  ;;  %v597_v32 = vrot.slane %v476_v11, 7  ;;  %vm3484_vm1 = vmpackc.low %vm2624_vm13, %vm2625_vm14  ;;  %v3499_v53 = vunpack.c.l.bf16 %v3492_v8  ;;  %vm3556_vm2 = vcmp.ne.s32.totalorder %v520_v48, 7  ;;  %vm2627_vm4 = vcmp.ne.s32.totalorder %v513_v42, 7  ;;  %v3033_v48 = vld [vmem:[%s3854_s3 + $0x178] sm:$0xff]  }
  0x21   : > { %vm3591_vm5 = vmpackc.low %vm3556_vm2, %vm2627_vm4  ;;  %vm2628_vm7 = vcmp.ne.s32.totalorder %v534_v55, 7  ;;  %vm2629_vm8 = vcmp.ne.s32.totalorder %v527_v54, 7  ;;  %vm2630_vm12 = vcmp.ne.s32.totalorder %v548_v35, 7  ;;  %vm2631_vm13 = vcmp.ne.s32.totalorder %v541_v22, 7  ;;  %v3039_v35 = vld [vmem:[%s3854_s3 + $0x160] sm:$0xff]  }
  0x22   : > { %2751 = vmatpush3.bf16.msra.mxu0 %v3006_v13  ;;  %v3016_v13 = vld [vmem:[%s3854_s3 + $0xf0] sm:$0xff]   ;;  %vm3612_vm11 = vmpackc.low %vm2628_vm7, %vm2629_vm8  ;;  %v2388_v60 = vcombine.low %v3357_v5, %v3492_v8  ;;  %v3059_v5 = vld [vmem:[%s3854_s3 + $0x198] sm:$0xff]  }
  0x23   : > { %2775 = vmatpush3.bf16.msra.mxu1 %v3007_v18  ;;  %2752 = vmatprep.subr.bf16.mxu0 %v3008_v29  ;;  %v596_v18 = vrot.slane %v475_v2, 7  ;;  %v3060_v8 = vld [vmem:[%s3854_s3 + $0x1d8] sm:$0xff]  }
  0x24   : > { %2776 = vmatprep.subr.bf16.mxu1 %v3009_v33 }
  0x25   : > { %v3411_v20 = vsel %vm600_vm0, %v595_v15, %v596_v18  ;;  %v3441_v43 = vsel %vm600_vm0, %v596_v18, %v597_v32  ;;  %v3508_v15 = vsel %vm917_vm9, %v1394_v9, %v908_v24  ;;  %v916_v18 = vrot.slane %v3499_v53, 1 }
  0x26   : > { %2753 = vmatpush3.bf16.msra.mxu0 %v3008_v29  ;;  %v3017_v29 = vld [vmem:[%s3854_s3 + $0xa8] sm:$0xff]   ;;  %v2378_v49 = vpack.c.bf16 %v3441_v43, %v3411_v20 }
  0x27   : > { %2777 = vmatpush3.bf16.msra.mxu1 %v3009_v33  ;;  %2754 = vmatprep.subr.bf16.mxu0 %v3010_v37  ;;  %v3403_v33 = vrot.slane %v477_v12, 7 }
  0x28   : > { %2778 = vmatprep.subr.bf16.mxu1 %v3011_v39 }
  0x29   : > { %v3436_v40 = vsel %vm600_vm0, %v597_v32, %v3403_v33  ;;  %v1100_v32 = vrot.slane %v3499_v53, 7 }
  0x2a   : > { %2755 = vmatpush3.bf16.msra.mxu0 %v3010_v37  ;;  %v3018_v37 = vld [vmem:[%s3854_s3 + $0xe8] sm:$0xff]   ;;  %v3463_v56 = vpack.c.bf16 %v3436_v40, %v3441_v43 }
  0x2b   : > { %2779 = vmatpush3.bf16.msra.mxu1 %v3011_v39  ;;  %2788 = vmatprep.subr.bf16.mxu0 %v3013_v51  ;;  %v3431_v39 = vpack.c.bf16 %v3411_v20, %v3415_v25  ;;  %v3036_v20 = vld [vmem:[%s3854_s3 + $0x128] sm:$0xff]   ;;  %v3638_v43 = vsel %vm600_vm0, %v3403_v33, %v1100_v32  ;;  %v3038_v33 = vld [vmem:[%s3854_s3 + $0x120] sm:$0xff]  }
  0x2c   : > { %2812 = vmatprep.subr.bf16.mxu1 %v3014_v57  ;;  %v2383_v22 = vpack.c.bf16 %v3638_v43, %v3436_v40 }
  0x2d   : > { %2757 = vmatmul.mubr.bf16.vlgmr.msra.gmra.mxu0 %v3328_v58 }
  0x2e   : > { %2781 = vmatmul.mubr.msk.bf16.vlgmr.msra.gmra.mxu1 %vm3363_vm6, %v3347_v0  ;;  %2789 = vmatpush3.bf16.msra.mxu0 %v3013_v51  ;;  %v925_v51 = vsel %vm917_vm9, %v908_v24, %v909_v27  ;;  %v1697_v27 = vpack.c.bf16 %v3242_v31, %v3499_v53  ;;  %v3521_v24 = vsel %vm917_vm9, %v916_v18, %v1394_v9  ;;  %v912_v9 = vrot.slane %v474_v1, 1  ;;  %v3051_v1 = vld [vmem:[%s3854_s3 + $0x1b0] sm:$0xff]  }
  0x2f   : > { %2813 = vmatpush3.bf16.msra.mxu1 %v3014_v57  ;;  %2790 = vmatprep.subr.bf16.mxu0 %v3015_v59  ;;  %v2324_v10 = vpack.c.bf16 %v3475_v26, %v925_v51  ;;  %v3532_v51 = vsel %vm600_vm0, %v1100_v32, %v599_v38  ;;  %v3030_v38 = vld [vmem:[%s3854_s3 + $0x80] sm:$0xff]   ;;  %v3040_v32 = vld [vmem:[%s3854_s3 + $0x118] sm:$0xff]   ;;  %v3072_v31 = vld [vmem:[%s3854_s3 + $0x210] sm:$0xff]   ;;  %vm2061_vm0 = vcmask 1040384  }
  0x30   : > { %2814 = vmatprep.subr.bf16.mxu1 %v3016_v13  ;;  %2760 = vmatprep.mubr.bf16.mxu0 %v3390_v19 }
  0x31   : > { %2784 = vmatprep.mubr.msk.bf16.mxu1 %vm3421_vm10, %v3431_v39 }
  0x32   : > { %2791 = vmatpush3.bf16.msra.mxu0 %v3015_v59  ;;  %v3020_v59 = vld [vmem:[%s3854_s3 + $0xe0] sm:$0xff]  }
  0x33   : > { %2815 = vmatpush3.bf16.msra.mxu1 %v3016_v13  ;;  %2792 = vmatprep.subr.bf16.mxu0 %v3017_v29  ;;  %v3022_v13 = vld [vmem:[%s3854_s3 + $0xd8] sm:$0xff]  }
  0x34   : > { %2816 = vmatprep.subr.bf16.mxu1 %v3018_v37 }
  0x35   : > { %2761 = vmatmul.mubr.bf16.gmra.mxu0 %v3455_v47 }
  0x36   : > { %2793 = vmatpush3.bf16.msra.mxu0 %v3017_v29  ;;  %2785 = vmatmul.mubr.msk.bf16.gmra.mxu1 %vm3469_vm15, %v3463_v56  ;;  %v3026_v29 = vld [vmem:[%s3854_s3 + $0x90] sm:$0xff]  }
  0x37   : > { %2817 = vmatpush3.bf16.msra.mxu1 %v3018_v37  ;;  %2794 = vmatprep.subr.bf16.mxu0 %v3019_v44  ;;  %v3027_v37 = vld [vmem:[%s3854_s3 + $0xd0] sm:$0xff]  }
  0x38   : > { %2818 = vmatprep.subr.bf16.mxu1 %v3020_v59  ;;  %2804 = vmatprep.mubr.msk.bf16.mxu0 %vm3484_vm1, %v2324_v10  ;;  %v3029_v10 = vld [vmem:[%s3854_s3 + $0xc8] sm:$0xff]  }
  0x39   : > { %2828 = vmatprep.mubr.msk.bf16.mxu1 %vm3284_vm3, %v2368_v14  ;;  %v911_v14 = vrot.slane %v473_v30, 1  ;;  %v914_v30 = vrot.slane %v476_v11, 1 }
  0x3a   : > { %2795 = vmatpush3.bf16.msra.mxu0 %v3019_v44  ;;  %v2567_v44 = vpack.c.bf16 %v3508_v15, %v3521_v24 }
  0x3b   : > { %2819 = vmatpush3.bf16.msra.mxu1 %v3020_v59  ;;  %2796 = vmatprep.subr.bf16.mxu0 %v3021_v41  ;;  %v3028_v59 = vld [vmem:[%s3854_s3 + $0x88] sm:$0xff]  }
  0x3c   : > { %2820 = vmatprep.subr.bf16.mxu1 %v3022_v13 }
  0x3e   : > { %2797 = vmatpush3.bf16.msra.mxu0 %v3021_v41  ;;  %v3031_v41 = vld [vmem:[%s3854_s3 + $0xc0] sm:$0xff]  }
  0x3f   : > { %2821 = vmatpush3.bf16.msra.mxu1 %v3022_v13  ;;  %2798 = vmatprep.subr.bf16.mxu0 %v3026_v29  ;;  %v913_v13 = vrot.slane %v475_v2, 1  ;;  %v915_v2 = vrot.slane %v477_v12, 1  ;;  %v3034_v12 = vld [vmem:[%s3854_s3 + $0x130] sm:$0xff]  }
  0x40   : > { %2822 = vmatprep.subr.bf16.mxu1 %v3027_v37 }
  0x41   : > { %v3581_v28 = vsel %vm917_vm9, %v913_v13, %v914_v30  ;;  %v3585_v42 = vsel %vm917_vm9, %v912_v9, %v913_v13  ;;  %v3622_v54 = vsel %vm917_vm9, %v915_v2, %v916_v18  ;;  %v3626_v55 = vsel %vm917_vm9, %v914_v30, %v915_v2  ;;  %v3050_v13 = vld [vmem:[%s3854_s3 + $0x1f8] sm:$0xff]   ;;  %v3061_v2 = vld [vmem:[%s3854_s3 + $0x190] sm:$0xff]  }
  0x42   : > { %2799 = vmatpush3.bf16.msra.mxu0 %v3026_v29  ;;  %v3562_v29 = vsel %vm917_vm9, %v911_v14, %v912_v9  ;;  %v3648_v62 = vpack.c.bf16 %v3622_v54, %v3626_v55  ;;  %v2385_v18 = vcombine.low %v3216_v16, %v3219_v17  ;;  %v3041_v16 = vld [vmem:[%s3854_s3 + $0x158] sm:$0xff]   ;;  %v3042_v17 = vld [vmem:[%s3854_s3 + $0x110] sm:$0xff]   ;;  %v3046_v9 = vld [vmem:[%s3854_s3 + $0x100] sm:$0xff]  }
  0x43   : > { %2823 = vmatpush3.bf16.msra.mxu1 %v3027_v37  ;;  %2800 = vmatprep.subr.bf16.mxu0 %v3028_v59  ;;  %v923_v37 = vsel %vm917_vm9, %v910_v50, %v911_v14  ;;  %v2373_v50 = vpack.c.bf16 %v3415_v25, %v3309_v52  ;;  %v3035_v52 = vld [vmem:[%s3854_s3 + $0x170] sm:$0xff]   ;;  %v3607_v25 = vpack.c.bf16 %v3581_v28, %v3585_v42  ;;  %vm3652_vm9 = vmpackc.low %vm2630_vm12, %vm2631_vm13  ;;  %v3045_v14 = vld [vmem:[%s3854_s3 + $0x148] sm:$0xff]  }
  0x44   : > { %2824 = vmatprep.subr.bf16.mxu1 %v3029_v10  ;;  %v3577_v11 = vpack.c.bf16 %v3562_v29, %v923_v37  ;;  %v2440_v40 = vpack.c.bf16 %v923_v37, %v3475_v26  ;;  %v3043_v26 = vld [vmem:[%s3854_s3 + $0x150] sm:$0xff]   ;;  %v2445_v30 = vpack.c.bf16 %v3585_v42, %v3562_v29  ;;  %v2450_v29 = vpack.c.bf16 %v3626_v55, %v3581_v28  ;;  %v3066_v42 = vld [vmem:[%s3854_s3 + $0x1c0] sm:$0xff]  }
  0x45   : > { %v3052_v37 = vld [vmem:[%s3854_s3 + $0x1f0] sm:$0xff]  }
  0x46   : > { %2801 = vmatpush3.bf16.msra.mxu0 %v3028_v59  ;;  %v3062_v28 = vld [vmem:[%s3854_s3 + $0x1d0] sm:$0xff]  }
  0x47   : > { %2825 = vmatpush3.bf16.msra.mxu1 %v3029_v10  ;;  %2802 = vmatprep.subr.bf16.mxu0 %v3030_v38  ;;  %v3044_v10 = vld [vmem:[%s3854_s3 + $0x108] sm:$0xff]  }
  0x48   : > { %2826 = vmatprep.subr.bf16.mxu1 %v3031_v41 }
  0x4a   : > { %2803 = vmatpush3.bf16.msra.mxu0 %v3030_v38  ;;  %v3047_v38 = vld [vmem:[%s3854_s3 + $0x140] sm:$0xff]  }
  0x4b   : > { %2827 = vmatpush3.bf16.msra.mxu1 %v3031_v41  ;;  %2836 = vmatprep.subr.bf16.mxu0 %v3032_v36  ;;  %v3049_v41 = vld [vmem:[%s3854_s3 + $0x1b8] sm:$0xff]  }
  0x4c   : > { %2860 = vmatprep.subr.bf16.mxu1 %v3033_v48 }
  0x4d   : > { %2805 = vmatmul.mubr.msk.bf16.vlgmr.msra.gmra.mxu0 %vm3591_vm5, %v3577_v11 }
  0x4e   : > { %2829 = vmatmul.mubr.msk.bf16.vlgmr.msra.gmra.mxu1 %vm3363_vm6, %v2373_v50  ;;  %2837 = vmatpush3.bf16.msra.mxu0 %v3032_v36  ;;  %v2387_v36 = vcombine.low %v3337_v61, %v3354_v4  ;;  %v2455_v61 = vpack.c.bf16 %v3521_v24, %v3622_v54  ;;  %v3058_v4 = vld [vmem:[%s3854_s3 + $0x1e0] sm:$0xff]   ;;  %v3067_v50 = vld [vmem:[%s3854_s3 + $0x238] sm:$0xff]  }
  0x4f   : > { %2861 = vmatpush3.bf16.msra.mxu1 %v3033_v48  ;;  %2838 = vmatprep.subr.bf16.mxu0 %v3034_v12  ;;  %v3055_v48 = vld [vmem:[%s3854_s3 + $0x1a8] sm:$0xff]  }
  0x50   : > { %2862 = vmatprep.subr.bf16.mxu1 %v3035_v52  ;;  %2808 = vmatprep.mubr.msk.bf16.mxu0 %vm3612_vm11, %v3607_v25 }
  0x51   : > { %2832 = vmatprep.mubr.msk.bf16.mxu1 %vm3421_vm10, %v2378_v49  ;;  %v2499_v49 = vpack.c.bf16 %v3532_v51, %v3638_v43 }
  0x52   : > { %2839 = vmatpush3.bf16.msra.mxu0 %v3034_v12  ;;  %v3068_v12 = vld [vmem:[%s3854_s3 + $0x230] sm:$0xff]  }
  0x53   : > { %2863 = vmatpush3.bf16.msra.mxu1 %v3035_v52  ;;  %2840 = vmatprep.subr.bf16.mxu0 %v3036_v20  ;;  %v3069_v52 = vld [vmem:[%s3854_s3 + $0x228] sm:$0xff]  }
  0x54   : > { %2864 = vmatprep.subr.bf16.mxu1 %v3037_v63 }
  0x55   : > { %2809 = vmatmul.mubr.msk.bf16.gmra.mxu0 %vm3652_vm9, %v3648_v62 }
  0x56   : > { %2841 = vmatpush3.bf16.msra.mxu0 %v3036_v20  ;;  %2833 = vmatmul.mubr.msk.bf16.gmra.mxu1 %vm3469_vm15, %v2383_v22 }
  0x57   : > { %2865 = vmatpush3.bf16.msra.mxu1 %v3037_v63  ;;  %2842 = vmatprep.subr.bf16.mxu0 %v3038_v33 }
  0x58   : > { %2866 = vmatprep.subr.bf16.mxu1 %v3039_v35  ;;  %2852 = vmatprep.mubr.bf16.mxu0 %v2385_v18 }
  0x59   : > { %2876 = vmatprep.mubr.msk.bf16.mxu1 %vm3484_vm1, %v2440_v40 }
  0x5a   : > { %2843 = vmatpush3.bf16.msra.mxu0 %v3038_v33 }
  0x5b   : > { %2867 = vmatpush3.bf16.msra.mxu1 %v3039_v35  ;;  %2844 = vmatprep.subr.bf16.mxu0 %v3040_v32 }
  0x5c   : > { %2868 = vmatprep.subr.bf16.mxu1 %v3041_v16 }
  0x5e   : > { %2845 = vmatpush3.bf16.msra.mxu0 %v3040_v32 }
  0x5f   : > { %2869 = vmatpush3.bf16.msra.mxu1 %v3041_v16  ;;  %2846 = vmatprep.subr.bf16.mxu0 %v3042_v17 }
  0x60   : > { %2870 = vmatprep.subr.bf16.mxu1 %v3043_v26 }
  0x62   : > { %2847 = vmatpush3.bf16.msra.mxu0 %v3042_v17 }
  0x63   : > { %2871 = vmatpush3.bf16.msra.mxu1 %v3043_v26  ;;  %2848 = vmatprep.subr.bf16.mxu0 %v3044_v10 }
  0x64   : > { %2872 = vmatprep.subr.bf16.mxu1 %v3045_v14 }
  0x66   : > { %2849 = vmatpush3.bf16.msra.mxu0 %v3044_v10 }
  0x67   : > { %2873 = vmatpush3.bf16.msra.mxu1 %v3045_v14  ;;  %2850 = vmatprep.subr.bf16.mxu0 %v3046_v9 }
  0x68   : > { %2874 = vmatprep.subr.bf16.mxu1 %v3047_v38 }
  0x6a   : > { %2851 = vmatpush3.bf16.msra.mxu0 %v3046_v9 }
  0x6b   : > { %2875 = vmatpush3.bf16.msra.mxu1 %v3047_v38  ;;  %2884 = vmatprep.subr.bf16.mxu0 %v3049_v41 }
  0x6c   : > { %2908 = vmatprep.subr.bf16.mxu1 %v3050_v13 }
  0x6d   : > { %2853 = vmatmul.mubr.bf16.vlgmr.msra.gmra.mxu0 %v2386_v3  ;;  %v3057_v3 = vld [vmem:[%s3854_s3 + $0x1a0] sm:$0xff]  }
  0x6e   : > { %2877 = vmatmul.mubr.msk.bf16.vlgmr.msra.gmra.mxu1 %vm3591_vm5, %v2445_v30  ;;  %2885 = vmatpush3.bf16.msra.mxu0 %v3049_v41 }
  0x6f   : > { %2909 = vmatpush3.bf16.msra.mxu1 %v3050_v13  ;;  %2886 = vmatprep.subr.bf16.mxu0 %v3051_v1 }
  0x70   : > { %2910 = vmatprep.subr.bf16.mxu1 %v3052_v37  ;;  %2856 = vmatprep.mubr.bf16.mxu0 %v2387_v36 }
  0x71   : > { %2880 = vmatprep.mubr.msk.bf16.mxu1 %vm3612_vm11, %v2450_v29 }
  0x72   : > { %2887 = vmatpush3.bf16.msra.mxu0 %v3051_v1 }
  0x73   : > { %2911 = vmatpush3.bf16.msra.mxu1 %v3052_v37  ;;  %2888 = vmatprep.subr.bf16.mxu0 %v3055_v48 }
  0x74   : > { %2912 = vmatprep.subr.bf16.mxu1 %v3056_v21 }
  0x75   : > { %2857 = vmatmul.mubr.bf16.gmra.mxu0 %v2388_v60 }
  0x76   : > { %2889 = vmatpush3.bf16.msra.mxu0 %v3055_v48  ;;  %2881 = vmatmul.mubr.msk.bf16.gmra.mxu1 %vm3652_vm9, %v2455_v61 }
  0x77   : > { %2913 = vmatpush3.bf16.msra.mxu1 %v3056_v21  ;;  %2890 = vmatprep.subr.bf16.mxu0 %v3057_v3 }
  0x78   : > { %2914 = vmatprep.subr.bf16.mxu1 %v3058_v4  ;;  %2900 = vmatprep.mubr.msk.bf16.mxu0 %vm3284_vm3, %v3347_v0  ;;  %v3065_v0 = vld [vmem:[%s3854_s3 + $0x180] sm:$0xff]  }
  0x79   : > { %2924 = vmatprep.mubr.bf16.mxu1 %v3328_v58  ;;  %v3064_v58 = vld [vmem:[%s3854_s3 + $0x1c8] sm:$0xff]  }
  0x7a   : > { %2891 = vmatpush3.bf16.msra.mxu0 %v3057_v3 }
  0x7b   : > { %2915 = vmatpush3.bf16.msra.mxu1 %v3058_v4  ;;  %2892 = vmatprep.subr.bf16.mxu0 %v3059_v5 }
  0x7c   : > { %2916 = vmatprep.subr.bf16.mxu1 %v3060_v8 }
  0x7e   : > { %2893 = vmatpush3.bf16.msra.mxu0 %v3059_v5 }
  0x7f   : > { %2917 = vmatpush3.bf16.msra.mxu1 %v3060_v8  ;;  %2894 = vmatprep.subr.bf16.mxu0 %v3061_v2 }
  0x80   : > { %2918 = vmatprep.subr.bf16.mxu1 %v3062_v28 }
  0x82   : > { %2895 = vmatpush3.bf16.msra.mxu0 %v3061_v2 }
  0x83   : > { %2919 = vmatpush3.bf16.msra.mxu1 %v3062_v28  ;;  %2896 = vmatprep.subr.bf16.mxu0 %v3063_v45 }
  0x84   : > { %2920 = vmatprep.subr.bf16.mxu1 %v3064_v58 }
  0x86   : > { %2897 = vmatpush3.bf16.msra.mxu0 %v3063_v45 }
  0x87   : > { %2921 = vmatpush3.bf16.msra.mxu1 %v3064_v58  ;;  %2898 = vmatprep.subr.bf16.mxu0 %v3065_v0 }
  0x88   : > { %2922 = vmatprep.subr.bf16.mxu1 %v3066_v42 }
  0x8a   : > { %2899 = vmatpush3.bf16.msra.mxu0 %v3065_v0 }
  0x8b   : > { %2923 = vmatpush3.bf16.msra.mxu1 %v3066_v42  ;;  %2932 = vmatprep.subr.bf16.mxu0 %v3067_v50 }
  0x8c   : > { %2956 = vmatprep.subr.bf16.mxu1 %v3067_v50 }
  0x8d   : > { %2901 = vmatmul.mubr.msk.bf16.vlgmr.msra.gmra.mxu0 %vm3363_vm6, %v3431_v39  ;;  %v3074_v39 = vld [vmem:[%s3854_s3 + $0x200] sm:$0xff]  }
  0x8e   : > { %2925 = vmatmul.mubr.bf16.vlgmr.msra.gmra.mxu1 %v3390_v19  ;;  %2933 = vmatpush3.bf16.msra.mxu0 %v3067_v50  ;;  %v3071_v19 = vld [vmem:[%s3854_s3 + $0x218] sm:$0xff]  }
  0x8f   : > { %2964 = vmatpush3.bf16.msra.mxu1 %v3067_v50  ;;  %2934 = vmatprep.subr.bf16.mxu0 %v3068_v12 }
  0x90   : > { %2957 = vmatprep.subr.bf16.mxu1 %v3068_v12  ;;  %2904 = vmatprep.mubr.msk.bf16.mxu0 %vm3421_vm10, %v3463_v56 }
  0x91   : > { %2928 = vmatprep.mubr.bf16.mxu1 %v3455_v47 }
  0x92   : > { %2935 = vmatpush3.bf16.msra.mxu0 %v3068_v12 }
  0x93   : > { %2965 = vmatpush3.bf16.msra.mxu1 %v3068_v12  ;;  %2936 = vmatprep.subr.bf16.mxu0 %v3069_v52 }
  0x94   : > { %2958 = vmatprep.subr.bf16.mxu1 %v3069_v52 }
  0x95   : > { %2905 = vmatmul.mubr.msk.bf16.gmra.mxu0 %vm3469_vm15, %v2499_v49 }
  0x96   : > { %2937 = vmatpush3.bf16.msra.mxu0 %v3069_v52  ;;  %2929 = vmatmul.mubr.bf16.gmra.mxu1 %v1697_v27 }
  0x97   : > { %2966 = vmatpush3.bf16.msra.mxu1 %v3069_v52  ;;  %2938 = vmatprep.subr.bf16.mxu0 %v3070_v6 }
  0x98   : > { %2959 = vmatprep.subr.bf16.mxu1 %v3070_v6  ;;  %2948 = vmatprep.mubr.msk.bf16.mxu0 %vm3484_vm1, %v3577_v11 }
  0x99   : > { %2952 = vmatprep.mubr.msk.bf16.mxu1 %vm3612_vm11, %v3648_v62 }
  0x9a   : > { %2939 = vmatpush3.bf16.msra.mxu0 %v3070_v6 }
  0x9b   : > { %2967 = vmatpush3.bf16.msra.mxu1 %v3070_v6  ;;  %2940 = vmatprep.subr.bf16.mxu0 %v3071_v19 }
  0x9c   : > { %2960 = vmatprep.subr.bf16.mxu1 %v3071_v19 }
  0x9e   : > { %2941 = vmatpush3.bf16.msra.mxu0 %v3071_v19 }
  0x9f   : > { %2968 = vmatpush3.bf16.msra.mxu1 %v3071_v19  ;;  %2942 = vmatprep.subr.bf16.mxu0 %v3072_v31 }
  0xa0   : > { %2961 = vmatprep.subr.bf16.mxu1 %v3072_v31 }
  0xa2   : > { %2943 = vmatpush3.bf16.msra.mxu0 %v3072_v31 }
  0xa3   : > { %2969 = vmatpush3.bf16.msra.mxu1 %v3072_v31  ;;  %2944 = vmatprep.subr.bf16.mxu0 %v3073_v34 }
  0xa4   : > { %2962 = vmatprep.subr.bf16.mxu1 %v3073_v34 }
  0xa6   : > { %2945 = vmatpush3.bf16.msra.mxu0 %v3073_v34 }
  0xa7   : > { %2970 = vmatpush3.bf16.msra.mxu1 %v3073_v34  ;;  %2946 = vmatprep.subr.bf16.mxu0 %v3074_v39 }
  0xa8   : > { %2963 = vmatprep.subr.bf16.mxu1 %v3074_v39 }
  0xaa   : > { %2947 = vmatpush3.bf16.msra.mxu0 %v3074_v39 }
  0xab   : > { %2971 = vmatpush3.bf16.msra.mxu1 %v3074_v39 }
  0xad   : > { %2949 = vmatmul.mubr.msk.bf16.vlgmr.msra.gmra.mxu0 %vm3591_vm5, %v3607_v25 }
  0xae   : > { %2953 = vmatmul.mubr.msk.bf16.vlgmr.msra.gmra.mxu1 %vm3652_vm9, %v2567_v44 }
  0xed   : > { %v2758_v47 = vpop.f32.mrf.mxu0 }
  0xee   : > { %v2782_v56 = vpop.f32.mrf.mxu1 }
  0xef   : > { %v764_v57 = vpop.f32.mrf.mxu0  ;;  %v886_v12 = vadd.f32 %v2782_v56, %v2758_v47 }
  0xf0   : > { %v877_v23 = vpop.f32.mrf.mxu1 }
  0xf1   : > { %v2759_v53 = vpop.f32.mrf.mxu0  ;;  %v878_v52 = vadd.f32 %v877_v23, %v764_v57 }
  0xf2   : > { %v2783_v27 = vpop.f32.mrf.mxu1 }
  0xf3   : > { %v767_v51 = vpop.f32.mrf.mxu0  ;;  %v889_v49 = vadd.f32 %v2783_v27, %v2759_v53 }
  0xf4   : > { %v880_v11 = vpop.f32.mrf.mxu1 }
  0xf5   : > { %v2762_v46 = vpop.f32.mrf.mxu0  ;;  %v881_v34 = vadd.f32 %v880_v11, %v767_v51 }
  0xf6   : > { %v2786_v54 = vpop.f32.mrf.mxu1 }
  0xf7   : > { %v780_v55 = vpop.f32.mrf.mxu0  ;;  %v902_v6 = vadd.f32 %v2786_v54, %v2762_v46 }
  0xf8   : > { %v893_v20 = vpop.f32.mrf.mxu1 }
  0xf9   : > { %v2763_v59 = vpop.f32.mrf.mxu0 }
  0xfa   : > { %v2787_v25 = vpop.f32.mrf.mxu1 }
  0xfb   : > { %v783_v43 = vpop.f32.mrf.mxu0  ;;  %v905_v19 = vadd.f32 %v2787_v25, %v2763_v59 }
  0xfc   : > { %v896_v63 = vpop.f32.mrf.mxu1 }
  0xfd   : > { %v897_v47 = vadd.f32 %v896_v63, %v783_v43 }
 0x10d   : > { %v2806_v15 = vpop.f32.mrf.mxu0 }
 0x10e   : > { %v2830_v24 = vpop.f32.mrf.mxu1  ;;  %v1094_v39 = vadd.f32 %v2806_v15, %v886_v12 }
 0x10f   : > { %v1061_v62 = vpop.f32.mrf.mxu0 }
 0x110   : > { %v1213_v44 = vpop.f32.mrf.mxu1  ;;  %v1246_v54 = vadd.f32 %v2830_v24, %v1094_v39 }
 0x111   : > { %v2807_v7 = vpop.f32.mrf.mxu0 }
 0x112   : > { %v2831_v22 = vpop.f32.mrf.mxu1 }
 0x113   : > { %v1064_v33 = vpop.f32.mrf.mxu0 }
 0x114   : > { %v1216_v35 = vpop.f32.mrf.mxu1  ;;  %v1093_v57 = vadd.f32 %v1064_v33, %v881_v34 }
 0x115   : > { %v2810_v18 = vpop.f32.mrf.mxu0 }
 0x116   : > { %v2834_v40 = vpop.f32.mrf.mxu1  ;;  %v1098_v56 = vadd.f32 %v2810_v18, %v902_v6  ;;  %v1245_v15 = vadd.f32 %v1216_v35, %v1093_v57 }
 0x117   : > { %v1077_v32 = vpop.f32.mrf.mxu0 }
 0x118   : > { %v1229_v16 = vpop.f32.mrf.mxu1  ;;  %v1250_v51 = vadd.f32 %v2834_v40, %v1098_v56 }
 0x119   : > { %v2811_v17 = vpop.f32.mrf.mxu0 }
 0x11a   : > { %v2835_v26 = vpop.f32.mrf.mxu1  ;;  %v1099_v23 = vadd.f32 %v2811_v17, %v905_v19 }
 0x11b   : > { %v1080_v10 = vpop.f32.mrf.mxu0 }
 0x11c   : > { %v1232_v14 = vpop.f32.mrf.mxu1  ;;  %v1097_v53 = vadd.f32 %v1080_v10, %v897_v47  ;;  %v1251_v12 = vadd.f32 %v2835_v26, %v1099_v23 }
 0x12d   : > { %v2854_v9 = vpop.f32.mrf.mxu0 }
 0x12e   : > { %v2878_v38 = vpop.f32.mrf.mxu1 }
 0x12f   : > { %v1355_v41 = vpop.f32.mrf.mxu0 }
 0x130   : > { %v1507_v13 = vpop.f32.mrf.mxu1 }
 0x131   : > { %v2855_v30 = vpop.f32.mrf.mxu0 }
 0x132   : > { %v2879_v1 = vpop.f32.mrf.mxu1 }
 0x133   : > { %v1358_v37 = vpop.f32.mrf.mxu0 }
 0x134   : > { %v1510_v36 = vpop.f32.mrf.mxu1  ;;  %v1387_v18 = vadd.f32 %v1358_v37, %v1245_v15 }
 0x135   : > { %v2858_v29 = vpop.f32.mrf.mxu0 }
 0x136   : > { %v2882_v48 = vpop.f32.mrf.mxu1  ;;  %v1539_v26 = vadd.f32 %v1510_v36, %v1387_v18 }
 0x137   : > { %v1371_v21 = vpop.f32.mrf.mxu0 }
 0x138   : > { %v1523_v60 = vpop.f32.mrf.mxu1 }
 0x139   : > { %v2859_v61 = vpop.f32.mrf.mxu0 }
 0x13a   : > { %v2883_v3 = vpop.f32.mrf.mxu1  ;;  %v1393_v43 = vadd.f32 %v2859_v61, %v1251_v12 }
 0x13b   : > { %v1374_v4 = vpop.f32.mrf.mxu0 }
 0x13c   : > { %v1526_v5 = vpop.f32.mrf.mxu1 }
 0x14d   : > { %v2902_v8 = vpop.f32.mrf.mxu0 }
 0x14e   : > { %v3822_v2 = vpop.f32.mrf.mxu1 }
 0x14f   : > { %3887 = vst [vmem:[#allocation2_spill] sm:$0xff] %v3822_v2  ;;  %v1658_v28 = vpop.f32.mrf.mxu0  ;;  %v1092_v2 = vadd.f32 %v1061_v62, %v878_v52  ;;  %v1388_v52 = vadd.f32 %v2854_v9, %v1246_v54 }
 0x150   : > { %v3824_v45 = vpop.f32.mrf.mxu1 }
 0x151   : > { %3888 = vst [vmem:[#allocation3_spill] sm:$0xff] %v3824_v45  ;;  %v2903_v58 = vpop.f32.mrf.mxu0  ;;  %v1095_v45 = vadd.f32 %v2807_v7, %v889_v49  ;;  %v1244_v25 = vadd.f32 %v1213_v44, %v1092_v2  ;;  %v1540_v10 = vadd.f32 %v2878_v38, %v1388_v52  ;;  %v1545_v2 = vadd.f32 %v2883_v3, %v1393_v43 }
 0x152   : > { %v3826_v0 = vpop.f32.mrf.mxu1 }
 0x153   : > { %3889 = vst [vmem:[#allocation4_spill] sm:$0xff] %v3826_v0  ;;  %v1661_v42 = vpop.f32.mrf.mxu0  ;;  %v1247_v59 = vadd.f32 %v2831_v22, %v1095_v45  ;;  %v1386_v62 = vadd.f32 %v1355_v41, %v1244_v25  ;;  %v1691_v35 = vadd.f32 %v2902_v8, %v1540_v10 }
 0x154   : > { %v3828_v50 = vpop.f32.mrf.mxu1  ;;  %v1690_v37 = vadd.f32 %v1661_v42, %v1539_v26 }
 0x155   : > { %3890 = vst [vmem:[#allocation5_spill] sm:$0xff] %v3828_v50  ;;  %v2906_v31 = vpop.f32.mrf.mxu0  ;;  %v894_v50 = vadd.f32 %v893_v20, %v780_v55  ;;  %v1389_v7 = vadd.f32 %v2855_v30, %v1247_v59  ;;  %v1249_v20 = vadd.f32 %v1232_v14, %v1097_v53  ;;  %v1392_v55 = vadd.f32 %v2858_v29, %v1250_v51 }
 0x156   : > { %v2930_v0 = vpop.f32.mrf.mxu1  ;;  %v1538_v24 = vadd.f32 %v1507_v13, %v1386_v62  ;;  %v3891_v13 = vld [vmem:[#allocation2_spill] sm:$0xff] }
 0x157   : > { %v1096_v27 = vadd.f32 %v1077_v32, %v894_v50  ;;  %v1674_v46 = vpop.f32.mrf.mxu0  ;;  %v1391_v17 = vadd.f32 %v1374_v4, %v1249_v20  ;;  %v1541_v44 = vadd.f32 %v2879_v1, %v1389_v7  ;;  %v1544_v22 = vadd.f32 %v2882_v48, %v1392_v55 }
 0x158   : > { %v1813_v11 = vpop.f32.mrf.mxu1  ;;  %v1689_v9 = vadd.f32 %v1658_v28, %v1538_v24  ;;  %v1830_v1 = vadd.f32 %v3891_v13, %v1691_v35  ;;  %v3892_v48 = vld [vmem:[#allocation3_spill] sm:$0xff] }
 0x159   : > { %v1248_v49 = vadd.f32 %v1229_v16, %v1096_v27  ;;  %v2907_v63 = vpop.f32.mrf.mxu0  ;;  %v1692_v41 = vadd.f32 %v2903_v58, %v1541_v44  ;;  %v1543_v14 = vadd.f32 %v1526_v5, %v1391_v17  ;;  %v1695_v29 = vadd.f32 %v2906_v31, %v1544_v22 }
 0x15a   : > { %v2931_v33 = vpop.f32.mrf.mxu1  ;;  %v1696_v61 = vadd.f32 %v2907_v63, %v1545_v2  ;;  %v1828_v3 = vadd.f32 %v3892_v48, %v1689_v9  ;;  %v3893_v36 = vld [vmem:[#allocation4_spill] sm:$0xff] }
 0x15b   : > { %v1390_v32 = vadd.f32 %v1371_v21, %v1248_v49  ;;  %v1677_v40 = vpop.f32.mrf.mxu0  ;;  %v1831_v8 = vadd.f32 %v3893_v36, %v1692_v41  ;;  %v1834_v58 = vadd.f32 %v2930_v0, %v1695_v29 }
 0x15c   : > { %v1816_v30 = vpop.f32.mrf.mxu1  ;;  %v1694_v4 = vadd.f32 %v1677_v40, %v1543_v14  ;;  %v1835_v6 = vadd.f32 %v2931_v33, %v1696_v61  ;;  %v3894_v5 = vld [vmem:[#allocation5_spill] sm:$0xff] }
 0x15d   : > { %v1542_v16 = vadd.f32 %v1523_v60, %v1390_v32  ;;  %v1829_v19 = vadd.f32 %v3894_v5, %v1690_v37 }
 0x15e   : > { %v1833_v56 = vadd.f32 %v1816_v30, %v1694_v4 }
 0x15f   : > { %v1693_v21 = vadd.f32 %v1674_v46, %v1542_v16 }
 0x161   : > { %v1832_v47 = vadd.f32 %v1813_v11, %v1693_v21 }
 0x16d   : > { %v2950_v45 = vpop.f32.mrf.mxu0 }
 0x16e   : > { %v2954_v50 = vpop.f32.mrf.mxu1  ;;  %v1981_v31 = vadd.f32 %v2950_v45, %v1830_v1 }
 0x16f   : > { %v1948_v38 = vpop.f32.mrf.mxu0  ;;  %v1985_v23 = vadd.f32 %v2954_v50, %v1834_v58 }
 0x170   : > { %v1964_v28 = vpop.f32.mrf.mxu1  ;;  %v1979_v34 = vadd.f32 %v1948_v38, %v1828_v3  ;;  %v2042_v62 = vmul.f32 %v1981_v31, %v1981_v31 }
 0x171   : > { %v2951_v60 = vpop.f32.mrf.mxu0  ;;  %v1983_v54 = vadd.f32 %v1964_v28, %v1832_v47  ;;  %v2046_v24 = vmul.f32 %v1985_v23, %v1985_v23 }
 0x172   : > { %v1982_v42 = vadd.f32 %v2951_v60, %v1831_v8  ;;  %v2955_v39 = vpop.f32.mrf.mxu1  ;;  %v2040_v51 = vmul.f32 %v1979_v34, %v1979_v34 }
 0x173   : > { %v1986_v57 = vadd.f32 %v2955_v39, %v1835_v6  ;;  %v1951_v27 = vpop.f32.mrf.mxu0  ;;  %v2044_v63 = vmul.f32 %v1983_v54, %v1983_v54 }
 0x174   : > { %v2600_v53 = vpack.c.bf16 %v1982_v42, %v1981_v31  ;;  %v1980_v46 = vadd.f32 %v1951_v27, %v1829_v19  ;;  %v1967_v0 = vpop.f32.mrf.mxu1  ;;  %v2043_v20 = vmul.f32 %v1982_v42, %v1982_v42 }
 0x175   : > { %v2610_v25 = vpack.c.bf16 %v1986_v57, %v1985_v23  ;;  %v1984_v59 = vadd.f32 %v1967_v0, %v1833_v56  ;;  %v2047_v2 = vmul.f32 %v1986_v57, %v1986_v57 }
 0x176   : > { %2613 = vst [vmem:[%s446_s21 + $0x8] sm:$0xff] %v2600_v53   ;;  %v2595_v12 = vpack.c.bf16 %v1980_v46, %v1979_v34  ;;  %v2027_v15 = vadd.f32 %v1980_v46, %v1979_v34  ;;  %v2041_v52 = vmul.f32 %v1980_v46, %v1980_v46 }
 0x177   : > { %2615 = vst [vmem:[%s446_s21 + $0x18] sm:$0xff] %v2610_v25   ;;  %v2605_v11 = vpack.c.bf16 %v1984_v59, %v1983_v54  ;;  %v2045_v17 = vmul.f32 %v1984_v59, %v1984_v59 }
 0x178   : > { %2596 = vst [vmem:[%s446_s21] sm:$0xff] %v2595_v12   ;;  %v2028_v7 = vadd.f32 %v2027_v15, %v1981_v31  ;;  %v2048_v49 = vadd.f32 %v2041_v52, %v2040_v51 }
 0x179   : > { %2614 = vst [vmem:[%s446_s21 + $0x10] sm:$0xff] %v2605_v11  }
 0x17a   : > { %v2049_v55 = vadd.f32 %v2048_v49, %v2042_v62  ;;  %v2029_v43 = vadd.f32 %v2028_v7, %v1982_v42 }
 0x17c   : > { %v2030_v18 = vadd.f32 %v2029_v43, %v1983_v54  ;;  %v2050_v33 = vadd.f32 %v2049_v55, %v2043_v20 }
 0x17e   : > { %v2031_v32 = vadd.f32 %v2030_v18, %v1984_v59  ;;  %v2051_v10 = vadd.f32 %v2050_v33, %v2044_v63 }
 0x180   : > { %v2032_v44 = vadd.f32 %v2031_v32, %v1985_v23  ;;  %v2052_v22 = vadd.f32 %v2051_v10, %v2045_v17 }
 0x182   : > { %v2033_v40 = vadd.f32 %v2032_v44, %v1986_v57  ;;  %v2053_v26 = vadd.f32 %v2052_v22, %v2046_v24 }
 0x184   : > { %v2034_v35 = vrot.slane %v2033_v40, 4  ;;  %v2054_v9 = vadd.f32 %v2053_v26, %v2047_v2 }
 0x186   : > { %v2035_v41 = vadd.f32 %v2034_v35, %v2033_v40  ;;  %v2055_v30 = vrot.slane %v2054_v9, 4 }
 0x188   : > { %v2036_v16 = vrot.slane %v2035_v41, 2  ;;  %v2056_v14 = vadd.f32 %v2055_v30, %v2054_v9 }
 0x18a   : > { %v2037_v29 = vadd.f32 %v2036_v16, %v2035_v41  ;;  %v2057_v61 = vrot.slane %v2056_v14, 2 }
 0x18c   : > { %v2038_v45 = vrot.slane %v2037_v29, 1  ;;  %v2058_v37 = vadd.f32 %v2057_v61, %v2056_v14 }
 0x18e   : > { %v2059_v50 = vrot.slane %v2058_v37, 1  ;;  %v2039_v21 = vadd.f32 %v2038_v45, %v2037_v29 }
 0x190   : > { %v2060_v4 = vadd.f32 %v2059_v50, %v2058_v37 }
 0x192   : > { %v2062_v38 = vsel %vm2061_vm0, %v2039_v21, %v2060_v4 }
 0x193   : > { %2063 = vst [vmem:[%s454_s5] sm:$0x3] %v2062_v38 }
 0x194 PF: > { %s18_s26 = sadd.s32 1, %s3097_s26   ;;  %s3895_s24 = smov %s3093_s25 }
 0x195   : > { %p15_p5 = scmp.ge.s32.totalorder %s18_s26, 4   ;;  %s3896_s25 = smov %s3898_s4 }
 0x197   :  { %17 = sbr.rel (!%p15_p5) target bundleno = 2 (0x2), region = 100 }

// kernel: down_forward.6
= control target key start
LH: loop header
LB: loop body
LE: loop exit
PB: predicated region body
PF: predicated region fallthrough
CT: control target
= control target key end

     0   :  { %s3190_s24 = smov 0   ;;  %s3192_s25 = smov 0   ;;  %s3943_s0 = inlined_call_operand.vmem [shape: bf16[2,8,8,128], index: 0, kind: input, shape index: {}, may-alias: {0,1,2}]   ;;  %s3944_s1 = inlined_call_operand.vmem [shape: bf16[2,8,8,128], index: 1, kind: input, shape index: {}, may-alias: {0,1,2}]   ;;  %s3945_s2 = inlined_call_operand.vmem [shape: bf16[2,8,8,128], index: 2, kind: input, shape index: {}, may-alias: {0,1,2}]   ;;  %s3946_s3 = inlined_call_operand.vmem [shape: bf16[9,128,128], index: 3, kind: input, shape index: {}]   ;;  %s3947_s4 = inlined_call_operand.vmem [shape: f32[1,128], index: 4, kind: input, shape index: {}]   ;;  %s3948_s5 = inlined_call_operand.vmem [shape: f32[1,128], index: 5, kind: input, shape index: {}]   ;;  %s3949_s6 = inlined_call_operand.vmem [shape: bf16[2,64,128], index: 6, kind: output, shape index: {0}]   ;;  %s3950_s7 = inlined_call_operand.vmem [shape: f32[2,1,2,128], index: 7, kind: output, shape index: {1}]  }
   0x1   :  { %s3194_s26 = smov 0  }
   0x2 LB: > { %s30_s27 = sadd.s32 1, %s3144_s25  ;;  %p2276_p0 = scmp.ge.s32.totalorder %s3148_s26, 1  ;;  %s3148_s26 = sphi %s3194_s26, %s18_s26   ;;  %s3144_s25 = sphi %s3192_s25, %s3998_s25   ;;  %s3140_s24 = sphi %s3190_s24, %s3997_s24  }
   0x3   : > { %p32_p1 = scmp.ge.s32.totalorder %s30_s27, 2  ;;  %p325_p2 = scmp.lt.s32.totalorder %s3148_s26, 3 }
   0x5   : > { %s4000_s27 = smov (%p32_p1, %s30_s27), 0  ;;  %p326_p3 = pnand %p2276_p0, %p325_p2 }
   0x7   : > { %329 = sbr.rel (%p326_p3) target bundleno = 404 (0x194), region = 44 }
   0xc   : > { %v3054_v0 = vld [vmem:[%s3946_s3 + $0x78] sm:$0xff]   ;;  %p400_p4 = scmp.lt.s32.totalorder %s3140_s24, 1  ;;  %v3056_v2 = vld [vmem:[%s3946_s3 + $0x70] sm:$0xff]   ;;  %v530_v4 = vlaneseq  ;;  %v3058_v5 = vld [vmem:[%s3946_s3 + $0x68] sm:$0xff]  }
   0xd   : > { %v3055_v1 = vld [vmem:[%s3946_s3 + $0x38] sm:$0xff]   ;;  %2798 = vmatprep.subr.bf16.mxu0 %v3054_v0  ;;  %v3057_v3 = vld [vmem:[%s3946_s3 + $0x30] sm:$0xff]   ;;  %v3059_v6 = vld [vmem:[%s3946_s3 + $0x28] sm:$0xff]  }
   0xe   : > { %2822 = vmatprep.subr.bf16.mxu1 %v3055_v1  ;;  %2799 = vmatpush3.bf16.msra.mxu0 %v3054_v0  ;;  %s4002_s24 = smov (!%p400_p4, %s3140_s24), 1  ;;  %v3228_v7 = vshrl.u32 %v530_v4, 7  ;;  %v3060_v8 = vld [vmem:[%s3946_s3 + $0x60] sm:$0xff]   ;;  %v3062_v11 = vld [vmem:[%s3946_s3 + $0x58] sm:$0xff]   ;;  %v3064_v13 = vld [vmem:[%s3946_s3 + $0x50] sm:$0xff]  }
   0xf   : > { %2823 = vmatpush3.bf16.msra.mxu1 %v3055_v1  ;;  %2800 = vmatprep.subr.bf16.mxu0 %v3056_v2  ;;  %s3234_s19 = sshll.u32 %s4002_s24, 5  ;;  %v3061_v9 = vld [vmem:[%s3946_s3 + $0x20] sm:$0xff]   ;;  %v3063_v12 = vld [vmem:[%s3946_s3 + $0x18] sm:$0xff]   ;;  %v3065_v15 = vld [vmem:[%s3946_s3 + $0x10] sm:$0xff]  }
  0x10   : > { %2824 = vmatprep.subr.bf16.mxu1 %v3057_v3  ;;  %s2621_s22 = sadd.s32 28, %s3234_s19  ;;  %v3241_v10 = vadd.s32 8, %v3228_v7  ;;  %s407_s10 = scalar_lea.vmem %s3943_s0, %s3234_s19  ;;  %v3272_v17 = vld [vmem:[%s3947_s4] ss:$0 sm:$0xff]  ;;  %v3275_v18 = vadd.s32 16, %v3228_v7  ;;  %v543_v23 = vand.u32 7, %v3228_v7 }
  0x11   : > { %s3257_s13 = scalar_lea.vmem %s3944_s1, %s3234_s19  ;;  %s433_s16 = scalar_lea.vmem %s3945_s2, %s2621_s22  ;;  %v456_v16 = vld [vmem:[%s407_s10] sm:$0xf]  ;;  %v3281_v24 = vadd.s32 24, %v3228_v7  ;;  %vm644_vm0 = vcmp.lt.s32.totalorder %v3228_v7, 1  ;;  %v3066_v33 = vld [vmem:[%s3946_s3 + $0x48] sm:$0xff]   ;;  %v3351_v62 = vadd.s32 32, %v3228_v7 }
  0x12   : > { %2801 = vmatpush3.bf16.msra.mxu0 %v3056_v2  ;;  %v550_v14 = vand.u32 7, %v3241_v10  ;;  %v457_v19 = vunpack.c.l.bf16 %v456_v16  ;;  %v2632_v20 = vld [vmem:[%s3257_s13] sm:$0xff]   ;;  %v2668_v21 = vld [vmem:[%s3257_s13 + $0x8] sm:$0xff]   ;;  %v557_v37 = vand.u32 7, %v3275_v18  ;;  %vm3315_vm2 = vcmp.ne.s32.totalorder %v543_v23, 0  ;;  %v3080_v46 = vld [vmem:[%s3946_s3 + $0x90] sm:$0xff]   ;;  %s446_s23 = scalar_lea.vmem %s3949_s6, %s3234_s19 }
  0x13   : > { %2825 = vmatpush3.bf16.msra.mxu1 %v3057_v3  ;;  %2802 = vmatprep.subr.bf16.mxu0 %v3058_v5  ;;  %v520_v22 = vld [vmem:[%s433_s16] sm:$0xf]  ;;  %v2633_v26 = vunpack.c.l.bf16 %v2632_v20  ;;  %v2634_v27 = vunpack.c.h.bf16 %v2632_v20  ;;  %v2637_v28 = vunpack.c.l.bf16 %v2668_v21  ;;  %v2638_v29 = vunpack.c.h.bf16 %v2668_v21  ;;  %v3067_v38 = vld [vmem:[%s3946_s3 + $0x8] sm:$0xff]   ;;  %v3070_v3 = vld [vmem:[%s3946_s3 + $0xb8] sm:$0xff]   ;;  %s2285_s19 = sshll.u32 %s4002_s24, 1 }
  0x14   : > { %2826 = vmatprep.subr.bf16.mxu1 %v3059_v6  ;;  %v3286_v25 = vld [vmem:[%s3948_s5] ss:$0 sm:$0xff]  ;;  %v466_v30 = vmul.f32 %v3272_v17, %v457_v19  ;;  %v521_v31 = vunpack.c.l.bf16 %v520_v22  ;;  %vm3292_vm1 = vcmp.ne.s32.totalorder %v550_v14, 0  ;;  %v564_v42 = vand.u32 7, %v3281_v24  ;;  %v2670_v20 = vld [vmem:[%s3257_s13 + $0x18] sm:$0xff]   ;;  %v3075_v57 = vld [vmem:[%s3946_s3 + $0xe8] sm:$0xff]   ;;  %s454_s29 = scalar_lea.vmem %s3950_s7, %s2285_s19 }
  0x15   : > { %v496_v34 = vmul.f32 %v2633_v26, %v3272_v17  ;;  %v497_v35 = vmul.f32 %v2634_v27, %v3272_v17  ;;  %v498_v36 = vmul.f32 %v2637_v28, %v3272_v17  ;;  %v499_v40 = vmul.f32 %v2638_v29, %v3272_v17  ;;  %v3068_v47 = vld [vmem:[%s3946_s3 + $0x40] sm:$0xff]   ;;  %vm3362_vm5 = vmpackc.low %vm3292_vm1, %vm3315_vm2  ;;  %v3086_v24 = vld [vmem:[%s3946_s3 + $0x138] sm:$0xff]  }
  0x16   : > { %2803 = vmatpush3.bf16.msra.mxu0 %v3058_v5  ;;  %v473_v39 = vadd.f32 %v3286_v25, %v466_v30  ;;  %v522_v41 = vmul.f32 %v3272_v17, %v521_v31  ;;  %v3069_v50 = vld [vmem:[%s3946_s3] sm:$0xff]   ;;  %vm3337_vm3 = vcmp.ne.s32.totalorder %v564_v42, 0  ;;  %vm3343_vm4 = vcmp.ne.s32.totalorder %v557_v37, 0  ;;  %v3072_v31 = vld [vmem:[%s3946_s3 + $0xb0] sm:$0xff]   ;;  %v3114_v2 = vld [vmem:[%s3946_s3 + $0x188] sm:$0xff]  }
  0x17   : > { %2827 = vmatpush3.bf16.msra.mxu1 %v3059_v6  ;;  %2804 = vmatprep.subr.bf16.mxu0 %v3060_v8  ;;  %v504_v43 = vadd.f32 %v3286_v25, %v496_v34  ;;  %v505_v44 = vadd.f32 %v3286_v25, %v497_v35  ;;  %v506_v45 = vadd.f32 %v3286_v25, %v498_v36  ;;  %v3370_v4 = vadd.s32 40, %v3228_v7  ;;  %vm3409_vm6 = vmpackc.low %vm3337_vm3, %vm3343_vm4  ;;  %v3073_v35 = vld [vmem:[%s3946_s3 + $0xf0] sm:$0xff]   ;;  %v3121_v26 = vld [vmem:[%s3946_s3 + $0x220] sm:$0xff]  }
  0x18   : > { %2828 = vmatprep.subr.bf16.mxu1 %v3061_v9  ;;  %v474_v48 = vmax.f32 %v473_v39, 0.0  ;;  %v523_v49 = vadd.f32 %v3286_v25, %v522_v41  ;;  %v507_v52 = vadd.f32 %v3286_v25, %v499_v40  ;;  %v571_v19 = vand.u32 7, %v3351_v62  ;;  %v3074_v40 = vld [vmem:[%s3946_s3 + $0xa8] sm:$0xff]  }
  0x19   : > { %v3326_v51 = vmax.f32 %v504_v43, 0.0  ;;  %v3329_v53 = vmax.f32 %v505_v44, 0.0  ;;  %v3331_v54 = vmax.f32 %v506_v45, 0.0  ;;  %v578_v27 = vand.u32 7, %v3370_v4  ;;  %v3088_v4 = vld [vmem:[%s3946_s3 + $0x130] sm:$0xff]  }
  0x1a   : > { %2805 = vmatpush3.bf16.msra.mxu0 %v3060_v8  ;;  %v3333_v55 = vmul.f32 0.0, %v474_v48  ;;  %v524_v56 = vmax.f32 %v523_v49, 0.0  ;;  %v3372_v5 = vmax.f32 %v507_v52, 0.0  ;;  %v2646_v36 = vunpack.c.h.bf16 %v2670_v20 }
  0x1b   : > { %2829 = vmatpush3.bf16.msra.mxu1 %v3061_v9  ;;  %2806 = vmatprep.subr.bf16.mxu0 %v3062_v11  ;;  %v636_v59 = vrot.slane %v3326_v51, 7  ;;  %v637_v60 = vrot.slane %v3329_v53, 7  ;;  %v638_v61 = vrot.slane %v3331_v54, 7  ;;  %v3071_v9 = vld [vmem:[%s3946_s3 + $0xf8] sm:$0xff]   ;;  %v3426_v39 = vadd.s32 48, %v3228_v7 }
  0x1c   : > { %2830 = vmatprep.subr.bf16.mxu1 %v3063_v12  ;;  %v705_v63 = vpack.c.bf16 %v3326_v51, %v3333_v55  ;;  %v3355_v0 = vmul.f32 0.0, %v524_v56  ;;  %v635_v1 = vrot.slane %v3333_v55, 7  ;;  %v639_v29 = vrot.slane %v3372_v5, 7 }
  0x1d   : > { %v3376_v6 = vsel %vm644_vm0, %v637_v60, %v638_v61  ;;  %v3380_v8 = vsel %vm644_vm0, %v636_v59, %v637_v60  ;;  %v952_v34 = vrot.slane %v3333_v55, 1  ;;  %vm3437_vm7 = vcmp.ne.s32.totalorder %v571_v19, 0 }
  0x1e   : > { %2807 = vmatpush3.bf16.msra.mxu0 %v3062_v11  ;;  %2814 = vmatprep.mubr.bf16.mxu0 %v705_v63  ;;  %v643_v11 = vrot.slane %v3355_v0, 7  ;;  %v3403_v22 = vpack.c.bf16 %v3376_v6, %v3380_v8  ;;  %v3443_v45 = vadd.s32 56, %v3228_v7  ;;  %vm3450_vm8 = vcmp.ne.s32.totalorder %v578_v27, 0  ;;  %v3076_v63 = vld [vmem:[%s3946_s3 + $0xa0] sm:$0xff]  }
  0x1f   : > { %2831 = vmatpush3.bf16.msra.mxu1 %v3063_v12  ;;  %2808 = vmatprep.subr.bf16.mxu0 %v3064_v13  ;;  %v3388_v12 = vsel %vm644_vm0, %v635_v1, %v636_v59  ;;  %v585_v48 = vand.u32 7, %v3426_v39  ;;  %v3458_v49 = vsel %vm644_vm0, %v638_v61, %v639_v29  ;;  %v503_v58 = vmul.f32 %v2646_v36, %v3272_v17  ;;  %vm3510_vm13 = vmpackc.low %vm3450_vm8, %vm3437_vm7 }
  0x20   : > { %2832 = vmatprep.subr.bf16.mxu1 %v3065_v15  ;;  %v652_v21 = vsel %vm644_vm0, %v643_v11, %v635_v1  ;;  %v592_v56 = vand.u32 7, %v3443_v45  ;;  %v953_v60 = vrot.slane %v3326_v51, 1  ;;  %v954_v61 = vrot.slane %v3329_v53, 1  ;;  %v3091_v45 = vld [vmem:[%s3946_s3 + $0x168] sm:$0xff]  }
  0x21   : > { %v2323_v30 = vpack.c.bf16 %v3388_v12, %v652_v21  ;;  %vm3484_vm9 = vcmp.ne.s32.totalorder %v585_v48, 0  ;;  %vm961_vm11 = vcmp.lt.s32.totalorder %v3228_v7, 7  ;;  %vm3498_vm12 = vcmp.ne.s32.totalorder %v550_v14, 7 }
  0x22   : > { %2809 = vmatpush3.bf16.msra.mxu0 %v3064_v13  ;;  %v2669_v13 = vld [vmem:[%s3257_s13 + $0x10] sm:$0xff]   ;;  %vm3491_vm10 = vcmp.ne.s32.totalorder %v592_v56, 0  ;;  %vm3521_vm14 = vcmp.ne.s32.totalorder %v543_v23, 7  ;;  %v3541_v23 = vsel %vm961_vm11, %v953_v60, %v954_v61  ;;  %v955_v55 = vrot.slane %v3331_v54, 1 }
  0x23   : > { %2833 = vmatpush3.bf16.msra.mxu1 %v3065_v15  ;;  %2810 = vmatprep.subr.bf16.mxu0 %v3066_v33  ;;  %v3393_v15 = vpack.c.bf16 %v3331_v54, %v3329_v53  ;;  %v2641_v16 = vunpack.c.l.bf16 %v2669_v13  ;;  %v2642_v28 = vunpack.c.h.bf16 %v2669_v13  ;;  %vm3556_vm15 = vmpackc.low %vm3491_vm10, %vm3484_vm9  ;;  %vm3645_vm2 = vcmp.ne.s32.totalorder %v564_v42, 7  ;;  %v3087_v42 = vld [vmem:[%s3946_s3 + $0x178] sm:$0xff]  }
  0x24   : > { %2834 = vmatprep.subr.bf16.mxu1 %v3067_v38  ;;  %2838 = vmatprep.mubr.msk.bf16.mxu1 %vm3362_vm5, %v2323_v30  ;;  %vm3576_vm1 = vmpackc.low %vm3498_vm12, %vm3521_vm14  ;;  %v3085_v30 = vld [vmem:[%s3946_s3 + $0xc0] sm:$0xff]   ;;  %vm2685_vm3 = vcmp.ne.s32.totalorder %v557_v37, 7  ;;  %vm2686_vm4 = vcmp.ne.s32.totalorder %v578_v27, 7  ;;  %v2416_v37 = vpack.c.bf16 %v3458_v49, %v3376_v6  ;;  %vm2687_vm8 = vcmp.ne.s32.totalorder %v571_v19, 7  ;;  %v3089_v6 = vld [vmem:[%s3946_s3 + $0x170] sm:$0xff]  }
  0x25   : > { %v500_v32 = vmul.f32 %v2641_v16, %v3272_v17  ;;  %v3083_v16 = vld [vmem:[%s3946_s3 + $0xc8] sm:$0xff]   ;;  %vm3682_vm7 = vmpackc.low %vm3645_vm2, %vm2685_vm3  ;;  %vm2688_vm10 = vcmp.ne.s32.totalorder %v592_v56, 7  ;;  %vm2689_vm12 = vcmp.ne.s32.totalorder %v585_v48, 7  ;;  %v3092_v56 = vld [vmem:[%s3946_s3 + $0x120] sm:$0xff]  }
  0x26   : > { %2811 = vmatpush3.bf16.msra.mxu0 %v3066_v33  ;;  %v2645_v33 = vunpack.c.l.bf16 %v2670_v20  ;;  %v3084_v20 = vld [vmem:[%s3946_s3 + $0x80] sm:$0xff]   ;;  %vm3702_vm9 = vmpackc.low %vm2686_vm4, %vm2687_vm8 }
  0x27   : > { %2835 = vmatpush3.bf16.msra.mxu1 %v3067_v38  ;;  %2812 = vmatprep.subr.bf16.mxu0 %v3068_v47  ;;  %v501_v38 = vmul.f32 %v2642_v28, %v3272_v17  ;;  %v508_v41 = vadd.f32 %v3286_v25, %v500_v32  ;;  %v3124_v28 = vld [vmem:[%s3946_s3 + $0x208] sm:$0xff]  }
  0x28   : > { %2836 = vmatprep.subr.bf16.mxu1 %v3069_v50  ;;  %v502_v44 = vmul.f32 %v2645_v33, %v3272_v17  ;;  %v2411_v33 = vpack.c.bf16 %v3380_v8, %v3388_v12  ;;  %v969_v8 = vsel %vm961_vm11, %v952_v34, %v953_v60  ;;  %v511_v12 = vadd.f32 %v3286_v25, %v503_v58  ;;  %v3081_v58 = vld [vmem:[%s3946_s3 + $0xd0] sm:$0xff]  }
  0x29   : > { %v2367_v43 = vpack.c.bf16 %v3541_v23, %v969_v8  ;;  %v3105_v8 = vld [vmem:[%s3946_s3 + $0x1f0] sm:$0xff]  }
  0x2a   : > { %2813 = vmatpush3.bf16.msra.mxu0 %v3068_v47  ;;  %v509_v47 = vadd.f32 %v3286_v25, %v501_v38  ;;  %v510_v52 = vadd.f32 %v3286_v25, %v502_v44  ;;  %v3078_v25 = vld [vmem:[%s3946_s3 + $0x98] sm:$0xff]   ;;  %v3590_v44 = vmax.f32 %v511_v12, 0.0  ;;  %v967_v12 = vsel %vm961_vm11, %v954_v61, %v955_v55 }
  0x2b   : > { %2837 = vmatpush3.bf16.msra.mxu1 %v3069_v50  ;;  %2846 = vmatprep.subr.bf16.mxu0 %v3070_v3  ;;  %v3460_v50 = vmax.f32 %v508_v41, 0.0 }
  0x2c   : > { %2870 = vmatprep.subr.bf16.mxu1 %v3071_v9  ;;  %v3468_v59 = vmax.f32 %v509_v47, 0.0  ;;  %v1144_v47 = vrot.slane %v3590_v44, 7 }
  0x2d   : > { %2815 = vmatmul.mubr.bf16.vlgmr.msra.gmra.mxu0 %v3393_v15  ;;  %v3477_v1 = vpack.c.bf16 %v3460_v50, %v3372_v5 }
  0x2e   : > { %2839 = vmatmul.mubr.msk.bf16.vlgmr.msra.gmra.mxu1 %vm3409_vm6, %v3403_v22  ;;  %2847 = vmatpush3.bf16.msra.mxu0 %v3070_v3  ;;  %v640_v3 = vrot.slane %v3460_v50, 7  ;;  %v641_v13 = vrot.slane %v3468_v59, 7  ;;  %v3611_v60 = vsel %vm644_vm0, %v1144_v47, %v643_v11  ;;  %v3082_v11 = vld [vmem:[%s3946_s3 + $0x88] sm:$0xff]  }
  0x2f   : > { %2871 = vmatpush3.bf16.msra.mxu1 %v3071_v9  ;;  %2848 = vmatprep.subr.bf16.mxu0 %v3072_v31  ;;  %v3480_v9 = vmax.f32 %v510_v52, 0.0  ;;  %v960_v52 = vrot.slane %v3590_v44, 1 }
  0x30   : > { %2872 = vmatprep.subr.bf16.mxu1 %v3073_v35  ;;  %v3504_v21 = vsel %vm644_vm0, %v639_v29, %v640_v3  ;;  %v3077_v29 = vld [vmem:[%s3946_s3 + $0xe0] sm:$0xff]   ;;  %2818 = vmatprep.mubr.bf16.mxu0 %v3477_v1  ;;  %v3535_v32 = vsel %vm644_vm0, %v640_v3, %v641_v13 }
  0x31   : > { %v3516_v10 = vpack.c.bf16 %v3480_v9, %v3468_v59  ;;  %v642_v14 = vrot.slane %v3480_v9, 7  ;;  %v2421_v19 = vpack.c.bf16 %v3535_v32, %v3504_v21 }
  0x32   : > { %2849 = vmatpush3.bf16.msra.mxu0 %v3072_v31  ;;  %v3531_v31 = vpack.c.bf16 %v3504_v21, %v3458_v49 }
  0x33   : > { %2873 = vmatpush3.bf16.msra.mxu1 %v3073_v35  ;;  %2850 = vmatprep.subr.bf16.mxu0 %v3074_v40  ;;  %v3550_v35 = vsel %vm644_vm0, %v641_v13, %v642_v14  ;;  %v3731_v21 = vsel %vm644_vm0, %v642_v14, %v1144_v47  ;;  %v3093_v14 = vld [vmem:[%s3946_s3 + $0x160] sm:$0xff]   ;;  %v3094_v47 = vld [vmem:[%s3946_s3 + $0x118] sm:$0xff]   ;;  %vm2105_vm0 = vcmask 1040384  }
  0x34   : > { %2874 = vmatprep.subr.bf16.mxu1 %v3075_v57  ;;  %2842 = vmatprep.mubr.msk.bf16.mxu1 %vm3510_vm13, %v3531_v31  ;;  %v3570_v38 = vpack.c.bf16 %v3550_v35, %v3535_v32  ;;  %v2426_v48 = vpack.c.bf16 %v3731_v21, %v3550_v35  ;;  %v1296_v32 = vpack.c.bf16 %v3329_v53, %v3326_v51  ;;  %v3095_v51 = vld [vmem:[%s3946_s3 + $0x158] sm:$0xff]   ;;  %v3096_v53 = vld [vmem:[%s3946_s3 + $0x110] sm:$0xff]  }
  0x35   : > { %2819 = vmatmul.mubr.bf16.gmra.mxu0 %v3516_v10  ;;  %v2479_v35 = vpack.c.bf16 %v967_v12, %v3541_v23  ;;  %v3097_v23 = vld [vmem:[%s3946_s3 + $0x150] sm:$0xff]  }
  0x36   : > { %2851 = vmatpush3.bf16.msra.mxu0 %v3074_v40  ;;  %v3079_v40 = vld [vmem:[%s3946_s3 + $0xd8] sm:$0xff]   ;;  %2843 = vmatmul.mubr.msk.bf16.gmra.mxu1 %vm3556_vm15, %v3570_v38 }
  0x37   : > { %2875 = vmatpush3.bf16.msra.mxu1 %v3075_v57  ;;  %2852 = vmatprep.subr.bf16.mxu0 %v3076_v63  ;;  %v1438_v57 = vrot.slane %v3355_v0, 1 }
  0x38   : > { %2876 = vmatprep.subr.bf16.mxu1 %v3077_v29  ;;  %2862 = vmatprep.mubr.msk.bf16.mxu0 %vm3576_vm1, %v2367_v43 }
  0x39   : > { %2886 = vmatprep.mubr.msk.bf16.mxu1 %vm3362_vm5, %v2411_v33  ;;  %v3617_v3 = vsel %vm961_vm11, %v960_v52, %v1438_v57  ;;  %v3623_v17 = vsel %vm961_vm11, %v1438_v57, %v952_v34  ;;  %v956_v34 = vrot.slane %v3372_v5, 1  ;;  %v958_v33 = vrot.slane %v3468_v59, 1 }
  0x3a   : > { %2853 = vmatpush3.bf16.msra.mxu0 %v3076_v63  ;;  %v1741_v63 = vpack.c.bf16 %v3355_v0, %v3590_v44  ;;  %v2606_v13 = vpack.c.bf16 %v3623_v17, %v3617_v3  ;;  %v3123_v0 = vld [vmem:[%s3946_s3 + $0x210] sm:$0xff]  }
  0x3b   : > { %2877 = vmatpush3.bf16.msra.mxu1 %v3077_v29  ;;  %2854 = vmatprep.subr.bf16.mxu0 %v3078_v25  ;;  %v957_v29 = vrot.slane %v3460_v50, 1  ;;  %v3655_v43 = vsel %vm961_vm11, %v955_v55, %v956_v34  ;;  %v3101_v55 = vld [vmem:[%s3946_s3 + $0x140] sm:$0xff]  }
  0x3c   : > { %2878 = vmatprep.subr.bf16.mxu1 %v3079_v40  ;;  %v3666_v61 = vpack.c.bf16 %v3655_v43, %v967_v12  ;;  %v1298_v12 = vpack.c.bf16 %v3468_v59, %v3460_v50  ;;  %v3107_v50 = vld [vmem:[%s3946_s3 + $0x1e8] sm:$0xff]   ;;  %v1299_v59 = vpack.c.bf16 %v3590_v44, %v3480_v9 }
  0x3d   : > { %v3674_v18 = vsel %vm961_vm11, %v956_v34, %v957_v29  ;;  %v3102_v34 = vld [vmem:[%s3946_s3 + $0x1b8] sm:$0xff]  }
  0x3e   : > { %2855 = vmatpush3.bf16.msra.mxu0 %v3078_v25  ;;  %v3670_v25 = vsel %vm961_vm11, %v957_v29, %v958_v33  ;;  %v2484_v29 = vpack.c.bf16 %v3674_v18, %v3655_v43 }
  0x3f   : > { %2879 = vmatpush3.bf16.msra.mxu1 %v3079_v40  ;;  %2856 = vmatprep.subr.bf16.mxu0 %v3080_v46  ;;  %v3697_v27 = vpack.c.bf16 %v3670_v25, %v3674_v18  ;;  %v3112_v18 = vld [vmem:[%s3946_s3 + $0x190] sm:$0xff]  }
  0x40   : > { %2880 = vmatprep.subr.bf16.mxu1 %v3081_v58 }
  0x42   : > { %2857 = vmatpush3.bf16.msra.mxu0 %v3080_v46  ;;  %v959_v46 = vrot.slane %v3480_v9, 1  ;;  %v3110_v9 = vld [vmem:[%s3946_s3 + $0x198] sm:$0xff]  }
  0x43   : > { %2881 = vmatpush3.bf16.msra.mxu1 %v3081_v58  ;;  %2858 = vmatprep.subr.bf16.mxu0 %v3082_v11  ;;  %v3090_v58 = vld [vmem:[%s3946_s3 + $0x128] sm:$0xff]  }
  0x44   : > { %2882 = vmatprep.subr.bf16.mxu1 %v3083_v16  ;;  %v3712_v49 = vsel %vm961_vm11, %v959_v46, %v960_v52  ;;  %v3716_v57 = vsel %vm961_vm11, %v958_v33, %v959_v46  ;;  %vm3745_vm11 = vmpackc.low %vm2688_vm10, %vm2689_vm12  ;;  %v3098_v52 = vld [vmem:[%s3946_s3 + $0x108] sm:$0xff]   ;;  %v3104_v33 = vld [vmem:[%s3946_s3 + $0x1b0] sm:$0xff]  }
  0x45   : > { %v3741_v39 = vpack.c.bf16 %v3712_v49, %v3716_v57  ;;  %v2494_v43 = vpack.c.bf16 %v3617_v3, %v3712_v49  ;;  %v3117_v46 = vld [vmem:[%s3946_s3 + $0x1c0] sm:$0xff]   ;;  %v2538_v49 = vpack.c.bf16 %v3611_v60, %v3731_v21 }
  0x46   : > { %2859 = vmatpush3.bf16.msra.mxu0 %v3082_v11  ;;  %v3099_v11 = vld [vmem:[%s3946_s3 + $0x148] sm:$0xff]  }
  0x47   : > { %2883 = vmatpush3.bf16.msra.mxu1 %v3083_v16  ;;  %2860 = vmatprep.subr.bf16.mxu0 %v3084_v20  ;;  %v3100_v16 = vld [vmem:[%s3946_s3 + $0x100] sm:$0xff]  }
  0x48   : > { %2884 = vmatprep.subr.bf16.mxu1 %v3085_v30 }
  0x4a   : > { %2861 = vmatpush3.bf16.msra.mxu0 %v3084_v20  ;;  %v3103_v20 = vld [vmem:[%s3946_s3 + $0x1f8] sm:$0xff]  }
  0x4b   : > { %2885 = vmatpush3.bf16.msra.mxu1 %v3085_v30  ;;  %2894 = vmatprep.subr.bf16.mxu0 %v3086_v24  ;;  %v1297_v30 = vpack.c.bf16 %v3372_v5, %v3331_v54  ;;  %v2489_v54 = vpack.c.bf16 %v3716_v57, %v3670_v25  ;;  %v3106_v5 = vld [vmem:[%s3946_s3 + $0x1a8] sm:$0xff]   ;;  %v3111_v25 = vld [vmem:[%s3946_s3 + $0x1d8] sm:$0xff]  }
  0x4c   : > { %2918 = vmatprep.subr.bf16.mxu1 %v3087_v42 }
  0x4d   : > { %2863 = vmatmul.mubr.msk.bf16.vlgmr.msra.gmra.mxu0 %vm3682_vm7, %v3666_v61 }
  0x4e   : > { %2887 = vmatmul.mubr.msk.bf16.vlgmr.msra.gmra.mxu1 %vm3409_vm6, %v2416_v37  ;;  %2895 = vmatpush3.bf16.msra.mxu0 %v3086_v24  ;;  %v3108_v24 = vld [vmem:[%s3946_s3 + $0x1a0] sm:$0xff]   ;;  %v3113_v37 = vld [vmem:[%s3946_s3 + $0x1d0] sm:$0xff]  }
  0x4f   : > { %2919 = vmatpush3.bf16.msra.mxu1 %v3087_v42  ;;  %2896 = vmatprep.subr.bf16.mxu0 %v3088_v4  ;;  %v3109_v42 = vld [vmem:[%s3946_s3 + $0x1e0] sm:$0xff]  }
  0x50   : > { %2920 = vmatprep.subr.bf16.mxu1 %v3089_v6  ;;  %2866 = vmatprep.mubr.msk.bf16.mxu0 %vm3702_vm9, %v3697_v27 }
  0x51   : > { %2890 = vmatprep.mubr.msk.bf16.mxu1 %vm3510_vm13, %v2421_v19  ;;  %v3120_v19 = vld [vmem:[%s3946_s3 + $0x228] sm:$0xff]  }
  0x52   : > { %2897 = vmatpush3.bf16.msra.mxu0 %v3088_v4  ;;  %v3118_v4 = vld [vmem:[%s3946_s3 + $0x238] sm:$0xff]  }
  0x53   : > { %2921 = vmatpush3.bf16.msra.mxu1 %v3089_v6  ;;  %2898 = vmatprep.subr.bf16.mxu0 %v3090_v58  ;;  %v3119_v6 = vld [vmem:[%s3946_s3 + $0x230] sm:$0xff]  }
  0x54   : > { %2922 = vmatprep.subr.bf16.mxu1 %v3091_v45 }
  0x55   : > { %2867 = vmatmul.mubr.msk.bf16.gmra.mxu0 %vm3745_vm11, %v3741_v39 }
  0x56   : > { %2899 = vmatpush3.bf16.msra.mxu0 %v3090_v58  ;;  %2891 = vmatmul.mubr.msk.bf16.gmra.mxu1 %vm3556_vm15, %v2426_v48 }
  0x57   : > { %2923 = vmatpush3.bf16.msra.mxu1 %v3091_v45  ;;  %2900 = vmatprep.subr.bf16.mxu0 %v3092_v56 }
  0x58   : > { %2924 = vmatprep.subr.bf16.mxu1 %v3093_v14  ;;  %2910 = vmatprep.mubr.bf16.mxu0 %v1296_v32 }
  0x59   : > { %2934 = vmatprep.mubr.msk.bf16.mxu1 %vm3576_vm1, %v2479_v35 }
  0x5a   : > { %2901 = vmatpush3.bf16.msra.mxu0 %v3092_v56 }
  0x5b   : > { %2925 = vmatpush3.bf16.msra.mxu1 %v3093_v14  ;;  %2902 = vmatprep.subr.bf16.mxu0 %v3094_v47 }
  0x5c   : > { %2926 = vmatprep.subr.bf16.mxu1 %v3095_v51 }
  0x5e   : > { %2903 = vmatpush3.bf16.msra.mxu0 %v3094_v47 }
  0x5f   : > { %2927 = vmatpush3.bf16.msra.mxu1 %v3095_v51  ;;  %2904 = vmatprep.subr.bf16.mxu0 %v3096_v53 }
  0x60   : > { %2928 = vmatprep.subr.bf16.mxu1 %v3097_v23 }
  0x62   : > { %2905 = vmatpush3.bf16.msra.mxu0 %v3096_v53 }
  0x63   : > { %2929 = vmatpush3.bf16.msra.mxu1 %v3097_v23  ;;  %2906 = vmatprep.subr.bf16.mxu0 %v3098_v52 }
  0x64   : > { %2930 = vmatprep.subr.bf16.mxu1 %v3099_v11 }
  0x66   : > { %2907 = vmatpush3.bf16.msra.mxu0 %v3098_v52 }
  0x67   : > { %2931 = vmatpush3.bf16.msra.mxu1 %v3099_v11  ;;  %2908 = vmatprep.subr.bf16.mxu0 %v3100_v16 }
  0x68   : > { %2932 = vmatprep.subr.bf16.mxu1 %v3101_v55 }
  0x6a   : > { %2909 = vmatpush3.bf16.msra.mxu0 %v3100_v16 }
  0x6b   : > { %2933 = vmatpush3.bf16.msra.mxu1 %v3101_v55  ;;  %2942 = vmatprep.subr.bf16.mxu0 %v3102_v34 }
  0x6c   : > { %2966 = vmatprep.subr.bf16.mxu1 %v3103_v20 }
  0x6d   : > { %2911 = vmatmul.mubr.bf16.vlgmr.msra.gmra.mxu0 %v1297_v30 }
  0x6e   : > { %2935 = vmatmul.mubr.msk.bf16.vlgmr.msra.gmra.mxu1 %vm3682_vm7, %v2484_v29  ;;  %2943 = vmatpush3.bf16.msra.mxu0 %v3102_v34 }
  0x6f   : > { %2967 = vmatpush3.bf16.msra.mxu1 %v3103_v20  ;;  %2944 = vmatprep.subr.bf16.mxu0 %v3104_v33 }
  0x70   : > { %2968 = vmatprep.subr.bf16.mxu1 %v3105_v8  ;;  %2914 = vmatprep.mubr.bf16.mxu0 %v1298_v12 }
  0x71   : > { %2938 = vmatprep.mubr.msk.bf16.mxu1 %vm3702_vm9, %v2489_v54 }
  0x72   : > { %2945 = vmatpush3.bf16.msra.mxu0 %v3104_v33 }
  0x73   : > { %2969 = vmatpush3.bf16.msra.mxu1 %v3105_v8  ;;  %2946 = vmatprep.subr.bf16.mxu0 %v3106_v5 }
  0x74   : > { %2970 = vmatprep.subr.bf16.mxu1 %v3107_v50 }
  0x75   : > { %2915 = vmatmul.mubr.bf16.gmra.mxu0 %v1299_v59 }
  0x76   : > { %2947 = vmatpush3.bf16.msra.mxu0 %v3106_v5  ;;  %2939 = vmatmul.mubr.msk.bf16.gmra.mxu1 %vm3745_vm11, %v2494_v43 }
  0x77   : > { %2971 = vmatpush3.bf16.msra.mxu1 %v3107_v50  ;;  %2948 = vmatprep.subr.bf16.mxu0 %v3108_v24 }
  0x78   : > { %2972 = vmatprep.subr.bf16.mxu1 %v3109_v42  ;;  %2958 = vmatprep.mubr.msk.bf16.mxu0 %vm3362_vm5, %v3403_v22  ;;  %v3116_v22 = vld [vmem:[%s3946_s3 + $0x180] sm:$0xff]  }
  0x79   : > { %2982 = vmatprep.mubr.bf16.mxu1 %v3393_v15  ;;  %v3115_v15 = vld [vmem:[%s3946_s3 + $0x1c8] sm:$0xff]  }
  0x7a   : > { %2949 = vmatpush3.bf16.msra.mxu0 %v3108_v24 }
  0x7b   : > { %2973 = vmatpush3.bf16.msra.mxu1 %v3109_v42  ;;  %2950 = vmatprep.subr.bf16.mxu0 %v3110_v9 }
  0x7c   : > { %2974 = vmatprep.subr.bf16.mxu1 %v3111_v25 }
  0x7e   : > { %2951 = vmatpush3.bf16.msra.mxu0 %v3110_v9 }
  0x7f   : > { %2975 = vmatpush3.bf16.msra.mxu1 %v3111_v25  ;;  %2952 = vmatprep.subr.bf16.mxu0 %v3112_v18 }
  0x80   : > { %2976 = vmatprep.subr.bf16.mxu1 %v3113_v37 }
  0x82   : > { %2953 = vmatpush3.bf16.msra.mxu0 %v3112_v18 }
  0x83   : > { %2977 = vmatpush3.bf16.msra.mxu1 %v3113_v37  ;;  %2954 = vmatprep.subr.bf16.mxu0 %v3114_v2 }
  0x84   : > { %2978 = vmatprep.subr.bf16.mxu1 %v3115_v15 }
  0x86   : > { %2955 = vmatpush3.bf16.msra.mxu0 %v3114_v2 }
  0x87   : > { %2979 = vmatpush3.bf16.msra.mxu1 %v3115_v15  ;;  %2956 = vmatprep.subr.bf16.mxu0 %v3116_v22 }
  0x88   : > { %2980 = vmatprep.subr.bf16.mxu1 %v3117_v46 }
  0x8a   : > { %2957 = vmatpush3.bf16.msra.mxu0 %v3116_v22 }
  0x8b   : > { %2981 = vmatpush3.bf16.msra.mxu1 %v3117_v46  ;;  %2990 = vmatprep.subr.bf16.mxu0 %v3118_v4 }
  0x8c   : > { %3014 = vmatprep.subr.bf16.mxu1 %v3118_v4 }
  0x8d   : > { %2959 = vmatmul.mubr.msk.bf16.vlgmr.msra.gmra.mxu0 %vm3409_vm6, %v3531_v31 }
  0x8e   : > { %2983 = vmatmul.mubr.bf16.vlgmr.msra.gmra.mxu1 %v3477_v1  ;;  %2991 = vmatpush3.bf16.msra.mxu0 %v3118_v4  ;;  %v3122_v1 = vld [vmem:[%s3946_s3 + $0x218] sm:$0xff]  }
  0x8f   : > { %3022 = vmatpush3.bf16.msra.mxu1 %v3118_v4  ;;  %2992 = vmatprep.subr.bf16.mxu0 %v3119_v6 }
  0x90   : > { %3015 = vmatprep.subr.bf16.mxu1 %v3119_v6  ;;  %2962 = vmatprep.mubr.msk.bf16.mxu0 %vm3510_vm13, %v3570_v38 }
  0x91   : > { %2986 = vmatprep.mubr.bf16.mxu1 %v3516_v10  ;;  %v3125_v10 = vld [vmem:[%s3946_s3 + $0x200] sm:$0xff]  }
  0x92   : > { %2993 = vmatpush3.bf16.msra.mxu0 %v3119_v6 }
  0x93   : > { %3023 = vmatpush3.bf16.msra.mxu1 %v3119_v6  ;;  %2994 = vmatprep.subr.bf16.mxu0 %v3120_v19 }
  0x94   : > { %3016 = vmatprep.subr.bf16.mxu1 %v3120_v19 }
  0x95   : > { %2963 = vmatmul.mubr.msk.bf16.gmra.mxu0 %vm3556_vm15, %v2538_v49 }
  0x96   : > { %2995 = vmatpush3.bf16.msra.mxu0 %v3120_v19  ;;  %2987 = vmatmul.mubr.bf16.gmra.mxu1 %v1741_v63 }
  0x97   : > { %3024 = vmatpush3.bf16.msra.mxu1 %v3120_v19  ;;  %2996 = vmatprep.subr.bf16.mxu0 %v3121_v26 }
  0x98   : > { %3017 = vmatprep.subr.bf16.mxu1 %v3121_v26  ;;  %3006 = vmatprep.mubr.msk.bf16.mxu0 %vm3576_vm1, %v3666_v61 }
  0x99   : > { %3010 = vmatprep.mubr.msk.bf16.mxu1 %vm3702_vm9, %v3741_v39 }
  0x9a   : > { %2997 = vmatpush3.bf16.msra.mxu0 %v3121_v26 }
  0x9b   : > { %3025 = vmatpush3.bf16.msra.mxu1 %v3121_v26  ;;  %2998 = vmatprep.subr.bf16.mxu0 %v3122_v1 }
  0x9c   : > { %3018 = vmatprep.subr.bf16.mxu1 %v3122_v1 }
  0x9e   : > { %2999 = vmatpush3.bf16.msra.mxu0 %v3122_v1 }
  0x9f   : > { %3026 = vmatpush3.bf16.msra.mxu1 %v3122_v1  ;;  %3000 = vmatprep.subr.bf16.mxu0 %v3123_v0 }
  0xa0   : > { %3019 = vmatprep.subr.bf16.mxu1 %v3123_v0 }
  0xa2   : > { %3001 = vmatpush3.bf16.msra.mxu0 %v3123_v0 }
  0xa3   : > { %3027 = vmatpush3.bf16.msra.mxu1 %v3123_v0  ;;  %3002 = vmatprep.subr.bf16.mxu0 %v3124_v28 }
  0xa4   : > { %3020 = vmatprep.subr.bf16.mxu1 %v3124_v28 }
  0xa6   : > { %3003 = vmatpush3.bf16.msra.mxu0 %v3124_v28 }
  0xa7   : > { %3028 = vmatpush3.bf16.msra.mxu1 %v3124_v28  ;;  %3004 = vmatprep.subr.bf16.mxu0 %v3125_v10 }
  0xa8   : > { %3021 = vmatprep.subr.bf16.mxu1 %v3125_v10 }
  0xaa   : > { %3005 = vmatpush3.bf16.msra.mxu0 %v3125_v10 }
  0xab   : > { %3029 = vmatpush3.bf16.msra.mxu1 %v3125_v10 }
  0xad   : > { %3007 = vmatmul.mubr.msk.bf16.vlgmr.msra.gmra.mxu0 %vm3682_vm7, %v3697_v27 }
  0xae   : > { %3011 = vmatmul.mubr.msk.bf16.vlgmr.msra.gmra.mxu1 %vm3745_vm11, %v2606_v13 }
  0xed   : > { %v2816_v31 = vpop.f32.mrf.mxu0 }
  0xee   : > { %v2840_v36 = vpop.f32.mrf.mxu1 }
  0xef   : > { %v808_v38 = vpop.f32.mrf.mxu0  ;;  %v930_v6 = vadd.f32 %v2840_v36, %v2816_v31 }
  0xf0   : > { %v921_v41 = vpop.f32.mrf.mxu1 }
  0xf1   : > { %v2817_v44 = vpop.f32.mrf.mxu0  ;;  %v922_v19 = vadd.f32 %v921_v41, %v808_v38 }
  0xf2   : > { %v2841_v60 = vpop.f32.mrf.mxu1 }
  0xf3   : > { %v811_v63 = vpop.f32.mrf.mxu0  ;;  %v933_v49 = vadd.f32 %v2841_v60, %v2817_v44 }
  0xf4   : > { %v924_v61 = vpop.f32.mrf.mxu1 }
  0xf5   : > { %v2820_v62 = vpop.f32.mrf.mxu0  ;;  %v925_v28 = vadd.f32 %v924_v61, %v811_v63 }
  0xf6   : > { %v2844_v57 = vpop.f32.mrf.mxu1 }
  0xf7   : > { %v824_v58 = vpop.f32.mrf.mxu0  ;;  %v946_v26 = vadd.f32 %v2844_v57, %v2820_v62 }
  0xf8   : > { %v937_v21 = vpop.f32.mrf.mxu1 }
  0xf9   : > { %v2821_v40 = vpop.f32.mrf.mxu0 }
  0xfa   : > { %v2845_v27 = vpop.f32.mrf.mxu1 }
  0xfb   : > { %v827_v45 = vpop.f32.mrf.mxu0  ;;  %v949_v1 = vadd.f32 %v2845_v27, %v2821_v40 }
  0xfc   : > { %v940_v39 = vpop.f32.mrf.mxu1 }
  0xfd   : > { %v941_v31 = vadd.f32 %v940_v39, %v827_v45 }
 0x10d   : > { %v2864_v3 = vpop.f32.mrf.mxu0 }
 0x10e   : > { %v2888_v17 = vpop.f32.mrf.mxu1  ;;  %v1138_v10 = vadd.f32 %v2864_v3, %v930_v6 }
 0x10f   : > { %v1105_v7 = vpop.f32.mrf.mxu0 }
 0x110   : > { %v1257_v13 = vpop.f32.mrf.mxu1  ;;  %v1290_v62 = vadd.f32 %v2888_v17, %v1138_v10 }
 0x111   : > { %v2865_v48 = vpop.f32.mrf.mxu0 }
 0x112   : > { %v2889_v56 = vpop.f32.mrf.mxu1 }
 0x113   : > { %v1108_v14 = vpop.f32.mrf.mxu0 }
 0x114   : > { %v1260_v32 = vpop.f32.mrf.mxu1  ;;  %v1137_v41 = vadd.f32 %v1108_v14, %v925_v28 }
 0x115   : > { %v2868_v35 = vpop.f32.mrf.mxu0 }
 0x116   : > { %v2892_v47 = vpop.f32.mrf.mxu1  ;;  %v1142_v36 = vadd.f32 %v2868_v35, %v946_v26  ;;  %v1289_v6 = vadd.f32 %v1260_v32, %v1137_v41 }
 0x117   : > { %v1121_v51 = vpop.f32.mrf.mxu0 }
 0x118   : > { %v1273_v53 = vpop.f32.mrf.mxu1  ;;  %v1294_v63 = vadd.f32 %v2892_v47, %v1142_v36 }
 0x119   : > { %v2869_v23 = vpop.f32.mrf.mxu0 }
 0x11a   : > { %v2893_v52 = vpop.f32.mrf.mxu1  ;;  %v1143_v38 = vadd.f32 %v2869_v23, %v949_v1 }
 0x11b   : > { %v1124_v11 = vpop.f32.mrf.mxu0 }
 0x11c   : > { %v1276_v16 = vpop.f32.mrf.mxu1  ;;  %v1141_v60 = vadd.f32 %v1124_v11, %v941_v31  ;;  %v1295_v3 = vadd.f32 %v2893_v52, %v1143_v38 }
 0x12d   : > { %v2912_v55 = vpop.f32.mrf.mxu0 }
 0x12e   : > { %v2936_v34 = vpop.f32.mrf.mxu1 }
 0x12f   : > { %v1399_v20 = vpop.f32.mrf.mxu0 }
 0x130   : > { %v1551_v30 = vpop.f32.mrf.mxu1 }
 0x131   : > { %v2913_v29 = vpop.f32.mrf.mxu0 }
 0x132   : > { %v2937_v33 = vpop.f32.mrf.mxu1 }
 0x133   : > { %v1402_v8 = vpop.f32.mrf.mxu0 }
 0x134   : > { %v1554_v12 = vpop.f32.mrf.mxu1  ;;  %v1431_v35 = vadd.f32 %v1402_v8, %v1289_v6 }
 0x135   : > { %v2916_v54 = vpop.f32.mrf.mxu0 }
 0x136   : > { %v2940_v5 = vpop.f32.mrf.mxu1  ;;  %v1583_v52 = vadd.f32 %v1554_v12, %v1431_v35 }
 0x137   : > { %v1415_v50 = vpop.f32.mrf.mxu0 }
 0x138   : > { %v1567_v59 = vpop.f32.mrf.mxu1 }
 0x139   : > { %v2917_v43 = vpop.f32.mrf.mxu0 }
 0x13a   : > { %v2941_v24 = vpop.f32.mrf.mxu1  ;;  %v1437_v45 = vadd.f32 %v2917_v43, %v1295_v3 }
 0x13b   : > { %v1418_v42 = vpop.f32.mrf.mxu0 }
 0x13c   : > { %v1570_v9 = vpop.f32.mrf.mxu1 }
 0x14d   : > { %v2960_v25 = vpop.f32.mrf.mxu0 }
 0x14e   : > { %v3914_v18 = vpop.f32.mrf.mxu1 }
 0x14f   : > { %3989 = vst [vmem:[#allocation2_spill] sm:$0xff] %v3914_v18  ;;  %v1702_v37 = vpop.f32.mrf.mxu0  ;;  %v1136_v18 = vadd.f32 %v1105_v7, %v922_v19  ;;  %v1432_v7 = vadd.f32 %v2912_v55, %v1290_v62 }
 0x150   : > { %v3916_v2 = vpop.f32.mrf.mxu1 }
 0x151   : > { %3990 = vst [vmem:[#allocation3_spill] sm:$0xff] %v3916_v2  ;;  %v2961_v15 = vpop.f32.mrf.mxu0  ;;  %v1139_v2 = vadd.f32 %v2865_v48, %v933_v49  ;;  %v1288_v27 = vadd.f32 %v1257_v13, %v1136_v18  ;;  %v1584_v11 = vadd.f32 %v2936_v34, %v1432_v7  ;;  %v1589_v18 = vadd.f32 %v2941_v24, %v1437_v45 }
 0x152   : > { %v3918_v22 = vpop.f32.mrf.mxu1 }
 0x153   : > { %3991 = vst [vmem:[#allocation4_spill] sm:$0xff] %v3918_v22  ;;  %v1705_v46 = vpop.f32.mrf.mxu0  ;;  %v1291_v40 = vadd.f32 %v2889_v56, %v1139_v2  ;;  %v1430_v19 = vadd.f32 %v1399_v20, %v1288_v27  ;;  %v1735_v32 = vadd.f32 %v2960_v25, %v1584_v11 }
 0x154   : > { %v3920_v4 = vpop.f32.mrf.mxu1  ;;  %v1734_v8 = vadd.f32 %v1705_v46, %v1583_v52 }
 0x155   : > { %3992 = vst [vmem:[#allocation5_spill] sm:$0xff] %v3920_v4  ;;  %v2964_v0 = vpop.f32.mrf.mxu0  ;;  %v938_v4 = vadd.f32 %v937_v21, %v824_v58  ;;  %v1433_v48 = vadd.f32 %v2913_v29, %v1291_v40  ;;  %v1293_v21 = vadd.f32 %v1276_v16, %v1141_v60  ;;  %v1436_v58 = vadd.f32 %v2916_v54, %v1294_v63 }
 0x156   : > { %v2988_v22 = vpop.f32.mrf.mxu1  ;;  %v1582_v17 = vadd.f32 %v1551_v30, %v1430_v19  ;;  %v3993_v30 = vld [vmem:[#allocation2_spill] sm:$0xff] }
 0x157   : > { %v1140_v44 = vadd.f32 %v1121_v51, %v938_v4  ;;  %v1718_v57 = vpop.f32.mrf.mxu0  ;;  %v1435_v23 = vadd.f32 %v1418_v42, %v1293_v21  ;;  %v1585_v13 = vadd.f32 %v2937_v33, %v1433_v48  ;;  %v1588_v56 = vadd.f32 %v2940_v5, %v1436_v58 }
 0x158   : > { %v1857_v61 = vpop.f32.mrf.mxu1  ;;  %v1733_v55 = vadd.f32 %v1702_v37, %v1582_v17  ;;  %v1874_v33 = vadd.f32 %v3993_v30, %v1735_v32  ;;  %v3994_v5 = vld [vmem:[#allocation3_spill] sm:$0xff] }
 0x159   : > { %v1292_v49 = vadd.f32 %v1273_v53, %v1140_v44  ;;  %v2965_v39 = vpop.f32.mrf.mxu0  ;;  %v1736_v20 = vadd.f32 %v2961_v15, %v1585_v13  ;;  %v1587_v16 = vadd.f32 %v1570_v9, %v1435_v23  ;;  %v1739_v54 = vadd.f32 %v2964_v0, %v1588_v56 }
 0x15a   : > { %v2989_v14 = vpop.f32.mrf.mxu1  ;;  %v1740_v43 = vadd.f32 %v2965_v39, %v1589_v18  ;;  %v1872_v24 = vadd.f32 %v3994_v5, %v1733_v55  ;;  %v3995_v12 = vld [vmem:[#allocation4_spill] sm:$0xff] }
 0x15b   : > { %v1434_v51 = vadd.f32 %v1415_v50, %v1292_v49  ;;  %v1721_v47 = vpop.f32.mrf.mxu0  ;;  %v1875_v25 = vadd.f32 %v3995_v12, %v1736_v20  ;;  %v1878_v15 = vadd.f32 %v2988_v22, %v1739_v54 }
 0x15c   : > { %v1860_v29 = vpop.f32.mrf.mxu1  ;;  %v1738_v42 = vadd.f32 %v1721_v47, %v1587_v16  ;;  %v1879_v26 = vadd.f32 %v2989_v14, %v1740_v43  ;;  %v3996_v9 = vld [vmem:[#allocation5_spill] sm:$0xff] }
 0x15d   : > { %v1586_v53 = vadd.f32 %v1567_v59, %v1434_v51  ;;  %v1873_v1 = vadd.f32 %v3996_v9, %v1734_v8 }
 0x15e   : > { %v1877_v36 = vadd.f32 %v1860_v29, %v1738_v42 }
 0x15f   : > { %v1737_v50 = vadd.f32 %v1718_v57, %v1586_v53 }
 0x161   : > { %v1876_v31 = vadd.f32 %v1857_v61, %v1737_v50 }
 0x16d   : > { %v3008_v2 = vpop.f32.mrf.mxu0 }
 0x16e   : > { %v3012_v4 = vpop.f32.mrf.mxu1  ;;  %v2025_v0 = vadd.f32 %v3008_v2, %v1874_v33 }
 0x16f   : > { %v1992_v34 = vpop.f32.mrf.mxu0  ;;  %v2029_v38 = vadd.f32 %v3012_v4, %v1878_v15 }
 0x170   : > { %v2008_v37 = vpop.f32.mrf.mxu1  ;;  %v2023_v28 = vadd.f32 %v1992_v34, %v1872_v24  ;;  %v2086_v19 = vmul.f32 %v2025_v0, %v2025_v0 }
 0x171   : > { %v3009_v59 = vpop.f32.mrf.mxu0  ;;  %v2027_v62 = vadd.f32 %v2008_v37, %v1876_v31  ;;  %v2090_v17 = vmul.f32 %v2029_v38, %v2029_v38 }
 0x172   : > { %v2026_v46 = vadd.f32 %v3009_v59, %v1875_v25  ;;  %v3013_v10 = vpop.f32.mrf.mxu1  ;;  %v2084_v63 = vmul.f32 %v2023_v28, %v2023_v28 }
 0x173   : > { %v2030_v41 = vadd.f32 %v3013_v10, %v1879_v26  ;;  %v1995_v44 = vpop.f32.mrf.mxu0  ;;  %v2088_v39 = vmul.f32 %v2027_v62, %v2027_v62 }
 0x174   : > { %v2655_v60 = vpack.c.bf16 %v2026_v46, %v2025_v0  ;;  %v2024_v57 = vadd.f32 %v1995_v44, %v1873_v1  ;;  %v2011_v22 = vpop.f32.mrf.mxu1  ;;  %v2087_v21 = vmul.f32 %v2026_v46, %v2026_v46 }
 0x175   : > { %v2665_v27 = vpack.c.bf16 %v2030_v41, %v2029_v38  ;;  %v2028_v40 = vadd.f32 %v2011_v22, %v1877_v36  ;;  %v2091_v18 = vmul.f32 %v2030_v41, %v2030_v41 }
 0x176   : > { %2671 = vst [vmem:[%s446_s23 + $0x8] sm:$0xff] %v2655_v60   ;;  %v2650_v3 = vpack.c.bf16 %v2024_v57, %v2023_v28  ;;  %v2071_v6 = vadd.f32 %v2024_v57, %v2023_v28  ;;  %v2085_v7 = vmul.f32 %v2024_v57, %v2024_v57 }
 0x177   : > { %2673 = vst [vmem:[%s446_s23 + $0x18] sm:$0xff] %v2665_v27   ;;  %v2660_v61 = vpack.c.bf16 %v2028_v40, %v2027_v62  ;;  %v2089_v23 = vmul.f32 %v2028_v40, %v2028_v40 }
 0x178   : > { %2651 = vst [vmem:[%s446_s23] sm:$0xff] %v2650_v3   ;;  %v2072_v48 = vadd.f32 %v2071_v6, %v2025_v0  ;;  %v2092_v49 = vadd.f32 %v2085_v7, %v2084_v63 }
 0x179   : > { %2672 = vst [vmem:[%s446_s23 + $0x10] sm:$0xff] %v2660_v61  }
 0x17a   : > { %v2093_v58 = vadd.f32 %v2092_v49, %v2086_v19  ;;  %v2073_v45 = vadd.f32 %v2072_v48, %v2026_v46 }
 0x17c   : > { %v2074_v35 = vadd.f32 %v2073_v45, %v2027_v62  ;;  %v2094_v14 = vadd.f32 %v2093_v58, %v2087_v21 }
 0x17e   : > { %v2075_v51 = vadd.f32 %v2074_v35, %v2028_v40  ;;  %v2095_v11 = vadd.f32 %v2094_v14, %v2088_v39 }
 0x180   : > { %v2076_v13 = vadd.f32 %v2075_v51, %v2029_v38  ;;  %v2096_v56 = vadd.f32 %v2095_v11, %v2089_v23 }
 0x182   : > { %v2077_v47 = vadd.f32 %v2076_v13, %v2030_v41  ;;  %v2097_v52 = vadd.f32 %v2096_v56, %v2090_v17 }
 0x184   : > { %v2078_v32 = vrot.slane %v2077_v47, 4  ;;  %v2098_v55 = vadd.f32 %v2097_v52, %v2091_v18 }
 0x186   : > { %v2079_v20 = vadd.f32 %v2078_v32, %v2077_v47  ;;  %v2099_v29 = vrot.slane %v2098_v55, 4 }
 0x188   : > { %v2080_v53 = vrot.slane %v2079_v20, 2  ;;  %v2100_v16 = vadd.f32 %v2099_v29, %v2098_v55 }
 0x18a   : > { %v2081_v54 = vadd.f32 %v2080_v53, %v2079_v20  ;;  %v2101_v43 = vrot.slane %v2100_v16, 2 }
 0x18c   : > { %v2082_v2 = vrot.slane %v2081_v54, 1  ;;  %v2102_v8 = vadd.f32 %v2101_v43, %v2100_v16 }
 0x18e   : > { %v2103_v4 = vrot.slane %v2102_v8, 1  ;;  %v2083_v50 = vadd.f32 %v2082_v2, %v2081_v54 }
 0x190   : > { %v2104_v42 = vadd.f32 %v2103_v4, %v2102_v8 }
 0x192   : > { %v2106_v34 = vsel %vm2105_vm0, %v2083_v50, %v2104_v42 }
 0x193   : > { %2107 = vst [vmem:[%s454_s29] sm:$0x3] %v2106_v34 }
 0x194 PF: > { %s18_s26 = sadd.s32 1, %s3148_s26   ;;  %s3997_s24 = smov %s3144_s25 }
 0x195   : > { %p15_p5 = scmp.ge.s32.totalorder %s18_s26, 4   ;;  %s3998_s25 = smov %s4000_s27 }
 0x197   :  { %17 = sbr.rel (!%p15_p5) target bundleno = 2 (0x2), region = 100 }

</bundles_post_ra>
